<compile_context>
chip_gen: v7x
topology: tpu7x:2x2x1
jax: 0.10.0
libtpu: 0.0.40
codegen_flags: <defaults>
</compile_context>

<pallas_src>
import math
from functools import partial

import jax
import jax.numpy as jnp
from jax import lax
from jax.experimental import pallas as pl
from jax.experimental.pallas import tpu as pltpu


# ---------------------------------------------------------------------------
# Pallas kernels
# ---------------------------------------------------------------------------

def _mha_core(xq, xkv, keep_ref, wq_ref, wk_ref, wv_ref, bq_ref, bk_ref, bv_ref,
              wo_ref, bo_ref, g_ref, bln_ref, o_ref, *, n_heads, scale, causal):
    """Fused per-batch-element attention sub-layer.

    xq  : bf16 [Sq, D]   query-side input (also the residual)
    xkv : bf16 [Sk, D]   key/value-side input (== xq for self-attention)
    keep_ref : int32 [1, 1, Sk]  1 = attendable key position
    wq/wk/wv : bf16 [H, D, dh] head-major projection weights (leading-dim view
               per head -> full-K projections, no lane slicing of activations)
    wo : bf16 [D, D], bo/g/bln : f32 [1, D]
    """
    Sq, _ = xq.shape
    Sk = xkv.shape[0]

    keep = keep_ref[0] != 0                                      # [1, Sk] bool
    mask = jnp.broadcast_to(keep, (Sq, Sk))
    if causal:
        row = lax.broadcasted_iota(jnp.int32, (Sq, Sk), 0)
        col = lax.broadcasted_iota(jnp.int32, (Sq, Sk), 1)
        mask = jnp.logical_and(mask, col <= row)

    ctx_parts = []
    for h in range(n_heads):                     # unrolled; head = leading-dim view
        qh = (jnp.dot(xq, wq_ref[h], preferred_element_type=jnp.float32)
              + bq_ref[h]).astype(jnp.bfloat16)                   # [Sq, dh]
        kh = (jnp.dot(xkv, wk_ref[h], preferred_element_type=jnp.float32)
              + bk_ref[h]).astype(jnp.bfloat16)                   # [Sk, dh]
        vh = (jnp.dot(xkv, wv_ref[h], preferred_element_type=jnp.float32)
              + bv_ref[h]).astype(jnp.bfloat16)                   # [Sk, dh]

        # q @ k^T without materializing a transpose (contract last dims).
        s = lax.dot_general(qh, kh, (((1,), (1,)), ((), ())),
                            preferred_element_type=jnp.float32) * scale
        s = jnp.where(mask, s, jnp.float32(-1e9))
        s = s - jnp.max(s, axis=-1, keepdims=True)
        p = jnp.exp(s)
        inv = pl.reciprocal(jnp.sum(p, axis=-1, keepdims=True), approx=True)
        p = (p * inv).astype(jnp.bfloat16)
        ctx_parts.append(jnp.dot(p, vh, preferred_element_type=jnp.float32)
                         .astype(jnp.bfloat16))                   # [Sq, dh]

    # Head concat in VMEM, then ONE full-K output projection.
    ctx = jnp.concatenate(ctx_parts, axis=-1)                     # [Sq, D] bf16
    proj = jnp.dot(ctx, wo_ref[...], preferred_element_type=jnp.float32) + bo_ref[...]

    r = xq.astype(jnp.float32) + proj                             # residual add
    mu = jnp.mean(r, axis=-1, keepdims=True)
    var = jnp.mean((r - mu) ** 2, axis=-1, keepdims=True)
    y = (r - mu) * lax.rsqrt(var + 1e-5) * g_ref[...] + bln_ref[...]
    o_ref[0] = y.astype(o_ref.dtype)


def _self_attn_kernel(x_ref, keep_ref, *rest, n_heads, scale, causal):
    x = x_ref[0]
    _mha_core(x, x, keep_ref, *rest, n_heads=n_heads, scale=scale, causal=causal)


def _cross_attn_kernel(xq_ref, xkv_ref, keep_ref, *rest, n_heads, scale, causal):
    _mha_core(xq_ref[0], xkv_ref[0], keep_ref, *rest,
              n_heads=n_heads, scale=scale, causal=causal)


def _ffn_ln_kernel(x_ref, w1_ref, b1_ref, w2_ref, b2_ref, g_ref, bln_ref, o_ref):
    """Fused FFN (w1 + ReLU + w2) -> residual add -> LayerNorm on a row tile.
    The d_ff intermediate never leaves on-chip memory."""
    x = x_ref[...]                                                # bf16 [TM, D]
    h = jnp.dot(x, w1_ref[...], preferred_element_type=jnp.float32) + b1_ref[...]
    h = jnp.maximum(h, 0.0).astype(jnp.bfloat16)
    f = jnp.dot(h, w2_ref[...], preferred_element_type=jnp.float32) + b2_ref[...]
    r = x.astype(jnp.float32) + f
    mu = jnp.mean(r, axis=-1, keepdims=True)
    var = jnp.mean((r - mu) ** 2, axis=-1, keepdims=True)
    o_ref[...] = ((r - mu) * lax.rsqrt(var + 1e-5) * g_ref[...]
                  + bln_ref[...]).astype(o_ref.dtype)


# ---------------------------------------------------------------------------
# Pallas wrappers
# ---------------------------------------------------------------------------

_VMEM_LIMIT = 32 * 1024 * 1024   # explicit scoped-VMEM request, safe on v5e/v6e/v7x


def pallas_attn_block(xq, keep, p, ln_g, ln_b, *, n_heads, causal, xkv=None):
    """One fused attention sub-layer (projections + MHA + Wo + residual + LN)."""
    B, Sq, D = xq.shape
    dh = D // n_heads
    scale = 1.0 / math.sqrt(dh)
    self_attn = xkv is None
    Sk = Sq if self_attn else xkv.shape[1]

    weight_specs = [
        pl.BlockSpec((n_heads, D, dh), lambda i: (0, 0, 0)),   # wq
        pl.BlockSpec((n_heads, D, dh), lambda i: (0, 0, 0)),   # wk
        pl.BlockSpec((n_heads, D, dh), lambda i: (0, 0, 0)),   # wv
        pl.BlockSpec((n_heads, 1, dh), lambda i: (0, 0, 0)),   # bq
        pl.BlockSpec((n_heads, 1, dh), lambda i: (0, 0, 0)),   # bk
        pl.BlockSpec((n_heads, 1, dh), lambda i: (0, 0, 0)),   # bv
        pl.BlockSpec((D, D), lambda i: (0, 0)),                # wo
        pl.BlockSpec((1, D), lambda i: (0, 0)),                # bo
        pl.BlockSpec((1, D), lambda i: (0, 0)),                # ln_g
        pl.BlockSpec((1, D), lambda i: (0, 0)),                # ln_b
    ]
    weight_args = (p["wq"], p["wk"], p["wv"], p["bq"], p["bk"], p["bv"],
                   p["wo"], p["bo"], ln_g, ln_b)

    if self_attn:
        kern = partial(_self_attn_kernel, n_heads=n_heads, scale=scale, causal=causal)
        in_specs = [pl.BlockSpec((1, Sq, D), lambda i: (i, 0, 0)),
                    pl.BlockSpec((1, 1, Sk), lambda i: (i, 0, 0))] + weight_specs
        args = (xq, keep) + weight_args
    else:
        kern = partial(_cross_attn_kernel, n_heads=n_heads, scale=scale, causal=causal)
        in_specs = [pl.BlockSpec((1, Sq, D), lambda i: (i, 0, 0)),
                    pl.BlockSpec((1, Sk, D), lambda i: (i, 0, 0)),
                    pl.BlockSpec((1, 1, Sk), lambda i: (i, 0, 0))] + weight_specs
        args = (xq, xkv, keep) + weight_args

    cost = pl.CostEstimate(
        flops=B * (2 * D * D * (2 * Sq + 2 * Sk) + 4 * Sq * Sk * D),
        transcendentals=B * n_heads * Sq * Sk,
        bytes_accessed=2 * (2 * B * Sq * D + B * Sk * D + 4 * D * D)
                       + 4 * (B * Sk + 7 * D))

    return pl.pallas_call(
        kern,
        out_shape=jax.ShapeDtypeStruct((B, Sq, D), jnp.bfloat16),
        grid=(B,),
        in_specs=in_specs,
        out_specs=pl.BlockSpec((1, Sq, D), lambda i: (i, 0, 0)),
        compiler_params=pltpu.CompilerParams(
            dimension_semantics=("parallel",),
            vmem_limit_bytes=_VMEM_LIMIT),
        cost_estimate=cost,
    )(*args)


def pallas_ffn_block(x, p, ln_g, ln_b):
    """Fused FFN + residual + LayerNorm, gridded over B*S row tiles."""
    B, S, D = x.shape
    F = p["w1"].shape[1]
    R = B * S
    tm = min(R, 256)
    if R % tm:
        tm = R                                  # fall back to a single full block
    x2 = x.reshape(R, D)

    cost = pl.CostEstimate(
        flops=4 * R * D * F,
        transcendentals=0,
        bytes_accessed=2 * (2 * R * D + 2 * D * F) + 4 * (F + 3 * D))

    y = pl.pallas_call(
        _ffn_ln_kernel,
        out_shape=jax.ShapeDtypeStruct((R, D), jnp.bfloat16),
        grid=(R // tm,),
        in_specs=[
            pl.BlockSpec((tm, D), lambda i: (i, 0)),
            pl.BlockSpec((D, F), lambda i: (0, 0)),
            pl.BlockSpec((1, F), lambda i: (0, 0)),
            pl.BlockSpec((F, D), lambda i: (0, 0)),
            pl.BlockSpec((1, D), lambda i: (0, 0)),
            pl.BlockSpec((1, D), lambda i: (0, 0)),
            pl.BlockSpec((1, D), lambda i: (0, 0)),
        ],
        out_specs=pl.BlockSpec((tm, D), lambda i: (i, 0)),
        compiler_params=pltpu.CompilerParams(
            dimension_semantics=("parallel",),
            vmem_limit_bytes=_VMEM_LIMIT),
        cost_estimate=cost,
    )(x2, p["w1"], p["b1"], p["w2"], p["b2"], ln_g, ln_b)
    return y.reshape(B, S, D)


# ---------------------------------------------------------------------------
# Model glue (embeddings, layers, keep-vectors) — plain JAX around the kernels
# ---------------------------------------------------------------------------

def positional_encoding(max_len, d_model):
    pos = jnp.arange(max_len, dtype=jnp.float32)[:, None]
    div = jnp.exp(jnp.arange(0, d_model, 2, dtype=jnp.float32)
                  * (-math.log(10000.0) / d_model))
    pe = jnp.zeros((max_len, d_model), jnp.float32)
    pe = pe.at[:, 0::2].set(jnp.sin(pos * div))
    pe = pe.at[:, 1::2].set(jnp.cos(pos * div))
    return pe


def embed(tokens, table, d_model):
    # TODO(synk): embedding gather + sinusoidal positional encoding stay in plain
    # JAX (tiny data-dependent gather; no worthwhile Pallas equivalent here).
    B, S = tokens.shape
    x = jnp.take(table, tokens, axis=0) * math.sqrt(d_model)
    x = x + positional_encoding(S, d_model)[None, :, :]
    return x.astype(jnp.bfloat16)


def encoder_layer(p, x, inp_keep, n_heads):
    x = pallas_attn_block(x, inp_keep, p["self_attn"], p["ln1_g"], p["ln1_b"],
                          n_heads=n_heads, causal=False)
    x = pallas_ffn_block(x, p["ffn"], p["ln2_g"], p["ln2_b"])
    return x


def decoder_layer(p, y, enc, out_keep, inp_keep, n_heads):
    y = pallas_attn_block(y, out_keep, p["self_attn"], p["ln1_g"], p["ln1_b"],
                          n_heads=n_heads, causal=True)
    y = pallas_attn_block(y, inp_keep, p["cross_attn"], p["ln2_g"], p["ln2_b"],
                          n_heads=n_heads, causal=False, xkv=enc)
    y = pallas_ffn_block(y, p["ffn"], p["ln3_g"], p["ln3_b"])
    return y


def transformer_forward(params, inp, out, pad_index, n_heads):
    B, S_in = inp.shape
    S_out = out.shape[1]
    d_model = params["input_embed"].shape[1]

    # Only per-token keep vectors travel to the kernels; the broadcast key mask
    # (and the causal tril for decoder self-attn) are built in-kernel.
    inp_keep = (inp != pad_index).astype(jnp.int32).reshape(B, 1, S_in)
    out_keep = (out != pad_index).astype(jnp.int32).reshape(B, 1, S_out)

    x = embed(inp, params["input_embed"], d_model)
    for lp in params["encoder"]:
        x = encoder_layer(lp, x, inp_keep, n_heads)
    encoded = x

    y = embed(out, params["output_embed"], d_model)
    for lp in params["decoder"]:
        y = decoder_layer(lp, y, encoded, out_keep, inp_keep, n_heads)
    return y


# ---------------------------------------------------------------------------
# Deterministic parameter initialization (head-major bf16 attention weights)
# ---------------------------------------------------------------------------

def _dense_init(key, din, dout):
    w = jax.random.normal(key, (din, dout), jnp.float32) * 0.02
    b = jnp.zeros((dout,), jnp.float32)
    return w, b


def _mha_params(key, d_model, n_heads):
    dh = d_model // n_heads
    ks = jax.random.split(key, 4)
    wq, bq = _dense_init(ks[0], d_model, d_model)
    wk, bk = _dense_init(ks[1], d_model, d_model)
    wv, bv = _dense_init(ks[2], d_model, d_model)
    wo, bo = _dense_init(ks[3], d_model, d_model)

    def head_major(w):   # [D, D] -> [H, D, dh], column block h = head h
        return w.reshape(d_model, n_heads, dh).transpose(1, 0, 2).astype(jnp.bfloat16)

    def head_bias(b):    # [D] -> [H, 1, dh], kept f32 (added to f32 accumulators)
        return b.reshape(n_heads, 1, dh)

    return {"wq": head_major(wq), "wk": head_major(wk), "wv": head_major(wv),
            "bq": head_bias(bq), "bk": head_bias(bk), "bv": head_bias(bv),
            "wo": wo.astype(jnp.bfloat16), "bo": bo.reshape(1, d_model)}


def _ffn_params(key, d_model, d_ff):
    k1, k2 = jax.random.split(key)
    w1, b1 = _dense_init(k1, d_model, d_ff)
    w2, b2 = _dense_init(k2, d_ff, d_model)
    return {"w1": w1.astype(jnp.bfloat16), "b1": b1.reshape(1, d_ff),
            "w2": w2.astype(jnp.bfloat16), "b2": b2.reshape(1, d_model)}


def init_params(key, vocab_in, vocab_out, d_model, d_ff, n_heads, n_layers):
    keys = jax.random.split(key, 2 + 2 * n_layers)
    params = {
        "input_embed": jax.random.normal(keys[0], (vocab_in, d_model), jnp.float32) * 0.02,
        "output_embed": jax.random.normal(keys[1], (vocab_out, d_model), jnp.float32) * 0.02,
        "encoder": [],
        "decoder": [],
    }
    ones = jnp.ones((1, d_model), jnp.float32)
    zeros = jnp.zeros((1, d_model), jnp.float32)
    for i in range(n_layers):
        ke1, ke2 = jax.random.split(keys[2 + i])
        params["encoder"].append({
            "self_attn": _mha_params(ke1, d_model, n_heads),
            "ffn": _ffn_params(ke2, d_model, d_ff),
            "ln1_g": ones, "ln1_b": zeros, "ln2_g": ones, "ln2_b": zeros,
        })
        kd1, kd2, kd3 = jax.random.split(keys[2 + n_layers + i], 3)
        params["decoder"].append({
            "self_attn": _mha_params(kd1, d_model, n_heads),
            "cross_attn": _mha_params(kd2, d_model, n_heads),
            "ffn": _ffn_params(kd3, d_model, d_ff),
            "ln1_g": ones, "ln1_b": zeros, "ln2_g": ones, "ln2_b": zeros,
            "ln3_g": ones, "ln3_b": zeros,
        })
    return params


# ---------------------------------------------------------------------------
# Main
# ---------------------------------------------------------------------------

if __name__ == "__main__":
    # d_model = 128 keeps every kernel's output last dim lane-dense (128 lanes).
    B, S_in, S_out = 2, 8, 8
    vocab_in, vocab_out = 16, 16
    d_model, d_ff, n_heads, n_layers = 128, 256, 4, 2
    pad_index = 0

    key = jax.random.PRNGKey(0)
    k_inp, k_out, k_par = jax.random.split(key, 3)

    # Token ids in [1, vocab) with a few trailing pads to exercise the masks.
    inp = jax.random.randint(k_inp, (B, S_in), 1, vocab_in, dtype=jnp.int32)
    out = jax.random.randint(k_out, (B, S_out), 1, vocab_out, dtype=jnp.int32)
    inp = inp.at[1, -2:].set(pad_index)
    out = out.at[0, -1:].set(pad_index)

    params = init_params(k_par, vocab_in, vocab_out, d_model, d_ff, n_heads, n_layers)

    fwd = jax.jit(partial(transformer_forward, pad_index=pad_index, n_heads=n_heads))
    result = fwd(params, inp, out)
    jax.block_until_ready(result)

    assert result.shape == (B, S_out, d_model)
    assert bool(jnp.all(jnp.isfinite(result.astype(jnp.float32))))
    print("KERNEL_OK")
</pallas_src>

<mosaic_0001>
module attributes {stable_mosaic.version = 11 : i64} {
  func.func @_self_attn_kernel(%arg0: i32, %arg1: memref<1x8x128xbf16, #tpu.memory_space<vmem>>, %arg2: memref<1x1x8xi32, #tpu.memory_space<vmem>>, %arg3: memref<4x128x32xbf16, #tpu.memory_space<vmem>>, %arg4: memref<4x128x32xbf16, #tpu.memory_space<vmem>>, %arg5: memref<4x128x32xbf16, #tpu.memory_space<vmem>>, %arg6: memref<4x1x32xf32, #tpu.memory_space<vmem>>, %arg7: memref<4x1x32xf32, #tpu.memory_space<vmem>>, %arg8: memref<4x1x32xf32, #tpu.memory_space<vmem>>, %arg9: memref<128x128xbf16, #tpu.memory_space<vmem>>, %arg10: memref<1x128xf32, #tpu.memory_space<vmem>>, %arg11: memref<1x128xf32, #tpu.memory_space<vmem>>, %arg12: memref<1x128xf32, #tpu.memory_space<vmem>>, %arg13: memref<1x8x128xbf16, #tpu.memory_space<vmem>>) attributes {dimension_semantics = [#tpu.dimension_semantics<parallel>], iteration_bounds = array<i64: 2>, scalar_prefetch = 0 : i64, scratch_operands = 0 : i64, tpu.core_type = #tpu.core_type<tc>, window_params = [{transform_indices = @transform_0, window_bounds = array<i64: 1, 8, 128>}, {transform_indices = @transform_1, window_bounds = array<i64: 1, 1, 8>}, {pipeline_mode = #tpu.pipeline_mode<synchronous>, transform_indices = @transform_2, window_bounds = array<i64: 4, 128, 32>}, {pipeline_mode = #tpu.pipeline_mode<synchronous>, transform_indices = @transform_3, window_bounds = array<i64: 4, 128, 32>}, {pipeline_mode = #tpu.pipeline_mode<synchronous>, transform_indices = @transform_4, window_bounds = array<i64: 4, 128, 32>}, {pipeline_mode = #tpu.pipeline_mode<synchronous>, transform_indices = @transform_5, window_bounds = array<i64: 4, 1, 32>}, {pipeline_mode = #tpu.pipeline_mode<synchronous>, transform_indices = @transform_6, window_bounds = array<i64: 4, 1, 32>}, {pipeline_mode = #tpu.pipeline_mode<synchronous>, transform_indices = @transform_7, window_bounds = array<i64: 4, 1, 32>}, {pipeline_mode = #tpu.pipeline_mode<synchronous>, transform_indices = @transform_8, window_bounds = array<i64: 128, 128>}, {pipeline_mode = #tpu.pipeline_mode<synchronous>, transform_indices = @transform_9, window_bounds = array<i64: 1, 128>}, {pipeline_mode = #tpu.pipeline_mode<synchronous>, transform_indices = @transform_10, window_bounds = array<i64: 1, 128>}, {pipeline_mode = #tpu.pipeline_mode<synchronous>, transform_indices = @transform_11, window_bounds = array<i64: 1, 128>}, {transform_indices = @transform_12, window_bounds = array<i64: 1, 8, 128>}]} {
    %c0 = arith.constant 0 : index
    %c0_0 = arith.constant 0 : index
    %c0_1 = arith.constant 0 : index
    %0 = vector.load %arg1[%c0, %c0_0, %c0_1] : memref<1x8x128xbf16, #tpu.memory_space<vmem>>, vector<1x8x128xbf16>
    %1 = vector.shape_cast %0 : vector<1x8x128xbf16> to vector<8x128xbf16>
    %c0_2 = arith.constant 0 : index
    %c0_3 = arith.constant 0 : index
    %c0_4 = arith.constant 0 : index
    %2 = vector.load %arg2[%c0_2, %c0_3, %c0_4] : memref<1x1x8xi32, #tpu.memory_space<vmem>>, vector<1x1x8xi32>
    %3 = vector.shape_cast %2 : vector<1x1x8xi32> to vector<1x8xi32>
    %c0_i32 = arith.constant 0 : i32
    %4 = vector.broadcast %c0_i32 : i32 to vector<1x8xi32>
    %5 = arith.cmpi ne, %3, %4 : vector<1x8xi32>
    %6 = vector.shape_cast %5 : vector<1x8xi1> to vector<1x8xi1>
    %7 = vector.broadcast %6 : vector<1x8xi1> to vector<8x8xi1>
    %c0_5 = arith.constant 0 : index
    %c0_6 = arith.constant 0 : index
    %c0_7 = arith.constant 0 : index
    %8 = vector.load %arg3[%c0_5, %c0_6, %c0_7] : memref<4x128x32xbf16, #tpu.memory_space<vmem>>, vector<1x128x32xbf16>
    %9 = vector.shape_cast %8 : vector<1x128x32xbf16> to vector<128x32xbf16>
    %cst = arith.constant dense<0.000000e+00> : vector<8x32xf32>
    %10 = tpu.matmul %1, %9, %cst {dimension_numbers = #tpu.dot_dimension_numbers<[1], [0], [0], [1], [0, 0, 1, 1], [], []>} : vector<8x128xbf16>, vector<128x32xbf16>, vector<8x32xf32> -> vector<8x32xf32>
    %c0_8 = arith.constant 0 : index
    %c0_9 = arith.constant 0 : index
    %c0_10 = arith.constant 0 : index
    %11 = vector.load %arg6[%c0_8, %c0_9, %c0_10] : memref<4x1x32xf32, #tpu.memory_space<vmem>>, vector<1x1x32xf32>
    %12 = vector.shape_cast %11 : vector<1x1x32xf32> to vector<1x32xf32>
    %13 = vector.broadcast %12 : vector<1x32xf32> to vector<8x32xf32>
    %14 = arith.addf %10, %13 : vector<8x32xf32>
    %15 = arith.truncf %14 : vector<8x32xf32> to vector<8x32xbf16>
    %c0_11 = arith.constant 0 : index
    %c0_12 = arith.constant 0 : index
    %c0_13 = arith.constant 0 : index
    %16 = vector.load %arg4[%c0_11, %c0_12, %c0_13] : memref<4x128x32xbf16, #tpu.memory_space<vmem>>, vector<1x128x32xbf16>
    %17 = vector.shape_cast %16 : vector<1x128x32xbf16> to vector<128x32xbf16>
    %cst_14 = arith.constant dense<0.000000e+00> : vector<8x32xf32>
    %18 = tpu.matmul %1, %17, %cst_14 {dimension_numbers = #tpu.dot_dimension_numbers<[1], [0], [0], [1], [0, 0, 1, 1], [], []>} : vector<8x128xbf16>, vector<128x32xbf16>, vector<8x32xf32> -> vector<8x32xf32>
    %c0_15 = arith.constant 0 : index
    %c0_16 = arith.constant 0 : index
    %c0_17 = arith.constant 0 : index
    %19 = vector.load %arg7[%c0_15, %c0_16, %c0_17] : memref<4x1x32xf32, #tpu.memory_space<vmem>>, vector<1x1x32xf32>
    %20 = vector.shape_cast %19 : vector<1x1x32xf32> to vector<1x32xf32>
    %21 = vector.broadcast %20 : vector<1x32xf32> to vector<8x32xf32>
    %22 = arith.addf %18, %21 : vector<8x32xf32>
    %23 = arith.truncf %22 : vector<8x32xf32> to vector<8x32xbf16>
    %c0_18 = arith.constant 0 : index
    %c0_19 = arith.constant 0 : index
    %c0_20 = arith.constant 0 : index
    %24 = vector.load %arg5[%c0_18, %c0_19, %c0_20] : memref<4x128x32xbf16, #tpu.memory_space<vmem>>, vector<1x128x32xbf16>
    %25 = vector.shape_cast %24 : vector<1x128x32xbf16> to vector<128x32xbf16>
    %cst_21 = arith.constant dense<0.000000e+00> : vector<8x32xf32>
    %26 = tpu.matmul %1, %25, %cst_21 {dimension_numbers = #tpu.dot_dimension_numbers<[1], [0], [0], [1], [0, 0, 1, 1], [], []>} : vector<8x128xbf16>, vector<128x32xbf16>, vector<8x32xf32> -> vector<8x32xf32>
    %c0_22 = arith.constant 0 : index
    %c0_23 = arith.constant 0 : index
    %c0_24 = arith.constant 0 : index
    %27 = vector.load %arg8[%c0_22, %c0_23, %c0_24] : memref<4x1x32xf32, #tpu.memory_space<vmem>>, vector<1x1x32xf32>
    %28 = vector.shape_cast %27 : vector<1x1x32xf32> to vector<1x32xf32>
    %29 = vector.broadcast %28 : vector<1x32xf32> to vector<8x32xf32>
    %30 = arith.addf %26, %29 : vector<8x32xf32>
    %31 = arith.truncf %30 : vector<8x32xf32> to vector<8x32xbf16>
    %cst_25 = arith.constant dense<0.000000e+00> : vector<8x8xf32>
    %32 = tpu.matmul %15, %23, %cst_25 {dimension_numbers = #tpu.dot_dimension_numbers<[1], [1], [0], [0], [0, 0, 1, 0], [], []>} : vector<8x32xbf16>, vector<8x32xbf16>, vector<8x8xf32> -> vector<8x8xf32>
    %cst_26 = arith.constant 0.176776692 : f32
    %33 = vector.broadcast %cst_26 : f32 to vector<8x8xf32>
    %34 = arith.mulf %32, %33 : vector<8x8xf32>
    %cst_27 = arith.constant -1.000000e+09 : f32
    %35 = vector.broadcast %cst_27 : f32 to vector<8x8xf32>
    %36 = arith.select %7, %34, %35 : vector<8x8xi1>, vector<8x8xf32>
    %cst_28 = arith.constant dense<0xFF800000> : vector<8xf32>
    %37 = vector.multi_reduction <maximumf>, %36, %cst_28 [1] : vector<8x8xf32> to vector<8xf32>
    %38 = vector.shape_cast %37 : vector<8xf32> to vector<8x1xf32>
    %39 = vector.broadcast %38 : vector<8x1xf32> to vector<8x8xf32>
    %40 = arith.subf %36, %39 : vector<8x8xf32>
    %41 = math.exp %40 : vector<8x8xf32>
    %cst_29 = arith.constant dense<0.000000e+00> : vector<8xf32>
    %42 = vector.multi_reduction <add>, %41, %cst_29 [1] : vector<8x8xf32> to vector<8xf32>
    %43 = vector.shape_cast %42 : vector<8xf32> to vector<8x1xf32>
    %44 = tpu.reciprocal %43 {approx = true} : vector<8x1xf32> -> vector<8x1xf32>
    %45 = vector.broadcast %44 : vector<8x1xf32> to vector<8x8xf32>
    %46 = arith.mulf %41, %45 : vector<8x8xf32>
    %47 = arith.truncf %46 : vector<8x8xf32> to vector<8x8xbf16>
    %cst_30 = arith.constant dense<0.000000e+00> : vector<8x32xf32>
    %48 = tpu.matmul %47, %31, %cst_30 {dimension_numbers = #tpu.dot_dimension_numbers<[1], [0], [0], [1], [0, 0, 1, 1], [], []>} : vector<8x8xbf16>, vector<8x32xbf16>, vector<8x32xf32> -> vector<8x32xf32>
    %49 = arith.truncf %48 : vector<8x32xf32> to vector<8x32xbf16>
    %c1 = arith.constant 1 : index
    %c0_31 = arith.constant 0 : index
    %c0_32 = arith.constant 0 : index
    %50 = vector.load %arg3[%c1, %c0_31, %c0_32] : memref<4x128x32xbf16, #tpu.memory_space<vmem>>, vector<1x128x32xbf16>
    %51 = vector.shape_cast %50 : vector<1x128x32xbf16> to vector<128x32xbf16>
    %cst_33 = arith.constant dense<0.000000e+00> : vector<8x32xf32>
    %52 = tpu.matmul %1, %51, %cst_33 {dimension_numbers = #tpu.dot_dimension_numbers<[1], [0], [0], [1], [0, 0, 1, 1], [], []>} : vector<8x128xbf16>, vector<128x32xbf16>, vector<8x32xf32> -> vector<8x32xf32>
    %c1_34 = arith.constant 1 : index
    %c0_35 = arith.constant 0 : index
    %c0_36 = arith.constant 0 : index
    %53 = vector.load %arg6[%c1_34, %c0_35, %c0_36] : memref<4x1x32xf32, #tpu.memory_space<vmem>>, vector<1x1x32xf32>
    %54 = vector.shape_cast %53 : vector<1x1x32xf32> to vector<1x32xf32>
    %55 = vector.broadcast %54 : vector<1x32xf32> to vector<8x32xf32>
    %56 = arith.addf %52, %55 : vector<8x32xf32>
    %57 = arith.truncf %56 : vector<8x32xf32> to vector<8x32xbf16>
    %c1_37 = arith.constant 1 : index
    %c0_38 = arith.constant 0 : index
    %c0_39 = arith.constant 0 : index
    %58 = vector.load %arg4[%c1_37, %c0_38, %c0_39] : memref<4x128x32xbf16, #tpu.memory_space<vmem>>, vector<1x128x32xbf16>
    %59 = vector.shape_cast %58 : vector<1x128x32xbf16> to vector<128x32xbf16>
    %cst_40 = arith.constant dense<0.000000e+00> : vector<8x32xf32>
    %60 = tpu.matmul %1, %59, %cst_40 {dimension_numbers = #tpu.dot_dimension_numbers<[1], [0], [0], [1], [0, 0, 1, 1], [], []>} : vector<8x128xbf16>, vector<128x32xbf16>, vector<8x32xf32> -> vector<8x32xf32>
    %c1_41 = arith.constant 1 : index
    %c0_42 = arith.constant 0 : index
    %c0_43 = arith.constant 0 : index
    %61 = vector.load %arg7[%c1_41, %c0_42, %c0_43] : memref<4x1x32xf32, #tpu.memory_space<vmem>>, vector<1x1x32xf32>
    %62 = vector.shape_cast %61 : vector<1x1x32xf32> to vector<1x32xf32>
    %63 = vector.broadcast %62 : vector<1x32xf32> to vector<8x32xf32>
    %64 = arith.addf %60, %63 : vector<8x32xf32>
    %65 = arith.truncf %64 : vector<8x32xf32> to vector<8x32xbf16>
    %c1_44 = arith.constant 1 : index
    %c0_45 = arith.constant 0 : index
    %c0_46 = arith.constant 0 : index
    %66 = vector.load %arg5[%c1_44, %c0_45, %c0_46] : memref<4x128x32xbf16, #tpu.memory_space<vmem>>, vector<1x128x32xbf16>
    %67 = vector.shape_cast %66 : vector<1x128x32xbf16> to vector<128x32xbf16>
    %cst_47 = arith.constant dense<0.000000e+00> : vector<8x32xf32>
    %68 = tpu.matmul %1, %67, %cst_47 {dimension_numbers = #tpu.dot_dimension_numbers<[1], [0], [0], [1], [0, 0, 1, 1], [], []>} : vector<8x128xbf16>, vector<128x32xbf16>, vector<8x32xf32> -> vector<8x32xf32>
    %c1_48 = arith.constant 1 : index
    %c0_49 = arith.constant 0 : index
    %c0_50 = arith.constant 0 : index
    %69 = vector.load %arg8[%c1_48, %c0_49, %c0_50] : memref<4x1x32xf32, #tpu.memory_space<vmem>>, vector<1x1x32xf32>
    %70 = vector.shape_cast %69 : vector<1x1x32xf32> to vector<1x32xf32>
    %71 = vector.broadcast %70 : vector<1x32xf32> to vector<8x32xf32>
    %72 = arith.addf %68, %71 : vector<8x32xf32>
    %73 = arith.truncf %72 : vector<8x32xf32> to vector<8x32xbf16>
    %cst_51 = arith.constant dense<0.000000e+00> : vector<8x8xf32>
    %74 = tpu.matmul %57, %65, %cst_51 {dimension_numbers = #tpu.dot_dimension_numbers<[1], [1], [0], [0], [0, 0, 1, 0], [], []>} : vector<8x32xbf16>, vector<8x32xbf16>, vector<8x8xf32> -> vector<8x8xf32>
    %cst_52 = arith.constant 0.176776692 : f32
    %75 = vector.broadcast %cst_52 : f32 to vector<8x8xf32>
    %76 = arith.mulf %74, %75 : vector<8x8xf32>
    %cst_53 = arith.constant -1.000000e+09 : f32
    %77 = vector.broadcast %cst_53 : f32 to vector<8x8xf32>
    %78 = arith.select %7, %76, %77 : vector<8x8xi1>, vector<8x8xf32>
    %cst_54 = arith.constant dense<0xFF800000> : vector<8xf32>
    %79 = vector.multi_reduction <maximumf>, %78, %cst_54 [1] : vector<8x8xf32> to vector<8xf32>
    %80 = vector.shape_cast %79 : vector<8xf32> to vector<8x1xf32>
    %81 = vector.broadcast %80 : vector<8x1xf32> to vector<8x8xf32>
    %82 = arith.subf %78, %81 : vector<8x8xf32>
    %83 = math.exp %82 : vector<8x8xf32>
    %cst_55 = arith.constant dense<0.000000e+00> : vector<8xf32>
    %84 = vector.multi_reduction <add>, %83, %cst_55 [1] : vector<8x8xf32> to vector<8xf32>
    %85 = vector.shape_cast %84 : vector<8xf32> to vector<8x1xf32>
    %86 = tpu.reciprocal %85 {approx = true} : vector<8x1xf32> -> vector<8x1xf32>
    %87 = vector.broadcast %86 : vector<8x1xf32> to vector<8x8xf32>
    %88 = arith.mulf %83, %87 : vector<8x8xf32>
    %89 = arith.truncf %88 : vector<8x8xf32> to vector<8x8xbf16>
    %cst_56 = arith.constant dense<0.000000e+00> : vector<8x32xf32>
    %90 = tpu.matmul %89, %73, %cst_56 {dimension_numbers = #tpu.dot_dimension_numbers<[1], [0], [0], [1], [0, 0, 1, 1], [], []>} : vector<8x8xbf16>, vector<8x32xbf16>, vector<8x32xf32> -> vector<8x32xf32>
    %91 = arith.truncf %90 : vector<8x32xf32> to vector<8x32xbf16>
    %c2 = arith.constant 2 : index
    %c0_57 = arith.constant 0 : index
    %c0_58 = arith.constant 0 : index
    %92 = vector.load %arg3[%c2, %c0_57, %c0_58] : memref<4x128x32xbf16, #tpu.memory_space<vmem>>, vector<1x128x32xbf16>
    %93 = vector.shape_cast %92 : vector<1x128x32xbf16> to vector<128x32xbf16>
    %cst_59 = arith.constant dense<0.000000e+00> : vector<8x32xf32>
    %94 = tpu.matmul %1, %93, %cst_59 {dimension_numbers = #tpu.dot_dimension_numbers<[1], [0], [0], [1], [0, 0, 1, 1], [], []>} : vector<8x128xbf16>, vector<128x32xbf16>, vector<8x32xf32> -> vector<8x32xf32>
    %c2_60 = arith.constant 2 : index
    %c0_61 = arith.constant 0 : index
    %c0_62 = arith.constant 0 : index
    %95 = vector.load %arg6[%c2_60, %c0_61, %c0_62] : memref<4x1x32xf32, #tpu.memory_space<vmem>>, vector<1x1x32xf32>
    %96 = vector.shape_cast %95 : vector<1x1x32xf32> to vector<1x32xf32>
    %97 = vector.broadcast %96 : vector<1x32xf32> to vector<8x32xf32>
    %98 = arith.addf %94, %97 : vector<8x32xf32>
    %99 = arith.truncf %98 : vector<8x32xf32> to vector<8x32xbf16>
    %c2_63 = arith.constant 2 : index
    %c0_64 = arith.constant 0 : index
    %c0_65 = arith.constant 0 : index
    %100 = vector.load %arg4[%c2_63, %c0_64, %c0_65] : memref<4x128x32xbf16, #tpu.memory_space<vmem>>, vector<1x128x32xbf16>
    %101 = vector.shape_cast %100 : vector<1x128x32xbf16> to vector<128x32xbf16>
    %cst_66 = arith.constant dense<0.000000e+00> : vector<8x32xf32>
    %102 = tpu.matmul %1, %101, %cst_66 {dimension_numbers = #tpu.dot_dimension_numbers<[1], [0], [0], [1], [0, 0, 1, 1], [], []>} : vector<8x128xbf16>, vector<128x32xbf16>, vector<8x32xf32> -> vector<8x32xf32>
    %c2_67 = arith.constant 2 : index
    %c0_68 = arith.constant 0 : index
    %c0_69 = arith.constant 0 : index
    %103 = vector.load %arg7[%c2_67, %c0_68, %c0_69] : memref<4x1x32xf32, #tpu.memory_space<vmem>>, vector<1x1x32xf32>
    %104 = vector.shape_cast %103 : vector<1x1x32xf32> to vector<1x32xf32>
    %105 = vector.broadcast %104 : vector<1x32xf32> to vector<8x32xf32>
    %106 = arith.addf %102, %105 : vector<8x32xf32>
    %107 = arith.truncf %106 : vector<8x32xf32> to vector<8x32xbf16>
    %c2_70 = arith.constant 2 : index
    %c0_71 = arith.constant 0 : index
    %c0_72 = arith.constant 0 : index
    %108 = vector.load %arg5[%c2_70, %c0_71, %c0_72] : memref<4x128x32xbf16, #tpu.memory_space<vmem>>, vector<1x128x32xbf16>
    %109 = vector.shape_cast %108 : vector<1x128x32xbf16> to vector<128x32xbf16>
    %cst_73 = arith.constant dense<0.000000e+00> : vector<8x32xf32>
    %110 = tpu.matmul %1, %109, %cst_73 {dimension_numbers = #tpu.dot_dimension_numbers<[1], [0], [0], [1], [0, 0, 1, 1], [], []>} : vector<8x128xbf16>, vector<128x32xbf16>, vector<8x32xf32> -> vector<8x32xf32>
    %c2_74 = arith.constant 2 : index
    %c0_75 = arith.constant 0 : index
    %c0_76 = arith.constant 0 : index
    %111 = vector.load %arg8[%c2_74, %c0_75, %c0_76] : memref<4x1x32xf32, #tpu.memory_space<vmem>>, vector<1x1x32xf32>
    %112 = vector.shape_cast %111 : vector<1x1x32xf32> to vector<1x32xf32>
    %113 = vector.broadcast %112 : vector<1x32xf32> to vector<8x32xf32>
    %114 = arith.addf %110, %113 : vector<8x32xf32>
    %115 = arith.truncf %114 : vector<8x32xf32> to vector<8x32xbf16>
    %cst_77 = arith.constant dense<0.000000e+00> : vector<8x8xf32>
    %116 = tpu.matmul %99, %107, %cst_77 {dimension_numbers = #tpu.dot_dimension_numbers<[1], [1], [0], [0], [0, 0, 1, 0], [], []>} : vector<8x32xbf16>, vector<8x32xbf16>, vector<8x8xf32> -> vector<8x8xf32>
    %cst_78 = arith.constant 0.176776692 : f32
    %117 = vector.broadcast %cst_78 : f32 to vector<8x8xf32>
    %118 = arith.mulf %116, %117 : vector<8x8xf32>
    %cst_79 = arith.constant -1.000000e+09 : f32
    %119 = vector.broadcast %cst_79 : f32 to vector<8x8xf32>
    %120 = arith.select %7, %118, %119 : vector<8x8xi1>, vector<8x8xf32>
    %cst_80 = arith.constant dense<0xFF800000> : vector<8xf32>
    %121 = vector.multi_reduction <maximumf>, %120, %cst_80 [1] : vector<8x8xf32> to vector<8xf32>
    %122 = vector.shape_cast %121 : vector<8xf32> to vector<8x1xf32>
    %123 = vector.broadcast %122 : vector<8x1xf32> to vector<8x8xf32>
    %124 = arith.subf %120, %123 : vector<8x8xf32>
    %125 = math.exp %124 : vector<8x8xf32>
    %cst_81 = arith.constant dense<0.000000e+00> : vector<8xf32>
    %126 = vector.multi_reduction <add>, %125, %cst_81 [1] : vector<8x8xf32> to vector<8xf32>
    %127 = vector.shape_cast %126 : vector<8xf32> to vector<8x1xf32>
    %128 = tpu.reciprocal %127 {approx = true} : vector<8x1xf32> -> vector<8x1xf32>
    %129 = vector.broadcast %128 : vector<8x1xf32> to vector<8x8xf32>
    %130 = arith.mulf %125, %129 : vector<8x8xf32>
    %131 = arith.truncf %130 : vector<8x8xf32> to vector<8x8xbf16>
    %cst_82 = arith.constant dense<0.000000e+00> : vector<8x32xf32>
    %132 = tpu.matmul %131, %115, %cst_82 {dimension_numbers = #tpu.dot_dimension_numbers<[1], [0], [0], [1], [0, 0, 1, 1], [], []>} : vector<8x8xbf16>, vector<8x32xbf16>, vector<8x32xf32> -> vector<8x32xf32>
    %133 = arith.truncf %132 : vector<8x32xf32> to vector<8x32xbf16>
    %c3 = arith.constant 3 : index
    %c0_83 = arith.constant 0 : index
    %c0_84 = arith.constant 0 : index
    %134 = vector.load %arg3[%c3, %c0_83, %c0_84] : memref<4x128x32xbf16, #tpu.memory_space<vmem>>, vector<1x128x32xbf16>
    %135 = vector.shape_cast %134 : vector<1x128x32xbf16> to vector<128x32xbf16>
    %cst_85 = arith.constant dense<0.000000e+00> : vector<8x32xf32>
    %136 = tpu.matmul %1, %135, %cst_85 {dimension_numbers = #tpu.dot_dimension_numbers<[1], [0], [0], [1], [0, 0, 1, 1], [], []>} : vector<8x128xbf16>, vector<128x32xbf16>, vector<8x32xf32> -> vector<8x32xf32>
    %c3_86 = arith.constant 3 : index
    %c0_87 = arith.constant 0 : index
    %c0_88 = arith.constant 0 : index
    %137 = vector.load %arg6[%c3_86, %c0_87, %c0_88] : memref<4x1x32xf32, #tpu.memory_space<vmem>>, vector<1x1x32xf32>
    %138 = vector.shape_cast %137 : vector<1x1x32xf32> to vector<1x32xf32>
    %139 = vector.broadcast %138 : vector<1x32xf32> to vector<8x32xf32>
    %140 = arith.addf %136, %139 : vector<8x32xf32>
    %141 = arith.truncf %140 : vector<8x32xf32> to vector<8x32xbf16>
    %c3_89 = arith.constant 3 : index
    %c0_90 = arith.constant 0 : index
    %c0_91 = arith.constant 0 : index
    %142 = vector.load %arg4[%c3_89, %c0_90, %c0_91] : memref<4x128x32xbf16, #tpu.memory_space<vmem>>, vector<1x128x32xbf16>
    %143 = vector.shape_cast %142 : vector<1x128x32xbf16> to vector<128x32xbf16>
    %cst_92 = arith.constant dense<0.000000e+00> : vector<8x32xf32>
    %144 = tpu.matmul %1, %143, %cst_92 {dimension_numbers = #tpu.dot_dimension_numbers<[1], [0], [0], [1], [0, 0, 1, 1], [], []>} : vector<8x128xbf16>, vector<128x32xbf16>, vector<8x32xf32> -> vector<8x32xf32>
    %c3_93 = arith.constant 3 : index
    %c0_94 = arith.constant 0 : index
    %c0_95 = arith.constant 0 : index
    %145 = vector.load %arg7[%c3_93, %c0_94, %c0_95] : memref<4x1x32xf32, #tpu.memory_space<vmem>>, vector<1x1x32xf32>
    %146 = vector.shape_cast %145 : vector<1x1x32xf32> to vector<1x32xf32>
    %147 = vector.broadcast %146 : vector<1x32xf32> to vector<8x32xf32>
    %148 = arith.addf %144, %147 : vector<8x32xf32>
    %149 = arith.truncf %148 : vector<8x32xf32> to vector<8x32xbf16>
    %c3_96 = arith.constant 3 : index
    %c0_97 = arith.constant 0 : index
    %c0_98 = arith.constant 0 : index
    %150 = vector.load %arg5[%c3_96, %c0_97, %c0_98] : memref<4x128x32xbf16, #tpu.memory_space<vmem>>, vector<1x128x32xbf16>
    %151 = vector.shape_cast %150 : vector<1x128x32xbf16> to vector<128x32xbf16>
    %cst_99 = arith.constant dense<0.000000e+00> : vector<8x32xf32>
    %152 = tpu.matmul %1, %151, %cst_99 {dimension_numbers = #tpu.dot_dimension_numbers<[1], [0], [0], [1], [0, 0, 1, 1], [], []>} : vector<8x128xbf16>, vector<128x32xbf16>, vector<8x32xf32> -> vector<8x32xf32>
    %c3_100 = arith.constant 3 : index
    %c0_101 = arith.constant 0 : index
    %c0_102 = arith.constant 0 : index
    %153 = vector.load %arg8[%c3_100, %c0_101, %c0_102] : memref<4x1x32xf32, #tpu.memory_space<vmem>>, vector<1x1x32xf32>
    %154 = vector.shape_cast %153 : vector<1x1x32xf32> to vector<1x32xf32>
    %155 = vector.broadcast %154 : vector<1x32xf32> to vector<8x32xf32>
    %156 = arith.addf %152, %155 : vector<8x32xf32>
    %157 = arith.truncf %156 : vector<8x32xf32> to vector<8x32xbf16>
    %cst_103 = arith.constant dense<0.000000e+00> : vector<8x8xf32>
    %158 = tpu.matmul %141, %149, %cst_103 {dimension_numbers = #tpu.dot_dimension_numbers<[1], [1], [0], [0], [0, 0, 1, 0], [], []>} : vector<8x32xbf16>, vector<8x32xbf16>, vector<8x8xf32> -> vector<8x8xf32>
    %cst_104 = arith.constant 0.176776692 : f32
    %159 = vector.broadcast %cst_104 : f32 to vector<8x8xf32>
    %160 = arith.mulf %158, %159 : vector<8x8xf32>
    %cst_105 = arith.constant -1.000000e+09 : f32
    %161 = vector.broadcast %cst_105 : f32 to vector<8x8xf32>
    %162 = arith.select %7, %160, %161 : vector<8x8xi1>, vector<8x8xf32>
    %cst_106 = arith.constant dense<0xFF800000> : vector<8xf32>
    %163 = vector.multi_reduction <maximumf>, %162, %cst_106 [1] : vector<8x8xf32> to vector<8xf32>
    %164 = vector.shape_cast %163 : vector<8xf32> to vector<8x1xf32>
    %165 = vector.broadcast %164 : vector<8x1xf32> to vector<8x8xf32>
    %166 = arith.subf %162, %165 : vector<8x8xf32>
    %167 = math.exp %166 : vector<8x8xf32>
    %cst_107 = arith.constant dense<0.000000e+00> : vector<8xf32>
    %168 = vector.multi_reduction <add>, %167, %cst_107 [1] : vector<8x8xf32> to vector<8xf32>
    %169 = vector.shape_cast %168 : vector<8xf32> to vector<8x1xf32>
    %170 = tpu.reciprocal %169 {approx = true} : vector<8x1xf32> -> vector<8x1xf32>
    %171 = vector.broadcast %170 : vector<8x1xf32> to vector<8x8xf32>
    %172 = arith.mulf %167, %171 : vector<8x8xf32>
    %173 = arith.truncf %172 : vector<8x8xf32> to vector<8x8xbf16>
    %cst_108 = arith.constant dense<0.000000e+00> : vector<8x32xf32>
    %174 = tpu.matmul %173, %157, %cst_108 {dimension_numbers = #tpu.dot_dimension_numbers<[1], [0], [0], [1], [0, 0, 1, 1], [], []>} : vector<8x8xbf16>, vector<8x32xbf16>, vector<8x32xf32> -> vector<8x32xf32>
    %175 = arith.truncf %174 : vector<8x32xf32> to vector<8x32xbf16>
    %176 = tpu.concatenate %49, %91, %133, %175 in 1 : vector<8x32xbf16>, vector<8x32xbf16>, vector<8x32xbf16>, vector<8x32xbf16> -> vector<8x128xbf16>
    %c0_109 = arith.constant 0 : index
    %c0_110 = arith.constant 0 : index
    %177 = vector.load %arg9[%c0_109, %c0_110] : memref<128x128xbf16, #tpu.memory_space<vmem>>, vector<128x128xbf16>
    %cst_111 = arith.constant dense<0.000000e+00> : vector<8x128xf32>
    %178 = tpu.matmul %176, %177, %cst_111 {dimension_numbers = #tpu.dot_dimension_numbers<[1], [0], [0], [1], [0, 0, 1, 1], [], []>} : vector<8x128xbf16>, vector<128x128xbf16>, vector<8x128xf32> -> vector<8x128xf32>
    %c0_112 = arith.constant 0 : index
    %c0_113 = arith.constant 0 : index
    %179 = vector.load %arg10[%c0_112, %c0_113] : memref<1x128xf32, #tpu.memory_space<vmem>>, vector<1x128xf32>
    %180 = vector.broadcast %179 : vector<1x128xf32> to vector<8x128xf32>
    %181 = arith.addf %178, %180 : vector<8x128xf32>
    %182 = arith.extf %1 : vector<8x128xbf16> to vector<8x128xf32>
    %183 = arith.addf %182, %181 : vector<8x128xf32>
    %cst_114 = arith.constant dense<0.000000e+00> : vector<8xf32>
    %184 = vector.multi_reduction <add>, %183, %cst_114 [1] : vector<8x128xf32> to vector<8xf32>
    %185 = vector.shape_cast %184 : vector<8xf32> to vector<8x1xf32>
    %cst_115 = arith.constant 1.280000e+02 : f32
    %186 = vector.broadcast %cst_115 : f32 to vector<8x1xf32>
    %187 = arith.divf %185, %186 : vector<8x1xf32>
    %188 = vector.broadcast %187 : vector<8x1xf32> to vector<8x128xf32>
    %189 = arith.subf %183, %188 : vector<8x128xf32>
    %190 = arith.mulf %189, %189 : vector<8x128xf32>
    %cst_116 = arith.constant dense<0.000000e+00> : vector<8xf32>
    %191 = vector.multi_reduction <add>, %190, %cst_116 [1] : vector<8x128xf32> to vector<8xf32>
    %192 = vector.shape_cast %191 : vector<8xf32> to vector<8x1xf32>
    %cst_117 = arith.constant 1.280000e+02 : f32
    %193 = vector.broadcast %cst_117 : f32 to vector<8x1xf32>
    %194 = arith.divf %192, %193 : vector<8x1xf32>
    %195 = vector.broadcast %187 : vector<8x1xf32> to vector<8x128xf32>
    %196 = arith.subf %183, %195 : vector<8x128xf32>
    %cst_118 = arith.constant 9.99999974E-6 : f32
    %197 = vector.broadcast %cst_118 : f32 to vector<8x1xf32>
    %198 = arith.addf %194, %197 : vector<8x1xf32>
    %199 = math.rsqrt %198 : vector<8x1xf32>
    %200 = vector.broadcast %199 : vector<8x1xf32> to vector<8x128xf32>
    %201 = arith.mulf %196, %200 : vector<8x128xf32>
    %c0_119 = arith.constant 0 : index
    %c0_120 = arith.constant 0 : index
    %202 = vector.load %arg11[%c0_119, %c0_120] : memref<1x128xf32, #tpu.memory_space<vmem>>, vector<1x128xf32>
    %203 = vector.broadcast %202 : vector<1x128xf32> to vector<8x128xf32>
    %204 = arith.mulf %201, %203 : vector<8x128xf32>
    %c0_121 = arith.constant 0 : index
    %c0_122 = arith.constant 0 : index
    %205 = vector.load %arg12[%c0_121, %c0_122] : memref<1x128xf32, #tpu.memory_space<vmem>>, vector<1x128xf32>
    %206 = vector.broadcast %205 : vector<1x128xf32> to vector<8x128xf32>
    %207 = arith.addf %204, %206 : vector<8x128xf32>
    %208 = arith.truncf %207 : vector<8x128xf32> to vector<8x128xbf16>
    %c0_123 = arith.constant 0 : index
    %c0_124 = arith.constant 0 : index
    %c0_125 = arith.constant 0 : index
    %209 = vector.load %arg13[%c0_123, %c0_124, %c0_125] : memref<1x8x128xbf16, #tpu.memory_space<vmem>>, vector<1x8x128xbf16>
    %210 = vector.shape_cast %209 : vector<1x8x128xbf16> to vector<8x128xbf16>
    %211 = vector.shape_cast %208 : vector<8x128xbf16> to vector<1x8x128xbf16>
    tpu.vector_store %arg13[%c0_123, %c0_124, %c0_125], %211 {strides = array<i32>} : memref<1x8x128xbf16, #tpu.memory_space<vmem>>, vector<1x8x128xbf16>,
    return
  }
  func.func @transform_0(%arg0: i32) -> (i32, i32, i32) {
    %c0_i32 = arith.constant 0 : i32
    %c0_i32_0 = arith.constant 0 : i32
    %c0_i32_1 = arith.constant 0 : i32
    return %arg0, %c0_i32, %c0_i32_0 : i32, i32, i32
  }
  func.func @transform_1(%arg0: i32) -> (i32, i32, i32) {
    %c0_i32 = arith.constant 0 : i32
    %c0_i32_0 = arith.constant 0 : i32
    %c0_i32_1 = arith.constant 0 : i32
    return %arg0, %c0_i32, %c0_i32_0 : i32, i32, i32
  }
  func.func @transform_2(%arg0: i32) -> (i32, i32, i32) {
    %c0_i32 = arith.constant 0 : i32
    %c0_i32_0 = arith.constant 0 : i32
    %c0_i32_1 = arith.constant 0 : i32
    %c0_i32_2 = arith.constant 0 : i32
    return %c0_i32, %c0_i32_0, %c0_i32_1 : i32, i32, i32
  }
  func.func @transform_3(%arg0: i32) -> (i32, i32, i32) {
    %c0_i32 = arith.constant 0 : i32
    %c0_i32_0 = arith.constant 0 : i32
    %c0_i32_1 = arith.constant 0 : i32
    %c0_i32_2 = arith.constant 0 : i32
    return %c0_i32, %c0_i32_0, %c0_i32_1 : i32, i32, i32
  }
  func.func @transform_4(%arg0: i32) -> (i32, i32, i32) {
    %c0_i32 = arith.constant 0 : i32
    %c0_i32_0 = arith.constant 0 : i32
    %c0_i32_1 = arith.constant 0 : i32
    %c0_i32_2 = arith.constant 0 : i32
    return %c0_i32, %c0_i32_0, %c0_i32_1 : i32, i32, i32
  }
  func.func @transform_5(%arg0: i32) -> (i32, i32, i32) {
    %c0_i32 = arith.constant 0 : i32
    %c0_i32_0 = arith.constant 0 : i32
    %c0_i32_1 = arith.constant 0 : i32
    %c0_i32_2 = arith.constant 0 : i32
    return %c0_i32, %c0_i32_0, %c0_i32_1 : i32, i32, i32
  }
  func.func @transform_6(%arg0: i32) -> (i32, i32, i32) {
    %c0_i32 = arith.constant 0 : i32
    %c0_i32_0 = arith.constant 0 : i32
    %c0_i32_1 = arith.constant 0 : i32
    %c0_i32_2 = arith.constant 0 : i32
    return %c0_i32, %c0_i32_0, %c0_i32_1 : i32, i32, i32
  }
  func.func @transform_7(%arg0: i32) -> (i32, i32, i32) {
    %c0_i32 = arith.constant 0 : i32
    %c0_i32_0 = arith.constant 0 : i32
    %c0_i32_1 = arith.constant 0 : i32
    %c0_i32_2 = arith.constant 0 : i32
    return %c0_i32, %c0_i32_0, %c0_i32_1 : i32, i32, i32
  }
  func.func @transform_8(%arg0: i32) -> (i32, i32) {
    %c0_i32 = arith.constant 0 : i32
    %c0_i32_0 = arith.constant 0 : i32
    %c0_i32_1 = arith.constant 0 : i32
    return %c0_i32, %c0_i32_0 : i32, i32
  }
  func.func @transform_9(%arg0: i32) -> (i32, i32) {
    %c0_i32 = arith.constant 0 : i32
    %c0_i32_0 = arith.constant 0 : i32
    %c0_i32_1 = arith.constant 0 : i32
    return %c0_i32, %c0_i32_0 : i32, i32
  }
  func.func @transform_10(%arg0: i32) -> (i32, i32) {
    %c0_i32 = arith.constant 0 : i32
    %c0_i32_0 = arith.constant 0 : i32
    %c0_i32_1 = arith.constant 0 : i32
    return %c0_i32, %c0_i32_0 : i32, i32
  }
  func.func @transform_11(%arg0: i32) -> (i32, i32) {
    %c0_i32 = arith.constant 0 : i32
    %c0_i32_0 = arith.constant 0 : i32
    %c0_i32_1 = arith.constant 0 : i32
    return %c0_i32, %c0_i32_0 : i32, i32
  }
  func.func @transform_12(%arg0: i32) -> (i32, i32, i32) {
    %c0_i32 = arith.constant 0 : i32
    %c0_i32_0 = arith.constant 0 : i32
    %c0_i32_1 = arith.constant 0 : i32
    return %arg0, %c0_i32, %c0_i32_0 : i32, i32, i32
  }
}

module attributes {stable_mosaic.version = 11 : i64} {
  func.func @_ffn_ln_kernel(%arg0: i32, %arg1: memref<16x128xbf16, #tpu.memory_space<vmem>>, %arg2: memref<128x256xbf16, #tpu.memory_space<vmem>>, %arg3: memref<1x256xf32, #tpu.memory_space<vmem>>, %arg4: memref<256x128xbf16, #tpu.memory_space<vmem>>, %arg5: memref<1x128xf32, #tpu.memory_space<vmem>>, %arg6: memref<1x128xf32, #tpu.memory_space<vmem>>, %arg7: memref<1x128xf32, #tpu.memory_space<vmem>>, %arg8: memref<16x128xbf16, #tpu.memory_space<vmem>>) attributes {dimension_semantics = [#tpu.dimension_semantics<parallel>], iteration_bounds = array<i64: 1>, scalar_prefetch = 0 : i64, scratch_operands = 0 : i64, tpu.core_type = #tpu.core_type<tc>, window_params = [{transform_indices = @transform_0, window_bounds = array<i64: 16, 128>}, {pipeline_mode = #tpu.pipeline_mode<synchronous>, transform_indices = @transform_1, window_bounds = array<i64: 128, 256>}, {pipeline_mode = #tpu.pipeline_mode<synchronous>, transform_indices = @transform_2, window_bounds = array<i64: 1, 256>}, {pipeline_mode = #tpu.pipeline_mode<synchronous>, transform_indices = @transform_3, window_bounds = array<i64: 256, 128>}, {pipeline_mode = #tpu.pipeline_mode<synchronous>, transform_indices = @transform_4, window_bounds = array<i64: 1, 128>}, {pipeline_mode = #tpu.pipeline_mode<synchronous>, transform_indices = @transform_5, window_bounds = array<i64: 1, 128>}, {pipeline_mode = #tpu.pipeline_mode<synchronous>, transform_indices = @transform_6, window_bounds = array<i64: 1, 128>}, {transform_indices = @transform_7, window_bounds = array<i64: 16, 128>}]} {
    %c0 = arith.constant 0 : index
    %c0_0 = arith.constant 0 : index
    %0 = vector.load %arg1[%c0, %c0_0] : memref<16x128xbf16, #tpu.memory_space<vmem>>, vector<16x128xbf16>
    %c0_1 = arith.constant 0 : index
    %c0_2 = arith.constant 0 : index
    %1 = vector.load %arg2[%c0_1, %c0_2] : memref<128x256xbf16, #tpu.memory_space<vmem>>, vector<128x256xbf16>
    %cst = arith.constant dense<0.000000e+00> : vector<16x256xf32>
    %2 = tpu.matmul %0, %1, %cst {dimension_numbers = #tpu.dot_dimension_numbers<[1], [0], [0], [1], [0, 0, 1, 1], [], []>} : vector<16x128xbf16>, vector<128x256xbf16>, vector<16x256xf32> -> vector<16x256xf32>
    %c0_3 = arith.constant 0 : index
    %c0_4 = arith.constant 0 : index
    %3 = vector.load %arg3[%c0_3, %c0_4] : memref<1x256xf32, #tpu.memory_space<vmem>>, vector<1x256xf32>
    %4 = vector.broadcast %3 : vector<1x256xf32> to vector<16x256xf32>
    %5 = arith.addf %2, %4 : vector<16x256xf32>
    %cst_5 = arith.constant 0.000000e+00 : f32
    %6 = vector.broadcast %cst_5 : f32 to vector<16x256xf32>
    %7 = arith.maximumf %5, %6 : vector<16x256xf32>
    %8 = arith.truncf %7 : vector<16x256xf32> to vector<16x256xbf16>
    %c0_6 = arith.constant 0 : index
    %c0_7 = arith.constant 0 : index
    %9 = vector.load %arg4[%c0_6, %c0_7] : memref<256x128xbf16, #tpu.memory_space<vmem>>, vector<256x128xbf16>
    %cst_8 = arith.constant dense<0.000000e+00> : vector<16x128xf32>
    %10 = tpu.matmul %8, %9, %cst_8 {dimension_numbers = #tpu.dot_dimension_numbers<[1], [0], [0], [1], [0, 0, 1, 1], [], []>} : vector<16x256xbf16>, vector<256x128xbf16>, vector<16x128xf32> -> vector<16x128xf32>
    %c0_9 = arith.constant 0 : index
    %c0_10 = arith.constant 0 : index
    %11 = vector.load %arg5[%c0_9, %c0_10] : memref<1x128xf32, #tpu.memory_space<vmem>>, vector<1x128xf32>
    %12 = vector.broadcast %11 : vector<1x128xf32> to vector<16x128xf32>
    %13 = arith.addf %10, %12 : vector<16x128xf32>
    %14 = arith.extf %0 : vector<16x128xbf16> to vector<16x128xf32>
    %15 = arith.addf %14, %13 : vector<16x128xf32>
    %cst_11 = arith.constant dense<0.000000e+00> : vector<16xf32>
    %16 = vector.multi_reduction <add>, %15, %cst_11 [1] : vector<16x128xf32> to vector<16xf32>
    %17 = vector.shape_cast %16 : vector<16xf32> to vector<16x1xf32>
    %cst_12 = arith.constant 1.280000e+02 : f32
    %18 = vector.broadcast %cst_12 : f32 to vector<16x1xf32>
    %19 = arith.divf %17, %18 : vector<16x1xf32>
    %20 = vector.broadcast %19 : vector<16x1xf32> to vector<16x128xf32>
    %21 = arith.subf %15, %20 : vector<16x128xf32>
    %22 = arith.mulf %21, %21 : vector<16x128xf32>
    %cst_13 = arith.constant dense<0.000000e+00> : vector<16xf32>
    %23 = vector.multi_reduction <add>, %22, %cst_13 [1] : vector<16x128xf32> to vector<16xf32>
    %24 = vector.shape_cast %23 : vector<16xf32> to vector<16x1xf32>
    %cst_14 = arith.constant 1.280000e+02 : f32
    %25 = vector.broadcast %cst_14 : f32 to vector<16x1xf32>
    %26 = arith.divf %24, %25 : vector<16x1xf32>
    %27 = vector.broadcast %19 : vector<16x1xf32> to vector<16x128xf32>
    %28 = arith.subf %15, %27 : vector<16x128xf32>
    %cst_15 = arith.constant 9.99999974E-6 : f32
    %29 = vector.broadcast %cst_15 : f32 to vector<16x1xf32>
    %30 = arith.addf %26, %29 : vector<16x1xf32>
    %31 = math.rsqrt %30 : vector<16x1xf32>
    %32 = vector.broadcast %31 : vector<16x1xf32> to vector<16x128xf32>
    %33 = arith.mulf %28, %32 : vector<16x128xf32>
    %c0_16 = arith.constant 0 : index
    %c0_17 = arith.constant 0 : index
    %34 = vector.load %arg6[%c0_16, %c0_17] : memref<1x128xf32, #tpu.memory_space<vmem>>, vector<1x128xf32>
    %35 = vector.broadcast %34 : vector<1x128xf32> to vector<16x128xf32>
    %36 = arith.mulf %33, %35 : vector<16x128xf32>
    %c0_18 = arith.constant 0 : index
    %c0_19 = arith.constant 0 : index
    %37 = vector.load %arg7[%c0_18, %c0_19] : memref<1x128xf32, #tpu.memory_space<vmem>>, vector<1x128xf32>
    %38 = vector.broadcast %37 : vector<1x128xf32> to vector<16x128xf32>
    %39 = arith.addf %36, %38 : vector<16x128xf32>
    %40 = arith.truncf %39 : vector<16x128xf32> to vector<16x128xbf16>
    %c0_20 = arith.constant 0 : index
    %c0_21 = arith.constant 0 : index
    %41 = vector.load %arg8[%c0_20, %c0_21] : memref<16x128xbf16, #tpu.memory_space<vmem>>, vector<16x128xbf16>
    tpu.vector_store %arg8[%c0_20, %c0_21], %40 {strides = array<i32>} : memref<16x128xbf16, #tpu.memory_space<vmem>>, vector<16x128xbf16>,
    return
  }
  func.func @transform_0(%arg0: i32) -> (i32, i32) {
    %c0_i32 = arith.constant 0 : i32
    %c0_i32_0 = arith.constant 0 : i32
    return %arg0, %c0_i32 : i32, i32
  }
  func.func @transform_1(%arg0: i32) -> (i32, i32) {
    %c0_i32 = arith.constant 0 : i32
    %c0_i32_0 = arith.constant 0 : i32
    %c0_i32_1 = arith.constant 0 : i32
    return %c0_i32, %c0_i32_0 : i32, i32
  }
  func.func @transform_2(%arg0: i32) -> (i32, i32) {
    %c0_i32 = arith.constant 0 : i32
    %c0_i32_0 = arith.constant 0 : i32
    %c0_i32_1 = arith.constant 0 : i32
    return %c0_i32, %c0_i32_0 : i32, i32
  }
  func.func @transform_3(%arg0: i32) -> (i32, i32) {
    %c0_i32 = arith.constant 0 : i32
    %c0_i32_0 = arith.constant 0 : i32
    %c0_i32_1 = arith.constant 0 : i32
    return %c0_i32, %c0_i32_0 : i32, i32
  }
  func.func @transform_4(%arg0: i32) -> (i32, i32) {
    %c0_i32 = arith.constant 0 : i32
    %c0_i32_0 = arith.constant 0 : i32
    %c0_i32_1 = arith.constant 0 : i32
    return %c0_i32, %c0_i32_0 : i32, i32
  }
  func.func @transform_5(%arg0: i32) -> (i32, i32) {
    %c0_i32 = arith.constant 0 : i32
    %c0_i32_0 = arith.constant 0 : i32
    %c0_i32_1 = arith.constant 0 : i32
    return %c0_i32, %c0_i32_0 : i32, i32
  }
  func.func @transform_6(%arg0: i32) -> (i32, i32) {
    %c0_i32 = arith.constant 0 : i32
    %c0_i32_0 = arith.constant 0 : i32
    %c0_i32_1 = arith.constant 0 : i32
    return %c0_i32, %c0_i32_0 : i32, i32
  }
  func.func @transform_7(%arg0: i32) -> (i32, i32) {
    %c0_i32 = arith.constant 0 : i32
    %c0_i32_0 = arith.constant 0 : i32
    return %arg0, %c0_i32 : i32, i32
  }
}

module attributes {stable_mosaic.version = 11 : i64} {
  func.func @_self_attn_kernel(%arg0: i32, %arg1: memref<1x8x128xbf16, #tpu.memory_space<vmem>>, %arg2: memref<1x1x8xi32, #tpu.memory_space<vmem>>, %arg3: memref<4x128x32xbf16, #tpu.memory_space<vmem>>, %arg4: memref<4x128x32xbf16, #tpu.memory_space<vmem>>, %arg5: memref<4x128x32xbf16, #tpu.memory_space<vmem>>, %arg6: memref<4x1x32xf32, #tpu.memory_space<vmem>>, %arg7: memref<4x1x32xf32, #tpu.memory_space<vmem>>, %arg8: memref<4x1x32xf32, #tpu.memory_space<vmem>>, %arg9: memref<128x128xbf16, #tpu.memory_space<vmem>>, %arg10: memref<1x128xf32, #tpu.memory_space<vmem>>, %arg11: memref<1x128xf32, #tpu.memory_space<vmem>>, %arg12: memref<1x128xf32, #tpu.memory_space<vmem>>, %arg13: memref<1x8x128xbf16, #tpu.memory_space<vmem>>) attributes {dimension_semantics = [#tpu.dimension_semantics<parallel>], iteration_bounds = array<i64: 2>, scalar_prefetch = 0 : i64, scratch_operands = 0 : i64, tpu.core_type = #tpu.core_type<tc>, window_params = [{transform_indices = @transform_0, window_bounds = array<i64: 1, 8, 128>}, {transform_indices = @transform_1, window_bounds = array<i64: 1, 1, 8>}, {pipeline_mode = #tpu.pipeline_mode<synchronous>, transform_indices = @transform_2, window_bounds = array<i64: 4, 128, 32>}, {pipeline_mode = #tpu.pipeline_mode<synchronous>, transform_indices = @transform_3, window_bounds = array<i64: 4, 128, 32>}, {pipeline_mode = #tpu.pipeline_mode<synchronous>, transform_indices = @transform_4, window_bounds = array<i64: 4, 128, 32>}, {pipeline_mode = #tpu.pipeline_mode<synchronous>, transform_indices = @transform_5, window_bounds = array<i64: 4, 1, 32>}, {pipeline_mode = #tpu.pipeline_mode<synchronous>, transform_indices = @transform_6, window_bounds = array<i64: 4, 1, 32>}, {pipeline_mode = #tpu.pipeline_mode<synchronous>, transform_indices = @transform_7, window_bounds = array<i64: 4, 1, 32>}, {pipeline_mode = #tpu.pipeline_mode<synchronous>, transform_indices = @transform_8, window_bounds = array<i64: 128, 128>}, {pipeline_mode = #tpu.pipeline_mode<synchronous>, transform_indices = @transform_9, window_bounds = array<i64: 1, 128>}, {pipeline_mode = #tpu.pipeline_mode<synchronous>, transform_indices = @transform_10, window_bounds = array<i64: 1, 128>}, {pipeline_mode = #tpu.pipeline_mode<synchronous>, transform_indices = @transform_11, window_bounds = array<i64: 1, 128>}, {transform_indices = @transform_12, window_bounds = array<i64: 1, 8, 128>}]} {
    %c0 = arith.constant 0 : index
    %c0_0 = arith.constant 0 : index
    %c0_1 = arith.constant 0 : index
    %0 = vector.load %arg1[%c0, %c0_0, %c0_1] : memref<1x8x128xbf16, #tpu.memory_space<vmem>>, vector<1x8x128xbf16>
    %1 = vector.shape_cast %0 : vector<1x8x128xbf16> to vector<8x128xbf16>
    %c0_2 = arith.constant 0 : index
    %c0_3 = arith.constant 0 : index
    %c0_4 = arith.constant 0 : index
    %2 = vector.load %arg2[%c0_2, %c0_3, %c0_4] : memref<1x1x8xi32, #tpu.memory_space<vmem>>, vector<1x1x8xi32>
    %3 = vector.shape_cast %2 : vector<1x1x8xi32> to vector<1x8xi32>
    %c0_i32 = arith.constant 0 : i32
    %4 = vector.broadcast %c0_i32 : i32 to vector<1x8xi32>
    %5 = arith.cmpi ne, %3, %4 : vector<1x8xi32>
    %6 = vector.shape_cast %5 : vector<1x8xi1> to vector<1x8xi1>
    %7 = vector.broadcast %6 : vector<1x8xi1> to vector<8x8xi1>
    %8 = tpu.iota {dimensions = array<i32: 0>} : vector<8x8xi32>
    %9 = tpu.iota {dimensions = array<i32: 1>} : vector<8x8xi32>
    %10 = arith.cmpi sle, %9, %8 : vector<8x8xi32>
    %11 = arith.andi %7, %10 : vector<8x8xi1>
    %c0_5 = arith.constant 0 : index
    %c0_6 = arith.constant 0 : index
    %c0_7 = arith.constant 0 : index
    %12 = vector.load %arg3[%c0_5, %c0_6, %c0_7] : memref<4x128x32xbf16, #tpu.memory_space<vmem>>, vector<1x128x32xbf16>
    %13 = vector.shape_cast %12 : vector<1x128x32xbf16> to vector<128x32xbf16>
    %cst = arith.constant dense<0.000000e+00> : vector<8x32xf32>
    %14 = tpu.matmul %1, %13, %cst {dimension_numbers = #tpu.dot_dimension_numbers<[1], [0], [0], [1], [0, 0, 1, 1], [], []>} : vector<8x128xbf16>, vector<128x32xbf16>, vector<8x32xf32> -> vector<8x32xf32>
    %c0_8 = arith.constant 0 : index
    %c0_9 = arith.constant 0 : index
    %c0_10 = arith.constant 0 : index
    %15 = vector.load %arg6[%c0_8, %c0_9, %c0_10] : memref<4x1x32xf32, #tpu.memory_space<vmem>>, vector<1x1x32xf32>
    %16 = vector.shape_cast %15 : vector<1x1x32xf32> to vector<1x32xf32>
    %17 = vector.broadcast %16 : vector<1x32xf32> to vector<8x32xf32>
    %18 = arith.addf %14, %17 : vector<8x32xf32>
    %19 = arith.truncf %18 : vector<8x32xf32> to vector<8x32xbf16>
    %c0_11 = arith.constant 0 : index
    %c0_12 = arith.constant 0 : index
    %c0_13 = arith.constant 0 : index
    %20 = vector.load %arg4[%c0_11, %c0_12, %c0_13] : memref<4x128x32xbf16, #tpu.memory_space<vmem>>, vector<1x128x32xbf16>
    %21 = vector.shape_cast %20 : vector<1x128x32xbf16> to vector<128x32xbf16>
    %cst_14 = arith.constant dense<0.000000e+00> : vector<8x32xf32>
    %22 = tpu.matmul %1, %21, %cst_14 {dimension_numbers = #tpu.dot_dimension_numbers<[1], [0], [0], [1], [0, 0, 1, 1], [], []>} : vector<8x128xbf16>, vector<128x32xbf16>, vector<8x32xf32> -> vector<8x32xf32>
    %c0_15 = arith.constant 0 : index
    %c0_16 = arith.constant 0 : index
    %c0_17 = arith.constant 0 : index
    %23 = vector.load %arg7[%c0_15, %c0_16, %c0_17] : memref<4x1x32xf32, #tpu.memory_space<vmem>>, vector<1x1x32xf32>
    %24 = vector.shape_cast %23 : vector<1x1x32xf32> to vector<1x32xf32>
    %25 = vector.broadcast %24 : vector<1x32xf32> to vector<8x32xf32>
    %26 = arith.addf %22, %25 : vector<8x32xf32>
    %27 = arith.truncf %26 : vector<8x32xf32> to vector<8x32xbf16>
    %c0_18 = arith.constant 0 : index
    %c0_19 = arith.constant 0 : index
    %c0_20 = arith.constant 0 : index
    %28 = vector.load %arg5[%c0_18, %c0_19, %c0_20] : memref<4x128x32xbf16, #tpu.memory_space<vmem>>, vector<1x128x32xbf16>
    %29 = vector.shape_cast %28 : vector<1x128x32xbf16> to vector<128x32xbf16>
    %cst_21 = arith.constant dense<0.000000e+00> : vector<8x32xf32>
    %30 = tpu.matmul %1, %29, %cst_21 {dimension_numbers = #tpu.dot_dimension_numbers<[1], [0], [0], [1], [0, 0, 1, 1], [], []>} : vector<8x128xbf16>, vector<128x32xbf16>, vector<8x32xf32> -> vector<8x32xf32>
    %c0_22 = arith.constant 0 : index
    %c0_23 = arith.constant 0 : index
    %c0_24 = arith.constant 0 : index
    %31 = vector.load %arg8[%c0_22, %c0_23, %c0_24] : memref<4x1x32xf32, #tpu.memory_space<vmem>>, vector<1x1x32xf32>
    %32 = vector.shape_cast %31 : vector<1x1x32xf32> to vector<1x32xf32>
    %33 = vector.broadcast %32 : vector<1x32xf32> to vector<8x32xf32>
    %34 = arith.addf %30, %33 : vector<8x32xf32>
    %35 = arith.truncf %34 : vector<8x32xf32> to vector<8x32xbf16>
    %cst_25 = arith.constant dense<0.000000e+00> : vector<8x8xf32>
    %36 = tpu.matmul %19, %27, %cst_25 {dimension_numbers = #tpu.dot_dimension_numbers<[1], [1], [0], [0], [0, 0, 1, 0], [], []>} : vector<8x32xbf16>, vector<8x32xbf16>, vector<8x8xf32> -> vector<8x8xf32>
    %cst_26 = arith.constant 0.176776692 : f32
    %37 = vector.broadcast %cst_26 : f32 to vector<8x8xf32>
    %38 = arith.mulf %36, %37 : vector<8x8xf32>
    %cst_27 = arith.constant -1.000000e+09 : f32
    %39 = vector.broadcast %cst_27 : f32 to vector<8x8xf32>
    %40 = arith.select %11, %38, %39 : vector<8x8xi1>, vector<8x8xf32>
    %cst_28 = arith.constant dense<0xFF800000> : vector<8xf32>
    %41 = vector.multi_reduction <maximumf>, %40, %cst_28 [1] : vector<8x8xf32> to vector<8xf32>
    %42 = vector.shape_cast %41 : vector<8xf32> to vector<8x1xf32>
    %43 = vector.broadcast %42 : vector<8x1xf32> to vector<8x8xf32>
    %44 = arith.subf %40, %43 : vector<8x8xf32>
    %45 = math.exp %44 : vector<8x8xf32>
    %cst_29 = arith.constant dense<0.000000e+00> : vector<8xf32>
    %46 = vector.multi_reduction <add>, %45, %cst_29 [1] : vector<8x8xf32> to vector<8xf32>
    %47 = vector.shape_cast %46 : vector<8xf32> to vector<8x1xf32>
    %48 = tpu.reciprocal %47 {approx = true} : vector<8x1xf32> -> vector<8x1xf32>
    %49 = vector.broadcast %48 : vector<8x1xf32> to vector<8x8xf32>
    %50 = arith.mulf %45, %49 : vector<8x8xf32>
    %51 = arith.truncf %50 : vector<8x8xf32> to vector<8x8xbf16>
    %cst_30 = arith.constant dense<0.000000e+00> : vector<8x32xf32>
    %52 = tpu.matmul %51, %35, %cst_30 {dimension_numbers = #tpu.dot_dimension_numbers<[1], [0], [0], [1], [0, 0, 1, 1], [], []>} : vector<8x8xbf16>, vector<8x32xbf16>, vector<8x32xf32> -> vector<8x32xf32>
    %53 = arith.truncf %52 : vector<8x32xf32> to vector<8x32xbf16>
    %c1 = arith.constant 1 : index
    %c0_31 = arith.constant 0 : index
    %c0_32 = arith.constant 0 : index
    %54 = vector.load %arg3[%c1, %c0_31, %c0_32] : memref<4x128x32xbf16, #tpu.memory_space<vmem>>, vector<1x128x32xbf16>
    %55 = vector.shape_cast %54 : vector<1x128x32xbf16> to vector<128x32xbf16>
    %cst_33 = arith.constant dense<0.000000e+00> : vector<8x32xf32>
    %56 = tpu.matmul %1, %55, %cst_33 {dimension_numbers = #tpu.dot_dimension_numbers<[1], [0], [0], [1], [0, 0, 1, 1], [], []>} : vector<8x128xbf16>, vector<128x32xbf16>, vector<8x32xf32> -> vector<8x32xf32>
    %c1_34 = arith.constant 1 : index
    %c0_35 = arith.constant 0 : index
    %c0_36 = arith.constant 0 : index
    %57 = vector.load %arg6[%c1_34, %c0_35, %c0_36] : memref<4x1x32xf32, #tpu.memory_space<vmem>>, vector<1x1x32xf32>
    %58 = vector.shape_cast %57 : vector<1x1x32xf32> to vector<1x32xf32>
    %59 = vector.broadcast %58 : vector<1x32xf32> to vector<8x32xf32>
    %60 = arith.addf %56, %59 : vector<8x32xf32>
    %61 = arith.truncf %60 : vector<8x32xf32> to vector<8x32xbf16>
    %c1_37 = arith.constant 1 : index
    %c0_38 = arith.constant 0 : index
    %c0_39 = arith.constant 0 : index
    %62 = vector.load %arg4[%c1_37, %c0_38, %c0_39] : memref<4x128x32xbf16, #tpu.memory_space<vmem>>, vector<1x128x32xbf16>
    %63 = vector.shape_cast %62 : vector<1x128x32xbf16> to vector<128x32xbf16>
    %cst_40 = arith.constant dense<0.000000e+00> : vector<8x32xf32>
    %64 = tpu.matmul %1, %63, %cst_40 {dimension_numbers = #tpu.dot_dimension_numbers<[1], [0], [0], [1], [0, 0, 1, 1], [], []>} : vector<8x128xbf16>, vector<128x32xbf16>, vector<8x32xf32> -> vector<8x32xf32>
    %c1_41 = arith.constant 1 : index
    %c0_42 = arith.constant 0 : index
    %c0_43 = arith.constant 0 : index
    %65 = vector.load %arg7[%c1_41, %c0_42, %c0_43] : memref<4x1x32xf32, #tpu.memory_space<vmem>>, vector<1x1x32xf32>
    %66 = vector.shape_cast %65 : vector<1x1x32xf32> to vector<1x32xf32>
    %67 = vector.broadcast %66 : vector<1x32xf32> to vector<8x32xf32>
    %68 = arith.addf %64, %67 : vector<8x32xf32>
    %69 = arith.truncf %68 : vector<8x32xf32> to vector<8x32xbf16>
    %c1_44 = arith.constant 1 : index
    %c0_45 = arith.constant 0 : index
    %c0_46 = arith.constant 0 : index
    %70 = vector.load %arg5[%c1_44, %c0_45, %c0_46] : memref<4x128x32xbf16, #tpu.memory_space<vmem>>, vector<1x128x32xbf16>
    %71 = vector.shape_cast %70 : vector<1x128x32xbf16> to vector<128x32xbf16>
    %cst_47 = arith.constant dense<0.000000e+00> : vector<8x32xf32>
    %72 = tpu.matmul %1, %71, %cst_47 {dimension_numbers = #tpu.dot_dimension_numbers<[1], [0], [0], [1], [0, 0, 1, 1], [], []>} : vector<8x128xbf16>, vector<128x32xbf16>, vector<8x32xf32> -> vector<8x32xf32>
    %c1_48 = arith.constant 1 : index
    %c0_49 = arith.constant 0 : index
    %c0_50 = arith.constant 0 : index
    %73 = vector.load %arg8[%c1_48, %c0_49, %c0_50] : memref<4x1x32xf32, #tpu.memory_space<vmem>>, vector<1x1x32xf32>
    %74 = vector.shape_cast %73 : vector<1x1x32xf32> to vector<1x32xf32>
    %75 = vector.broadcast %74 : vector<1x32xf32> to vector<8x32xf32>
    %76 = arith.addf %72, %75 : vector<8x32xf32>
    %77 = arith.truncf %76 : vector<8x32xf32> to vector<8x32xbf16>
    %cst_51 = arith.constant dense<0.000000e+00> : vector<8x8xf32>
    %78 = tpu.matmul %61, %69, %cst_51 {dimension_numbers = #tpu.dot_dimension_numbers<[1], [1], [0], [0], [0, 0, 1, 0], [], []>} : vector<8x32xbf16>, vector<8x32xbf16>, vector<8x8xf32> -> vector<8x8xf32>
    %cst_52 = arith.constant 0.176776692 : f32
    %79 = vector.broadcast %cst_52 : f32 to vector<8x8xf32>
    %80 = arith.mulf %78, %79 : vector<8x8xf32>
    %cst_53 = arith.constant -1.000000e+09 : f32
    %81 = vector.broadcast %cst_53 : f32 to vector<8x8xf32>
    %82 = arith.select %11, %80, %81 : vector<8x8xi1>, vector<8x8xf32>
    %cst_54 = arith.constant dense<0xFF800000> : vector<8xf32>
    %83 = vector.multi_reduction <maximumf>, %82, %cst_54 [1] : vector<8x8xf32> to vector<8xf32>
    %84 = vector.shape_cast %83 : vector<8xf32> to vector<8x1xf32>
    %85 = vector.broadcast %84 : vector<8x1xf32> to vector<8x8xf32>
    %86 = arith.subf %82, %85 : vector<8x8xf32>
    %87 = math.exp %86 : vector<8x8xf32>
    %cst_55 = arith.constant dense<0.000000e+00> : vector<8xf32>
    %88 = vector.multi_reduction <add>, %87, %cst_55 [1] : vector<8x8xf32> to vector<8xf32>
    %89 = vector.shape_cast %88 : vector<8xf32> to vector<8x1xf32>
    %90 = tpu.reciprocal %89 {approx = true} : vector<8x1xf32> -> vector<8x1xf32>
    %91 = vector.broadcast %90 : vector<8x1xf32> to vector<8x8xf32>
    %92 = arith.mulf %87, %91 : vector<8x8xf32>
    %93 = arith.truncf %92 : vector<8x8xf32> to vector<8x8xbf16>
    %cst_56 = arith.constant dense<0.000000e+00> : vector<8x32xf32>
    %94 = tpu.matmul %93, %77, %cst_56 {dimension_numbers = #tpu.dot_dimension_numbers<[1], [0], [0], [1], [0, 0, 1, 1], [], []>} : vector<8x8xbf16>, vector<8x32xbf16>, vector<8x32xf32> -> vector<8x32xf32>
    %95 = arith.truncf %94 : vector<8x32xf32> to vector<8x32xbf16>
    %c2 = arith.constant 2 : index
    %c0_57 = arith.constant 0 : index
    %c0_58 = arith.constant 0 : index
    %96 = vector.load %arg3[%c2, %c0_57, %c0_58] : memref<4x128x32xbf16, #tpu.memory_space<vmem>>, vector<1x128x32xbf16>
    %97 = vector.shape_cast %96 : vector<1x128x32xbf16> to vector<128x32xbf16>
    %cst_59 = arith.constant dense<0.000000e+00> : vector<8x32xf32>
    %98 = tpu.matmul %1, %97, %cst_59 {dimension_numbers = #tpu.dot_dimension_numbers<[1], [0], [0], [1], [0, 0, 1, 1], [], []>} : vector<8x128xbf16>, vector<128x32xbf16>, vector<8x32xf32> -> vector<8x32xf32>
    %c2_60 = arith.constant 2 : index
    %c0_61 = arith.constant 0 : index
    %c0_62 = arith.constant 0 : index
    %99 = vector.load %arg6[%c2_60, %c0_61, %c0_62] : memref<4x1x32xf32, #tpu.memory_space<vmem>>, vector<1x1x32xf32>
    %100 = vector.shape_cast %99 : vector<1x1x32xf32> to vector<1x32xf32>
    %101 = vector.broadcast %100 : vector<1x32xf32> to vector<8x32xf32>
    %102 = arith.addf %98, %101 : vector<8x32xf32>
    %103 = arith.truncf %102 : vector<8x32xf32> to vector<8x32xbf16>
    %c2_63 = arith.constant 2 : index
    %c0_64 = arith.constant 0 : index
    %c0_65 = arith.constant 0 : index
    %104 = vector.load %arg4[%c2_63, %c0_64, %c0_65] : memref<4x128x32xbf16, #tpu.memory_space<vmem>>, vector<1x128x32xbf16>
    %105 = vector.shape_cast %104 : vector<1x128x32xbf16> to vector<128x32xbf16>
    %cst_66 = arith.constant dense<0.000000e+00> : vector<8x32xf32>
    %106 = tpu.matmul %1, %105, %cst_66 {dimension_numbers = #tpu.dot_dimension_numbers<[1], [0], [0], [1], [0, 0, 1, 1], [], []>} : vector<8x128xbf16>, vector<128x32xbf16>, vector<8x32xf32> -> vector<8x32xf32>
    %c2_67 = arith.constant 2 : index
    %c0_68 = arith.constant 0 : index
    %c0_69 = arith.constant 0 : index
    %107 = vector.load %arg7[%c2_67, %c0_68, %c0_69] : memref<4x1x32xf32, #tpu.memory_space<vmem>>, vector<1x1x32xf32>
    %108 = vector.shape_cast %107 : vector<1x1x32xf32> to vector<1x32xf32>
    %109 = vector.broadcast %108 : vector<1x32xf32> to vector<8x32xf32>
    %110 = arith.addf %106, %109 : vector<8x32xf32>
    %111 = arith.truncf %110 : vector<8x32xf32> to vector<8x32xbf16>
    %c2_70 = arith.constant 2 : index
    %c0_71 = arith.constant 0 : index
    %c0_72 = arith.constant 0 : index
    %112 = vector.load %arg5[%c2_70, %c0_71, %c0_72] : memref<4x128x32xbf16, #tpu.memory_space<vmem>>, vector<1x128x32xbf16>
    %113 = vector.shape_cast %112 : vector<1x128x32xbf16> to vector<128x32xbf16>
    %cst_73 = arith.constant dense<0.000000e+00> : vector<8x32xf32>
    %114 = tpu.matmul %1, %113, %cst_73 {dimension_numbers = #tpu.dot_dimension_numbers<[1], [0], [0], [1], [0, 0, 1, 1], [], []>} : vector<8x128xbf16>, vector<128x32xbf16>, vector<8x32xf32> -> vector<8x32xf32>
    %c2_74 = arith.constant 2 : index
    %c0_75 = arith.constant 0 : index
    %c0_76 = arith.constant 0 : index
    %115 = vector.load %arg8[%c2_74, %c0_75, %c0_76] : memref<4x1x32xf32, #tpu.memory_space<vmem>>, vector<1x1x32xf32>
    %116 = vector.shape_cast %115 : vector<1x1x32xf32> to vector<1x32xf32>
    %117 = vector.broadcast %116 : vector<1x32xf32> to vector<8x32xf32>
    %118 = arith.addf %114, %117 : vector<8x32xf32>
    %119 = arith.truncf %118 : vector<8x32xf32> to vector<8x32xbf16>
    %cst_77 = arith.constant dense<0.000000e+00> : vector<8x8xf32>
    %120 = tpu.matmul %103, %111, %cst_77 {dimension_numbers = #tpu.dot_dimension_numbers<[1], [1], [0], [0], [0, 0, 1, 0], [], []>} : vector<8x32xbf16>, vector<8x32xbf16>, vector<8x8xf32> -> vector<8x8xf32>
    %cst_78 = arith.constant 0.176776692 : f32
    %121 = vector.broadcast %cst_78 : f32 to vector<8x8xf32>
    %122 = arith.mulf %120, %121 : vector<8x8xf32>
    %cst_79 = arith.constant -1.000000e+09 : f32
    %123 = vector.broadcast %cst_79 : f32 to vector<8x8xf32>
    %124 = arith.select %11, %122, %123 : vector<8x8xi1>, vector<8x8xf32>
    %cst_80 = arith.constant dense<0xFF800000> : vector<8xf32>
    %125 = vector.multi_reduction <maximumf>, %124, %cst_80 [1] : vector<8x8xf32> to vector<8xf32>
    %126 = vector.shape_cast %125 : vector<8xf32> to vector<8x1xf32>
    %127 = vector.broadcast %126 : vector<8x1xf32> to vector<8x8xf32>
    %128 = arith.subf %124, %127 : vector<8x8xf32>
    %129 = math.exp %128 : vector<8x8xf32>
    %cst_81 = arith.constant dense<0.000000e+00> : vector<8xf32>
    %130 = vector.multi_reduction <add>, %129, %cst_81 [1] : vector<8x8xf32> to vector<8xf32>
    %131 = vector.shape_cast %130 : vector<8xf32> to vector<8x1xf32>
    %132 = tpu.reciprocal %131 {approx = true} : vector<8x1xf32> -> vector<8x1xf32>
    %133 = vector.broadcast %132 : vector<8x1xf32> to vector<8x8xf32>
    %134 = arith.mulf %129, %133 : vector<8x8xf32>
    %135 = arith.truncf %134 : vector<8x8xf32> to vector<8x8xbf16>
    %cst_82 = arith.constant dense<0.000000e+00> : vector<8x32xf32>
    %136 = tpu.matmul %135, %119, %cst_82 {dimension_numbers = #tpu.dot_dimension_numbers<[1], [0], [0], [1], [0, 0, 1, 1], [], []>} : vector<8x8xbf16>, vector<8x32xbf16>, vector<8x32xf32> -> vector<8x32xf32>
    %137 = arith.truncf %136 : vector<8x32xf32> to vector<8x32xbf16>
    %c3 = arith.constant 3 : index
    %c0_83 = arith.constant 0 : index
    %c0_84 = arith.constant 0 : index
    %138 = vector.load %arg3[%c3, %c0_83, %c0_84] : memref<4x128x32xbf16, #tpu.memory_space<vmem>>, vector<1x128x32xbf16>
    %139 = vector.shape_cast %138 : vector<1x128x32xbf16> to vector<128x32xbf16>
    %cst_85 = arith.constant dense<0.000000e+00> : vector<8x32xf32>
    %140 = tpu.matmul %1, %139, %cst_85 {dimension_numbers = #tpu.dot_dimension_numbers<[1], [0], [0], [1], [0, 0, 1, 1], [], []>} : vector<8x128xbf16>, vector<128x32xbf16>, vector<8x32xf32> -> vector<8x32xf32>
    %c3_86 = arith.constant 3 : index
    %c0_87 = arith.constant 0 : index
    %c0_88 = arith.constant 0 : index
    %141 = vector.load %arg6[%c3_86, %c0_87, %c0_88] : memref<4x1x32xf32, #tpu.memory_space<vmem>>, vector<1x1x32xf32>
    %142 = vector.shape_cast %141 : vector<1x1x32xf32> to vector<1x32xf32>
    %143 = vector.broadcast %142 : vector<1x32xf32> to vector<8x32xf32>
    %144 = arith.addf %140, %143 : vector<8x32xf32>
    %145 = arith.truncf %144 : vector<8x32xf32> to vector<8x32xbf16>
    %c3_89 = arith.constant 3 : index
    %c0_90 = arith.constant 0 : index
    %c0_91 = arith.constant 0 : index
    %146 = vector.load %arg4[%c3_89, %c0_90, %c0_91] : memref<4x128x32xbf16, #tpu.memory_space<vmem>>, vector<1x128x32xbf16>
    %147 = vector.shape_cast %146 : vector<1x128x32xbf16> to vector<128x32xbf16>
    %cst_92 = arith.constant dense<0.000000e+00> : vector<8x32xf32>
    %148 = tpu.matmul %1, %147, %cst_92 {dimension_numbers = #tpu.dot_dimension_numbers<[1], [0], [0], [1], [0, 0, 1, 1], [], []>} : vector<8x128xbf16>, vector<128x32xbf16>, vector<8x32xf32> -> vector<8x32xf32>
    %c3_93 = arith.constant 3 : index
    %c0_94 = arith.constant 0 : index
    %c0_95 = arith.constant 0 : index
    %149 = vector.load %arg7[%c3_93, %c0_94, %c0_95] : memref<4x1x32xf32, #tpu.memory_space<vmem>>, vector<1x1x32xf32>
    %150 = vector.shape_cast %149 : vector<1x1x32xf32> to vector<1x32xf32>
    %151 = vector.broadcast %150 : vector<1x32xf32> to vector<8x32xf32>
    %152 = arith.addf %148, %151 : vector<8x32xf32>
    %153 = arith.truncf %152 : vector<8x32xf32> to vector<8x32xbf16>
    %c3_96 = arith.constant 3 : index
    %c0_97 = arith.constant 0 : index
    %c0_98 = arith.constant 0 : index
    %154 = vector.load %arg5[%c3_96, %c0_97, %c0_98] : memref<4x128x32xbf16, #tpu.memory_space<vmem>>, vector<1x128x32xbf16>
    %155 = vector.shape_cast %154 : vector<1x128x32xbf16> to vector<128x32xbf16>
    %cst_99 = arith.constant dense<0.000000e+00> : vector<8x32xf32>
    %156 = tpu.matmul %1, %155, %cst_99 {dimension_numbers = #tpu.dot_dimension_numbers<[1], [0], [0], [1], [0, 0, 1, 1], [], []>} : vector<8x128xbf16>, vector<128x32xbf16>, vector<8x32xf32> -> vector<8x32xf32>
    %c3_100 = arith.constant 3 : index
    %c0_101 = arith.constant 0 : index
    %c0_102 = arith.constant 0 : index
    %157 = vector.load %arg8[%c3_100, %c0_101, %c0_102] : memref<4x1x32xf32, #tpu.memory_space<vmem>>, vector<1x1x32xf32>
    %158 = vector.shape_cast %157 : vector<1x1x32xf32> to vector<1x32xf32>
    %159 = vector.broadcast %158 : vector<1x32xf32> to vector<8x32xf32>
    %160 = arith.addf %156, %159 : vector<8x32xf32>
    %161 = arith.truncf %160 : vector<8x32xf32> to vector<8x32xbf16>
    %cst_103 = arith.constant dense<0.000000e+00> : vector<8x8xf32>
    %162 = tpu.matmul %145, %153, %cst_103 {dimension_numbers = #tpu.dot_dimension_numbers<[1], [1], [0], [0], [0, 0, 1, 0], [], []>} : vector<8x32xbf16>, vector<8x32xbf16>, vector<8x8xf32> -> vector<8x8xf32>
    %cst_104 = arith.constant 0.176776692 : f32
    %163 = vector.broadcast %cst_104 : f32 to vector<8x8xf32>
    %164 = arith.mulf %162, %163 : vector<8x8xf32>
    %cst_105 = arith.constant -1.000000e+09 : f32
    %165 = vector.broadcast %cst_105 : f32 to vector<8x8xf32>
    %166 = arith.select %11, %164, %165 : vector<8x8xi1>, vector<8x8xf32>
    %cst_106 = arith.constant dense<0xFF800000> : vector<8xf32>
    %167 = vector.multi_reduction <maximumf>, %166, %cst_106 [1] : vector<8x8xf32> to vector<8xf32>
    %168 = vector.shape_cast %167 : vector<8xf32> to vector<8x1xf32>
    %169 = vector.broadcast %168 : vector<8x1xf32> to vector<8x8xf32>
    %170 = arith.subf %166, %169 : vector<8x8xf32>
    %171 = math.exp %170 : vector<8x8xf32>
    %cst_107 = arith.constant dense<0.000000e+00> : vector<8xf32>
    %172 = vector.multi_reduction <add>, %171, %cst_107 [1] : vector<8x8xf32> to vector<8xf32>
    %173 = vector.shape_cast %172 : vector<8xf32> to vector<8x1xf32>
    %174 = tpu.reciprocal %173 {approx = true} : vector<8x1xf32> -> vector<8x1xf32>
    %175 = vector.broadcast %174 : vector<8x1xf32> to vector<8x8xf32>
    %176 = arith.mulf %171, %175 : vector<8x8xf32>
    %177 = arith.truncf %176 : vector<8x8xf32> to vector<8x8xbf16>
    %cst_108 = arith.constant dense<0.000000e+00> : vector<8x32xf32>
    %178 = tpu.matmul %177, %161, %cst_108 {dimension_numbers = #tpu.dot_dimension_numbers<[1], [0], [0], [1], [0, 0, 1, 1], [], []>} : vector<8x8xbf16>, vector<8x32xbf16>, vector<8x32xf32> -> vector<8x32xf32>
    %179 = arith.truncf %178 : vector<8x32xf32> to vector<8x32xbf16>
    %180 = tpu.concatenate %53, %95, %137, %179 in 1 : vector<8x32xbf16>, vector<8x32xbf16>, vector<8x32xbf16>, vector<8x32xbf16> -> vector<8x128xbf16>
    %c0_109 = arith.constant 0 : index
    %c0_110 = arith.constant 0 : index
    %181 = vector.load %arg9[%c0_109, %c0_110] : memref<128x128xbf16, #tpu.memory_space<vmem>>, vector<128x128xbf16>
    %cst_111 = arith.constant dense<0.000000e+00> : vector<8x128xf32>
    %182 = tpu.matmul %180, %181, %cst_111 {dimension_numbers = #tpu.dot_dimension_numbers<[1], [0], [0], [1], [0, 0, 1, 1], [], []>} : vector<8x128xbf16>, vector<128x128xbf16>, vector<8x128xf32> -> vector<8x128xf32>
    %c0_112 = arith.constant 0 : index
    %c0_113 = arith.constant 0 : index
    %183 = vector.load %arg10[%c0_112, %c0_113] : memref<1x128xf32, #tpu.memory_space<vmem>>, vector<1x128xf32>
    %184 = vector.broadcast %183 : vector<1x128xf32> to vector<8x128xf32>
    %185 = arith.addf %182, %184 : vector<8x128xf32>
    %186 = arith.extf %1 : vector<8x128xbf16> to vector<8x128xf32>
    %187 = arith.addf %186, %185 : vector<8x128xf32>
    %cst_114 = arith.constant dense<0.000000e+00> : vector<8xf32>
    %188 = vector.multi_reduction <add>, %187, %cst_114 [1] : vector<8x128xf32> to vector<8xf32>
    %189 = vector.shape_cast %188 : vector<8xf32> to vector<8x1xf32>
    %cst_115 = arith.constant 1.280000e+02 : f32
    %190 = vector.broadcast %cst_115 : f32 to vector<8x1xf32>
    %191 = arith.divf %189, %190 : vector<8x1xf32>
    %192 = vector.broadcast %191 : vector<8x1xf32> to vector<8x128xf32>
    %193 = arith.subf %187, %192 : vector<8x128xf32>
    %194 = arith.mulf %193, %193 : vector<8x128xf32>
    %cst_116 = arith.constant dense<0.000000e+00> : vector<8xf32>
    %195 = vector.multi_reduction <add>, %194, %cst_116 [1] : vector<8x128xf32> to vector<8xf32>
    %196 = vector.shape_cast %195 : vector<8xf32> to vector<8x1xf32>
    %cst_117 = arith.constant 1.280000e+02 : f32
    %197 = vector.broadcast %cst_117 : f32 to vector<8x1xf32>
    %198 = arith.divf %196, %197 : vector<8x1xf32>
    %199 = vector.broadcast %191 : vector<8x1xf32> to vector<8x128xf32>
    %200 = arith.subf %187, %199 : vector<8x128xf32>
    %cst_118 = arith.constant 9.99999974E-6 : f32
    %201 = vector.broadcast %cst_118 : f32 to vector<8x1xf32>
    %202 = arith.addf %198, %201 : vector<8x1xf32>
    %203 = math.rsqrt %202 : vector<8x1xf32>
    %204 = vector.broadcast %203 : vector<8x1xf32> to vector<8x128xf32>
    %205 = arith.mulf %200, %204 : vector<8x128xf32>
    %c0_119 = arith.constant 0 : index
    %c0_120 = arith.constant 0 : index
    %206 = vector.load %arg11[%c0_119, %c0_120] : memref<1x128xf32, #tpu.memory_space<vmem>>, vector<1x128xf32>
    %207 = vector.broadcast %206 : vector<1x128xf32> to vector<8x128xf32>
    %208 = arith.mulf %205, %207 : vector<8x128xf32>
    %c0_121 = arith.constant 0 : index
    %c0_122 = arith.constant 0 : index
    %209 = vector.load %arg12[%c0_121, %c0_122] : memref<1x128xf32, #tpu.memory_space<vmem>>, vector<1x128xf32>
    %210 = vector.broadcast %209 : vector<1x128xf32> to vector<8x128xf32>
    %211 = arith.addf %208, %210 : vector<8x128xf32>
    %212 = arith.truncf %211 : vector<8x128xf32> to vector<8x128xbf16>
    %c0_123 = arith.constant 0 : index
    %c0_124 = arith.constant 0 : index
    %c0_125 = arith.constant 0 : index
    %213 = vector.load %arg13[%c0_123, %c0_124, %c0_125] : memref<1x8x128xbf16, #tpu.memory_space<vmem>>, vector<1x8x128xbf16>
    %214 = vector.shape_cast %213 : vector<1x8x128xbf16> to vector<8x128xbf16>
    %215 = vector.shape_cast %212 : vector<8x128xbf16> to vector<1x8x128xbf16>
    tpu.vector_store %arg13[%c0_123, %c0_124, %c0_125], %215 {strides = array<i32>} : memref<1x8x128xbf16, #tpu.memory_space<vmem>>, vector<1x8x128xbf16>,
    return
  }
  func.func @transform_0(%arg0: i32) -> (i32, i32, i32) {
    %c0_i32 = arith.constant 0 : i32
    %c0_i32_0 = arith.constant 0 : i32
    %c0_i32_1 = arith.constant 0 : i32
    return %arg0, %c0_i32, %c0_i32_0 : i32, i32, i32
  }
  func.func @transform_1(%arg0: i32) -> (i32, i32, i32) {
    %c0_i32 = arith.constant 0 : i32
    %c0_i32_0 = arith.constant 0 : i32
    %c0_i32_1 = arith.constant 0 : i32
    return %arg0, %c0_i32, %c0_i32_0 : i32, i32, i32
  }
  func.func @transform_2(%arg0: i32) -> (i32, i32, i32) {
    %c0_i32 = arith.constant 0 : i32
    %c0_i32_0 = arith.constant 0 : i32
    %c0_i32_1 = arith.constant 0 : i32
    %c0_i32_2 = arith.constant 0 : i32
    return %c0_i32, %c0_i32_0, %c0_i32_1 : i32, i32, i32
  }
  func.func @transform_3(%arg0: i32) -> (i32, i32, i32) {
    %c0_i32 = arith.constant 0 : i32
    %c0_i32_0 = arith.constant 0 : i32
    %c0_i32_1 = arith.constant 0 : i32
    %c0_i32_2 = arith.constant 0 : i32
    return %c0_i32, %c0_i32_0, %c0_i32_1 : i32, i32, i32
  }
  func.func @transform_4(%arg0: i32) -> (i32, i32, i32) {
    %c0_i32 = arith.constant 0 : i32
    %c0_i32_0 = arith.constant 0 : i32
    %c0_i32_1 = arith.constant 0 : i32
    %c0_i32_2 = arith.constant 0 : i32
    return %c0_i32, %c0_i32_0, %c0_i32_1 : i32, i32, i32
  }
  func.func @transform_5(%arg0: i32) -> (i32, i32, i32) {
    %c0_i32 = arith.constant 0 : i32
    %c0_i32_0 = arith.constant 0 : i32
    %c0_i32_1 = arith.constant 0 : i32
    %c0_i32_2 = arith.constant 0 : i32
    return %c0_i32, %c0_i32_0, %c0_i32_1 : i32, i32, i32
  }
  func.func @transform_6(%arg0: i32) -> (i32, i32, i32) {
    %c0_i32 = arith.constant 0 : i32
    %c0_i32_0 = arith.constant 0 : i32
    %c0_i32_1 = arith.constant 0 : i32
    %c0_i32_2 = arith.constant 0 : i32
    return %c0_i32, %c0_i32_0, %c0_i32_1 : i32, i32, i32
  }
  func.func @transform_7(%arg0: i32) -> (i32, i32, i32) {
    %c0_i32 = arith.constant 0 : i32
    %c0_i32_0 = arith.constant 0 : i32
    %c0_i32_1 = arith.constant 0 : i32
    %c0_i32_2 = arith.constant 0 : i32
    return %c0_i32, %c0_i32_0, %c0_i32_1 : i32, i32, i32
  }
  func.func @transform_8(%arg0: i32) -> (i32, i32) {
    %c0_i32 = arith.constant 0 : i32
    %c0_i32_0 = arith.constant 0 : i32
    %c0_i32_1 = arith.constant 0 : i32
    return %c0_i32, %c0_i32_0 : i32, i32
  }
  func.func @transform_9(%arg0: i32) -> (i32, i32) {
    %c0_i32 = arith.constant 0 : i32
    %c0_i32_0 = arith.constant 0 : i32
    %c0_i32_1 = arith.constant 0 : i32
    return %c0_i32, %c0_i32_0 : i32, i32
  }
  func.func @transform_10(%arg0: i32) -> (i32, i32) {
    %c0_i32 = arith.constant 0 : i32
    %c0_i32_0 = arith.constant 0 : i32
    %c0_i32_1 = arith.constant 0 : i32
    return %c0_i32, %c0_i32_0 : i32, i32
  }
  func.func @transform_11(%arg0: i32) -> (i32, i32) {
    %c0_i32 = arith.constant 0 : i32
    %c0_i32_0 = arith.constant 0 : i32
    %c0_i32_1 = arith.constant 0 : i32
    return %c0_i32, %c0_i32_0 : i32, i32
  }
  func.func @transform_12(%arg0: i32) -> (i32, i32, i32) {
    %c0_i32 = arith.constant 0 : i32
    %c0_i32_0 = arith.constant 0 : i32
    %c0_i32_1 = arith.constant 0 : i32
    return %arg0, %c0_i32, %c0_i32_0 : i32, i32, i32
  }
}

module attributes {stable_mosaic.version = 11 : i64} {
  func.func @_cross_attn_kernel(%arg0: i32, %arg1: memref<1x8x128xbf16, #tpu.memory_space<vmem>>, %arg2: memref<1x8x128xbf16, #tpu.memory_space<vmem>>, %arg3: memref<1x1x8xi32, #tpu.memory_space<vmem>>, %arg4: memref<4x128x32xbf16, #tpu.memory_space<vmem>>, %arg5: memref<4x128x32xbf16, #tpu.memory_space<vmem>>, %arg6: memref<4x128x32xbf16, #tpu.memory_space<vmem>>, %arg7: memref<4x1x32xf32, #tpu.memory_space<vmem>>, %arg8: memref<4x1x32xf32, #tpu.memory_space<vmem>>, %arg9: memref<4x1x32xf32, #tpu.memory_space<vmem>>, %arg10: memref<128x128xbf16, #tpu.memory_space<vmem>>, %arg11: memref<1x128xf32, #tpu.memory_space<vmem>>, %arg12: memref<1x128xf32, #tpu.memory_space<vmem>>, %arg13: memref<1x128xf32, #tpu.memory_space<vmem>>, %arg14: memref<1x8x128xbf16, #tpu.memory_space<vmem>>) attributes {dimension_semantics = [#tpu.dimension_semantics<parallel>], iteration_bounds = array<i64: 2>, scalar_prefetch = 0 : i64, scratch_operands = 0 : i64, tpu.core_type = #tpu.core_type<tc>, window_params = [{transform_indices = @transform_0, window_bounds = array<i64: 1, 8, 128>}, {transform_indices = @transform_1, window_bounds = array<i64: 1, 8, 128>}, {transform_indices = @transform_2, window_bounds = array<i64: 1, 1, 8>}, {pipeline_mode = #tpu.pipeline_mode<synchronous>, transform_indices = @transform_3, window_bounds = array<i64: 4, 128, 32>}, {pipeline_mode = #tpu.pipeline_mode<synchronous>, transform_indices = @transform_4, window_bounds = array<i64: 4, 128, 32>}, {pipeline_mode = #tpu.pipeline_mode<synchronous>, transform_indices = @transform_5, window_bounds = array<i64: 4, 128, 32>}, {pipeline_mode = #tpu.pipeline_mode<synchronous>, transform_indices = @transform_6, window_bounds = array<i64: 4, 1, 32>}, {pipeline_mode = #tpu.pipeline_mode<synchronous>, transform_indices = @transform_7, window_bounds = array<i64: 4, 1, 32>}, {pipeline_mode = #tpu.pipeline_mode<synchronous>, transform_indices = @transform_8, window_bounds = array<i64: 4, 1, 32>}, {pipeline_mode = #tpu.pipeline_mode<synchronous>, transform_indices = @transform_9, window_bounds = array<i64: 128, 128>}, {pipeline_mode = #tpu.pipeline_mode<synchronous>, transform_indices = @transform_10, window_bounds = array<i64: 1, 128>}, {pipeline_mode = #tpu.pipeline_mode<synchronous>, transform_indices = @transform_11, window_bounds = array<i64: 1, 128>}, {pipeline_mode = #tpu.pipeline_mode<synchronous>, transform_indices = @transform_12, window_bounds = array<i64: 1, 128>}, {transform_indices = @transform_13, window_bounds = array<i64: 1, 8, 128>}]} {
    %c0 = arith.constant 0 : index
    %c0_0 = arith.constant 0 : index
    %c0_1 = arith.constant 0 : index
    %0 = vector.load %arg1[%c0, %c0_0, %c0_1] : memref<1x8x128xbf16, #tpu.memory_space<vmem>>, vector<1x8x128xbf16>
    %1 = vector.shape_cast %0 : vector<1x8x128xbf16> to vector<8x128xbf16>
    %c0_2 = arith.constant 0 : index
    %c0_3 = arith.constant 0 : index
    %c0_4 = arith.constant 0 : index
    %2 = vector.load %arg2[%c0_2, %c0_3, %c0_4] : memref<1x8x128xbf16, #tpu.memory_space<vmem>>, vector<1x8x128xbf16>
    %3 = vector.shape_cast %2 : vector<1x8x128xbf16> to vector<8x128xbf16>
    %c0_5 = arith.constant 0 : index
    %c0_6 = arith.constant 0 : index
    %c0_7 = arith.constant 0 : index
    %4 = vector.load %arg3[%c0_5, %c0_6, %c0_7] : memref<1x1x8xi32, #tpu.memory_space<vmem>>, vector<1x1x8xi32>
    %5 = vector.shape_cast %4 : vector<1x1x8xi32> to vector<1x8xi32>
    %c0_i32 = arith.constant 0 : i32
    %6 = vector.broadcast %c0_i32 : i32 to vector<1x8xi32>
    %7 = arith.cmpi ne, %5, %6 : vector<1x8xi32>
    %8 = vector.shape_cast %7 : vector<1x8xi1> to vector<1x8xi1>
    %9 = vector.broadcast %8 : vector<1x8xi1> to vector<8x8xi1>
    %c0_8 = arith.constant 0 : index
    %c0_9 = arith.constant 0 : index
    %c0_10 = arith.constant 0 : index
    %10 = vector.load %arg4[%c0_8, %c0_9, %c0_10] : memref<4x128x32xbf16, #tpu.memory_space<vmem>>, vector<1x128x32xbf16>
    %11 = vector.shape_cast %10 : vector<1x128x32xbf16> to vector<128x32xbf16>
    %cst = arith.constant dense<0.000000e+00> : vector<8x32xf32>
    %12 = tpu.matmul %1, %11, %cst {dimension_numbers = #tpu.dot_dimension_numbers<[1], [0], [0], [1], [0, 0, 1, 1], [], []>} : vector<8x128xbf16>, vector<128x32xbf16>, vector<8x32xf32> -> vector<8x32xf32>
    %c0_11 = arith.constant 0 : index
    %c0_12 = arith.constant 0 : index
    %c0_13 = arith.constant 0 : index
    %13 = vector.load %arg7[%c0_11, %c0_12, %c0_13] : memref<4x1x32xf32, #tpu.memory_space<vmem>>, vector<1x1x32xf32>
    %14 = vector.shape_cast %13 : vector<1x1x32xf32> to vector<1x32xf32>
    %15 = vector.broadcast %14 : vector<1x32xf32> to vector<8x32xf32>
    %16 = arith.addf %12, %15 : vector<8x32xf32>
    %17 = arith.truncf %16 : vector<8x32xf32> to vector<8x32xbf16>
    %c0_14 = arith.constant 0 : index
    %c0_15 = arith.constant 0 : index
    %c0_16 = arith.constant 0 : index
    %18 = vector.load %arg5[%c0_14, %c0_15, %c0_16] : memref<4x128x32xbf16, #tpu.memory_space<vmem>>, vector<1x128x32xbf16>
    %19 = vector.shape_cast %18 : vector<1x128x32xbf16> to vector<128x32xbf16>
    %cst_17 = arith.constant dense<0.000000e+00> : vector<8x32xf32>
    %20 = tpu.matmul %3, %19, %cst_17 {dimension_numbers = #tpu.dot_dimension_numbers<[1], [0], [0], [1], [0, 0, 1, 1], [], []>} : vector<8x128xbf16>, vector<128x32xbf16>, vector<8x32xf32> -> vector<8x32xf32>
    %c0_18 = arith.constant 0 : index
    %c0_19 = arith.constant 0 : index
    %c0_20 = arith.constant 0 : index
    %21 = vector.load %arg8[%c0_18, %c0_19, %c0_20] : memref<4x1x32xf32, #tpu.memory_space<vmem>>, vector<1x1x32xf32>
    %22 = vector.shape_cast %21 : vector<1x1x32xf32> to vector<1x32xf32>
    %23 = vector.broadcast %22 : vector<1x32xf32> to vector<8x32xf32>
    %24 = arith.addf %20, %23 : vector<8x32xf32>
    %25 = arith.truncf %24 : vector<8x32xf32> to vector<8x32xbf16>
    %c0_21 = arith.constant 0 : index
    %c0_22 = arith.constant 0 : index
    %c0_23 = arith.constant 0 : index
    %26 = vector.load %arg6[%c0_21, %c0_22, %c0_23] : memref<4x128x32xbf16, #tpu.memory_space<vmem>>, vector<1x128x32xbf16>
    %27 = vector.shape_cast %26 : vector<1x128x32xbf16> to vector<128x32xbf16>
    %cst_24 = arith.constant dense<0.000000e+00> : vector<8x32xf32>
    %28 = tpu.matmul %3, %27, %cst_24 {dimension_numbers = #tpu.dot_dimension_numbers<[1], [0], [0], [1], [0, 0, 1, 1], [], []>} : vector<8x128xbf16>, vector<128x32xbf16>, vector<8x32xf32> -> vector<8x32xf32>
    %c0_25 = arith.constant 0 : index
    %c0_26 = arith.constant 0 : index
    %c0_27 = arith.constant 0 : index
    %29 = vector.load %arg9[%c0_25, %c0_26, %c0_27] : memref<4x1x32xf32, #tpu.memory_space<vmem>>, vector<1x1x32xf32>
    %30 = vector.shape_cast %29 : vector<1x1x32xf32> to vector<1x32xf32>
    %31 = vector.broadcast %30 : vector<1x32xf32> to vector<8x32xf32>
    %32 = arith.addf %28, %31 : vector<8x32xf32>
    %33 = arith.truncf %32 : vector<8x32xf32> to vector<8x32xbf16>
    %cst_28 = arith.constant dense<0.000000e+00> : vector<8x8xf32>
    %34 = tpu.matmul %17, %25, %cst_28 {dimension_numbers = #tpu.dot_dimension_numbers<[1], [1], [0], [0], [0, 0, 1, 0], [], []>} : vector<8x32xbf16>, vector<8x32xbf16>, vector<8x8xf32> -> vector<8x8xf32>
    %cst_29 = arith.constant 0.176776692 : f32
    %35 = vector.broadcast %cst_29 : f32 to vector<8x8xf32>
    %36 = arith.mulf %34, %35 : vector<8x8xf32>
    %cst_30 = arith.constant -1.000000e+09 : f32
    %37 = vector.broadcast %cst_30 : f32 to vector<8x8xf32>
    %38 = arith.select %9, %36, %37 : vector<8x8xi1>, vector<8x8xf32>
    %cst_31 = arith.constant dense<0xFF800000> : vector<8xf32>
    %39 = vector.multi_reduction <maximumf>, %38, %cst_31 [1] : vector<8x8xf32> to vector<8xf32>
    %40 = vector.shape_cast %39 : vector<8xf32> to vector<8x1xf32>
    %41 = vector.broadcast %40 : vector<8x1xf32> to vector<8x8xf32>
    %42 = arith.subf %38, %41 : vector<8x8xf32>
    %43 = math.exp %42 : vector<8x8xf32>
    %cst_32 = arith.constant dense<0.000000e+00> : vector<8xf32>
    %44 = vector.multi_reduction <add>, %43, %cst_32 [1] : vector<8x8xf32> to vector<8xf32>
    %45 = vector.shape_cast %44 : vector<8xf32> to vector<8x1xf32>
    %46 = tpu.reciprocal %45 {approx = true} : vector<8x1xf32> -> vector<8x1xf32>
    %47 = vector.broadcast %46 : vector<8x1xf32> to vector<8x8xf32>
    %48 = arith.mulf %43, %47 : vector<8x8xf32>
    %49 = arith.truncf %48 : vector<8x8xf32> to vector<8x8xbf16>
    %cst_33 = arith.constant dense<0.000000e+00> : vector<8x32xf32>
    %50 = tpu.matmul %49, %33, %cst_33 {dimension_numbers = #tpu.dot_dimension_numbers<[1], [0], [0], [1], [0, 0, 1, 1], [], []>} : vector<8x8xbf16>, vector<8x32xbf16>, vector<8x32xf32> -> vector<8x32xf32>
    %51 = arith.truncf %50 : vector<8x32xf32> to vector<8x32xbf16>
    %c1 = arith.constant 1 : index
    %c0_34 = arith.constant 0 : index
    %c0_35 = arith.constant 0 : index
    %52 = vector.load %arg4[%c1, %c0_34, %c0_35] : memref<4x128x32xbf16, #tpu.memory_space<vmem>>, vector<1x128x32xbf16>
    %53 = vector.shape_cast %52 : vector<1x128x32xbf16> to vector<128x32xbf16>
    %cst_36 = arith.constant dense<0.000000e+00> : vector<8x32xf32>
    %54 = tpu.matmul %1, %53, %cst_36 {dimension_numbers = #tpu.dot_dimension_numbers<[1], [0], [0], [1], [0, 0, 1, 1], [], []>} : vector<8x128xbf16>, vector<128x32xbf16>, vector<8x32xf32> -> vector<8x32xf32>
    %c1_37 = arith.constant 1 : index
    %c0_38 = arith.constant 0 : index
    %c0_39 = arith.constant 0 : index
    %55 = vector.load %arg7[%c1_37, %c0_38, %c0_39] : memref<4x1x32xf32, #tpu.memory_space<vmem>>, vector<1x1x32xf32>
    %56 = vector.shape_cast %55 : vector<1x1x32xf32> to vector<1x32xf32>
    %57 = vector.broadcast %56 : vector<1x32xf32> to vector<8x32xf32>
    %58 = arith.addf %54, %57 : vector<8x32xf32>
    %59 = arith.truncf %58 : vector<8x32xf32> to vector<8x32xbf16>
    %c1_40 = arith.constant 1 : index
    %c0_41 = arith.constant 0 : index
    %c0_42 = arith.constant 0 : index
    %60 = vector.load %arg5[%c1_40, %c0_41, %c0_42] : memref<4x128x32xbf16, #tpu.memory_space<vmem>>, vector<1x128x32xbf16>
    %61 = vector.shape_cast %60 : vector<1x128x32xbf16> to vector<128x32xbf16>
    %cst_43 = arith.constant dense<0.000000e+00> : vector<8x32xf32>
    %62 = tpu.matmul %3, %61, %cst_43 {dimension_numbers = #tpu.dot_dimension_numbers<[1], [0], [0], [1], [0, 0, 1, 1], [], []>} : vector<8x128xbf16>, vector<128x32xbf16>, vector<8x32xf32> -> vector<8x32xf32>
    %c1_44 = arith.constant 1 : index
    %c0_45 = arith.constant 0 : index
    %c0_46 = arith.constant 0 : index
    %63 = vector.load %arg8[%c1_44, %c0_45, %c0_46] : memref<4x1x32xf32, #tpu.memory_space<vmem>>, vector<1x1x32xf32>
    %64 = vector.shape_cast %63 : vector<1x1x32xf32> to vector<1x32xf32>
    %65 = vector.broadcast %64 : vector<1x32xf32> to vector<8x32xf32>
    %66 = arith.addf %62, %65 : vector<8x32xf32>
    %67 = arith.truncf %66 : vector<8x32xf32> to vector<8x32xbf16>
    %c1_47 = arith.constant 1 : index
    %c0_48 = arith.constant 0 : index
    %c0_49 = arith.constant 0 : index
    %68 = vector.load %arg6[%c1_47, %c0_48, %c0_49] : memref<4x128x32xbf16, #tpu.memory_space<vmem>>, vector<1x128x32xbf16>
    %69 = vector.shape_cast %68 : vector<1x128x32xbf16> to vector<128x32xbf16>
    %cst_50 = arith.constant dense<0.000000e+00> : vector<8x32xf32>
    %70 = tpu.matmul %3, %69, %cst_50 {dimension_numbers = #tpu.dot_dimension_numbers<[1], [0], [0], [1], [0, 0, 1, 1], [], []>} : vector<8x128xbf16>, vector<128x32xbf16>, vector<8x32xf32> -> vector<8x32xf32>
    %c1_51 = arith.constant 1 : index
    %c0_52 = arith.constant 0 : index
    %c0_53 = arith.constant 0 : index
    %71 = vector.load %arg9[%c1_51, %c0_52, %c0_53] : memref<4x1x32xf32, #tpu.memory_space<vmem>>, vector<1x1x32xf32>
    %72 = vector.shape_cast %71 : vector<1x1x32xf32> to vector<1x32xf32>
    %73 = vector.broadcast %72 : vector<1x32xf32> to vector<8x32xf32>
    %74 = arith.addf %70, %73 : vector<8x32xf32>
    %75 = arith.truncf %74 : vector<8x32xf32> to vector<8x32xbf16>
    %cst_54 = arith.constant dense<0.000000e+00> : vector<8x8xf32>
    %76 = tpu.matmul %59, %67, %cst_54 {dimension_numbers = #tpu.dot_dimension_numbers<[1], [1], [0], [0], [0, 0, 1, 0], [], []>} : vector<8x32xbf16>, vector<8x32xbf16>, vector<8x8xf32> -> vector<8x8xf32>
    %cst_55 = arith.constant 0.176776692 : f32
    %77 = vector.broadcast %cst_55 : f32 to vector<8x8xf32>
    %78 = arith.mulf %76, %77 : vector<8x8xf32>
    %cst_56 = arith.constant -1.000000e+09 : f32
    %79 = vector.broadcast %cst_56 : f32 to vector<8x8xf32>
    %80 = arith.select %9, %78, %79 : vector<8x8xi1>, vector<8x8xf32>
    %cst_57 = arith.constant dense<0xFF800000> : vector<8xf32>
    %81 = vector.multi_reduction <maximumf>, %80, %cst_57 [1] : vector<8x8xf32> to vector<8xf32>
    %82 = vector.shape_cast %81 : vector<8xf32> to vector<8x1xf32>
    %83 = vector.broadcast %82 : vector<8x1xf32> to vector<8x8xf32>
    %84 = arith.subf %80, %83 : vector<8x8xf32>
    %85 = math.exp %84 : vector<8x8xf32>
    %cst_58 = arith.constant dense<0.000000e+00> : vector<8xf32>
    %86 = vector.multi_reduction <add>, %85, %cst_58 [1] : vector<8x8xf32> to vector<8xf32>
    %87 = vector.shape_cast %86 : vector<8xf32> to vector<8x1xf32>
    %88 = tpu.reciprocal %87 {approx = true} : vector<8x1xf32> -> vector<8x1xf32>
    %89 = vector.broadcast %88 : vector<8x1xf32> to vector<8x8xf32>
    %90 = arith.mulf %85, %89 : vector<8x8xf32>
    %91 = arith.truncf %90 : vector<8x8xf32> to vector<8x8xbf16>
    %cst_59 = arith.constant dense<0.000000e+00> : vector<8x32xf32>
    %92 = tpu.matmul %91, %75, %cst_59 {dimension_numbers = #tpu.dot_dimension_numbers<[1], [0], [0], [1], [0, 0, 1, 1], [], []>} : vector<8x8xbf16>, vector<8x32xbf16>, vector<8x32xf32> -> vector<8x32xf32>
    %93 = arith.truncf %92 : vector<8x32xf32> to vector<8x32xbf16>
    %c2 = arith.constant 2 : index
    %c0_60 = arith.constant 0 : index
    %c0_61 = arith.constant 0 : index
    %94 = vector.load %arg4[%c2, %c0_60, %c0_61] : memref<4x128x32xbf16, #tpu.memory_space<vmem>>, vector<1x128x32xbf16>
    %95 = vector.shape_cast %94 : vector<1x128x32xbf16> to vector<128x32xbf16>
    %cst_62 = arith.constant dense<0.000000e+00> : vector<8x32xf32>
    %96 = tpu.matmul %1, %95, %cst_62 {dimension_numbers = #tpu.dot_dimension_numbers<[1], [0], [0], [1], [0, 0, 1, 1], [], []>} : vector<8x128xbf16>, vector<128x32xbf16>, vector<8x32xf32> -> vector<8x32xf32>
    %c2_63 = arith.constant 2 : index
    %c0_64 = arith.constant 0 : index
    %c0_65 = arith.constant 0 : index
    %97 = vector.load %arg7[%c2_63, %c0_64, %c0_65] : memref<4x1x32xf32, #tpu.memory_space<vmem>>, vector<1x1x32xf32>
    %98 = vector.shape_cast %97 : vector<1x1x32xf32> to vector<1x32xf32>
    %99 = vector.broadcast %98 : vector<1x32xf32> to vector<8x32xf32>
    %100 = arith.addf %96, %99 : vector<8x32xf32>
    %101 = arith.truncf %100 : vector<8x32xf32> to vector<8x32xbf16>
    %c2_66 = arith.constant 2 : index
    %c0_67 = arith.constant 0 : index
    %c0_68 = arith.constant 0 : index
    %102 = vector.load %arg5[%c2_66, %c0_67, %c0_68] : memref<4x128x32xbf16, #tpu.memory_space<vmem>>, vector<1x128x32xbf16>
    %103 = vector.shape_cast %102 : vector<1x128x32xbf16> to vector<128x32xbf16>
    %cst_69 = arith.constant dense<0.000000e+00> : vector<8x32xf32>
    %104 = tpu.matmul %3, %103, %cst_69 {dimension_numbers = #tpu.dot_dimension_numbers<[1], [0], [0], [1], [0, 0, 1, 1], [], []>} : vector<8x128xbf16>, vector<128x32xbf16>, vector<8x32xf32> -> vector<8x32xf32>
    %c2_70 = arith.constant 2 : index
    %c0_71 = arith.constant 0 : index
    %c0_72 = arith.constant 0 : index
    %105 = vector.load %arg8[%c2_70, %c0_71, %c0_72] : memref<4x1x32xf32, #tpu.memory_space<vmem>>, vector<1x1x32xf32>
    %106 = vector.shape_cast %105 : vector<1x1x32xf32> to vector<1x32xf32>
    %107 = vector.broadcast %106 : vector<1x32xf32> to vector<8x32xf32>
    %108 = arith.addf %104, %107 : vector<8x32xf32>
    %109 = arith.truncf %108 : vector<8x32xf32> to vector<8x32xbf16>
    %c2_73 = arith.constant 2 : index
    %c0_74 = arith.constant 0 : index
    %c0_75 = arith.constant 0 : index
    %110 = vector.load %arg6[%c2_73, %c0_74, %c0_75] : memref<4x128x32xbf16, #tpu.memory_space<vmem>>, vector<1x128x32xbf16>
    %111 = vector.shape_cast %110 : vector<1x128x32xbf16> to vector<128x32xbf16>
    %cst_76 = arith.constant dense<0.000000e+00> : vector<8x32xf32>
    %112 = tpu.matmul %3, %111, %cst_76 {dimension_numbers = #tpu.dot_dimension_numbers<[1], [0], [0], [1], [0, 0, 1, 1], [], []>} : vector<8x128xbf16>, vector<128x32xbf16>, vector<8x32xf32> -> vector<8x32xf32>
    %c2_77 = arith.constant 2 : index
    %c0_78 = arith.constant 0 : index
    %c0_79 = arith.constant 0 : index
    %113 = vector.load %arg9[%c2_77, %c0_78, %c0_79] : memref<4x1x32xf32, #tpu.memory_space<vmem>>, vector<1x1x32xf32>
    %114 = vector.shape_cast %113 : vector<1x1x32xf32> to vector<1x32xf32>
    %115 = vector.broadcast %114 : vector<1x32xf32> to vector<8x32xf32>
    %116 = arith.addf %112, %115 : vector<8x32xf32>
    %117 = arith.truncf %116 : vector<8x32xf32> to vector<8x32xbf16>
    %cst_80 = arith.constant dense<0.000000e+00> : vector<8x8xf32>
    %118 = tpu.matmul %101, %109, %cst_80 {dimension_numbers = #tpu.dot_dimension_numbers<[1], [1], [0], [0], [0, 0, 1, 0], [], []>} : vector<8x32xbf16>, vector<8x32xbf16>, vector<8x8xf32> -> vector<8x8xf32>
    %cst_81 = arith.constant 0.176776692 : f32
    %119 = vector.broadcast %cst_81 : f32 to vector<8x8xf32>
    %120 = arith.mulf %118, %119 : vector<8x8xf32>
    %cst_82 = arith.constant -1.000000e+09 : f32
    %121 = vector.broadcast %cst_82 : f32 to vector<8x8xf32>
    %122 = arith.select %9, %120, %121 : vector<8x8xi1>, vector<8x8xf32>
    %cst_83 = arith.constant dense<0xFF800000> : vector<8xf32>
    %123 = vector.multi_reduction <maximumf>, %122, %cst_83 [1] : vector<8x8xf32> to vector<8xf32>
    %124 = vector.shape_cast %123 : vector<8xf32> to vector<8x1xf32>
    %125 = vector.broadcast %124 : vector<8x1xf32> to vector<8x8xf32>
    %126 = arith.subf %122, %125 : vector<8x8xf32>
    %127 = math.exp %126 : vector<8x8xf32>
    %cst_84 = arith.constant dense<0.000000e+00> : vector<8xf32>
    %128 = vector.multi_reduction <add>, %127, %cst_84 [1] : vector<8x8xf32> to vector<8xf32>
    %129 = vector.shape_cast %128 : vector<8xf32> to vector<8x1xf32>
    %130 = tpu.reciprocal %129 {approx = true} : vector<8x1xf32> -> vector<8x1xf32>
    %131 = vector.broadcast %130 : vector<8x1xf32> to vector<8x8xf32>
    %132 = arith.mulf %127, %131 : vector<8x8xf32>
    %133 = arith.truncf %132 : vector<8x8xf32> to vector<8x8xbf16>
    %cst_85 = arith.constant dense<0.000000e+00> : vector<8x32xf32>
    %134 = tpu.matmul %133, %117, %cst_85 {dimension_numbers = #tpu.dot_dimension_numbers<[1], [0], [0], [1], [0, 0, 1, 1], [], []>} : vector<8x8xbf16>, vector<8x32xbf16>, vector<8x32xf32> -> vector<8x32xf32>
    %135 = arith.truncf %134 : vector<8x32xf32> to vector<8x32xbf16>
    %c3 = arith.constant 3 : index
    %c0_86 = arith.constant 0 : index
    %c0_87 = arith.constant 0 : index
    %136 = vector.load %arg4[%c3, %c0_86, %c0_87] : memref<4x128x32xbf16, #tpu.memory_space<vmem>>, vector<1x128x32xbf16>
    %137 = vector.shape_cast %136 : vector<1x128x32xbf16> to vector<128x32xbf16>
    %cst_88 = arith.constant dense<0.000000e+00> : vector<8x32xf32>
    %138 = tpu.matmul %1, %137, %cst_88 {dimension_numbers = #tpu.dot_dimension_numbers<[1], [0], [0], [1], [0, 0, 1, 1], [], []>} : vector<8x128xbf16>, vector<128x32xbf16>, vector<8x32xf32> -> vector<8x32xf32>
    %c3_89 = arith.constant 3 : index
    %c0_90 = arith.constant 0 : index
    %c0_91 = arith.constant 0 : index
    %139 = vector.load %arg7[%c3_89, %c0_90, %c0_91] : memref<4x1x32xf32, #tpu.memory_space<vmem>>, vector<1x1x32xf32>
    %140 = vector.shape_cast %139 : vector<1x1x32xf32> to vector<1x32xf32>
    %141 = vector.broadcast %140 : vector<1x32xf32> to vector<8x32xf32>
    %142 = arith.addf %138, %141 : vector<8x32xf32>
    %143 = arith.truncf %142 : vector<8x32xf32> to vector<8x32xbf16>
    %c3_92 = arith.constant 3 : index
    %c0_93 = arith.constant 0 : index
    %c0_94 = arith.constant 0 : index
    %144 = vector.load %arg5[%c3_92, %c0_93, %c0_94] : memref<4x128x32xbf16, #tpu.memory_space<vmem>>, vector<1x128x32xbf16>
    %145 = vector.shape_cast %144 : vector<1x128x32xbf16> to vector<128x32xbf16>
    %cst_95 = arith.constant dense<0.000000e+00> : vector<8x32xf32>
    %146 = tpu.matmul %3, %145, %cst_95 {dimension_numbers = #tpu.dot_dimension_numbers<[1], [0], [0], [1], [0, 0, 1, 1], [], []>} : vector<8x128xbf16>, vector<128x32xbf16>, vector<8x32xf32> -> vector<8x32xf32>
    %c3_96 = arith.constant 3 : index
    %c0_97 = arith.constant 0 : index
    %c0_98 = arith.constant 0 : index
    %147 = vector.load %arg8[%c3_96, %c0_97, %c0_98] : memref<4x1x32xf32, #tpu.memory_space<vmem>>, vector<1x1x32xf32>
    %148 = vector.shape_cast %147 : vector<1x1x32xf32> to vector<1x32xf32>
    %149 = vector.broadcast %148 : vector<1x32xf32> to vector<8x32xf32>
    %150 = arith.addf %146, %149 : vector<8x32xf32>
    %151 = arith.truncf %150 : vector<8x32xf32> to vector<8x32xbf16>
    %c3_99 = arith.constant 3 : index
    %c0_100 = arith.constant 0 : index
    %c0_101 = arith.constant 0 : index
    %152 = vector.load %arg6[%c3_99, %c0_100, %c0_101] : memref<4x128x32xbf16, #tpu.memory_space<vmem>>, vector<1x128x32xbf16>
    %153 = vector.shape_cast %152 : vector<1x128x32xbf16> to vector<128x32xbf16>
    %cst_102 = arith.constant dense<0.000000e+00> : vector<8x32xf32>
    %154 = tpu.matmul %3, %153, %cst_102 {dimension_numbers = #tpu.dot_dimension_numbers<[1], [0], [0], [1], [0, 0, 1, 1], [], []>} : vector<8x128xbf16>, vector<128x32xbf16>, vector<8x32xf32> -> vector<8x32xf32>
    %c3_103 = arith.constant 3 : index
    %c0_104 = arith.constant 0 : index
    %c0_105 = arith.constant 0 : index
    %155 = vector.load %arg9[%c3_103, %c0_104, %c0_105] : memref<4x1x32xf32, #tpu.memory_space<vmem>>, vector<1x1x32xf32>
    %156 = vector.shape_cast %155 : vector<1x1x32xf32> to vector<1x32xf32>
    %157 = vector.broadcast %156 : vector<1x32xf32> to vector<8x32xf32>
    %158 = arith.addf %154, %157 : vector<8x32xf32>
    %159 = arith.truncf %158 : vector<8x32xf32> to vector<8x32xbf16>
    %cst_106 = arith.constant dense<0.000000e+00> : vector<8x8xf32>
    %160 = tpu.matmul %143, %151, %cst_106 {dimension_numbers = #tpu.dot_dimension_numbers<[1], [1], [0], [0], [0, 0, 1, 0], [], []>} : vector<8x32xbf16>, vector<8x32xbf16>, vector<8x8xf32> -> vector<8x8xf32>
    %cst_107 = arith.constant 0.176776692 : f32
    %161 = vector.broadcast %cst_107 : f32 to vector<8x8xf32>
    %162 = arith.mulf %160, %161 : vector<8x8xf32>
    %cst_108 = arith.constant -1.000000e+09 : f32
    %163 = vector.broadcast %cst_108 : f32 to vector<8x8xf32>
    %164 = arith.select %9, %162, %163 : vector<8x8xi1>, vector<8x8xf32>
    %cst_109 = arith.constant dense<0xFF800000> : vector<8xf32>
    %165 = vector.multi_reduction <maximumf>, %164, %cst_109 [1] : vector<8x8xf32> to vector<8xf32>
    %166 = vector.shape_cast %165 : vector<8xf32> to vector<8x1xf32>
    %167 = vector.broadcast %166 : vector<8x1xf32> to vector<8x8xf32>
    %168 = arith.subf %164, %167 : vector<8x8xf32>
    %169 = math.exp %168 : vector<8x8xf32>
    %cst_110 = arith.constant dense<0.000000e+00> : vector<8xf32>
    %170 = vector.multi_reduction <add>, %169, %cst_110 [1] : vector<8x8xf32> to vector<8xf32>
    %171 = vector.shape_cast %170 : vector<8xf32> to vector<8x1xf32>
    %172 = tpu.reciprocal %171 {approx = true} : vector<8x1xf32> -> vector<8x1xf32>
    %173 = vector.broadcast %172 : vector<8x1xf32> to vector<8x8xf32>
    %174 = arith.mulf %169, %173 : vector<8x8xf32>
    %175 = arith.truncf %174 : vector<8x8xf32> to vector<8x8xbf16>
    %cst_111 = arith.constant dense<0.000000e+00> : vector<8x32xf32>
    %176 = tpu.matmul %175, %159, %cst_111 {dimension_numbers = #tpu.dot_dimension_numbers<[1], [0], [0], [1], [0, 0, 1, 1], [], []>} : vector<8x8xbf16>, vector<8x32xbf16>, vector<8x32xf32> -> vector<8x32xf32>
    %177 = arith.truncf %176 : vector<8x32xf32> to vector<8x32xbf16>
    %178 = tpu.concatenate %51, %93, %135, %177 in 1 : vector<8x32xbf16>, vector<8x32xbf16>, vector<8x32xbf16>, vector<8x32xbf16> -> vector<8x128xbf16>
    %c0_112 = arith.constant 0 : index
    %c0_113 = arith.constant 0 : index
    %179 = vector.load %arg10[%c0_112, %c0_113] : memref<128x128xbf16, #tpu.memory_space<vmem>>, vector<128x128xbf16>
    %cst_114 = arith.constant dense<0.000000e+00> : vector<8x128xf32>
    %180 = tpu.matmul %178, %179, %cst_114 {dimension_numbers = #tpu.dot_dimension_numbers<[1], [0], [0], [1], [0, 0, 1, 1], [], []>} : vector<8x128xbf16>, vector<128x128xbf16>, vector<8x128xf32> -> vector<8x128xf32>
    %c0_115 = arith.constant 0 : index
    %c0_116 = arith.constant 0 : index
    %181 = vector.load %arg11[%c0_115, %c0_116] : memref<1x128xf32, #tpu.memory_space<vmem>>, vector<1x128xf32>
    %182 = vector.broadcast %181 : vector<1x128xf32> to vector<8x128xf32>
    %183 = arith.addf %180, %182 : vector<8x128xf32>
    %184 = arith.extf %1 : vector<8x128xbf16> to vector<8x128xf32>
    %185 = arith.addf %184, %183 : vector<8x128xf32>
    %cst_117 = arith.constant dense<0.000000e+00> : vector<8xf32>
    %186 = vector.multi_reduction <add>, %185, %cst_117 [1] : vector<8x128xf32> to vector<8xf32>
    %187 = vector.shape_cast %186 : vector<8xf32> to vector<8x1xf32>
    %cst_118 = arith.constant 1.280000e+02 : f32
    %188 = vector.broadcast %cst_118 : f32 to vector<8x1xf32>
    %189 = arith.divf %187, %188 : vector<8x1xf32>
    %190 = vector.broadcast %189 : vector<8x1xf32> to vector<8x128xf32>
    %191 = arith.subf %185, %190 : vector<8x128xf32>
    %192 = arith.mulf %191, %191 : vector<8x128xf32>
    %cst_119 = arith.constant dense<0.000000e+00> : vector<8xf32>
    %193 = vector.multi_reduction <add>, %192, %cst_119 [1] : vector<8x128xf32> to vector<8xf32>
    %194 = vector.shape_cast %193 : vector<8xf32> to vector<8x1xf32>
    %cst_120 = arith.constant 1.280000e+02 : f32
    %195 = vector.broadcast %cst_120 : f32 to vector<8x1xf32>
    %196 = arith.divf %194, %195 : vector<8x1xf32>
    %197 = vector.broadcast %189 : vector<8x1xf32> to vector<8x128xf32>
    %198 = arith.subf %185, %197 : vector<8x128xf32>
    %cst_121 = arith.constant 9.99999974E-6 : f32
    %199 = vector.broadcast %cst_121 : f32 to vector<8x1xf32>
    %200 = arith.addf %196, %199 : vector<8x1xf32>
    %201 = math.rsqrt %200 : vector<8x1xf32>
    %202 = vector.broadcast %201 : vector<8x1xf32> to vector<8x128xf32>
    %203 = arith.mulf %198, %202 : vector<8x128xf32>
    %c0_122 = arith.constant 0 : index
    %c0_123 = arith.constant 0 : index
    %204 = vector.load %arg12[%c0_122, %c0_123] : memref<1x128xf32, #tpu.memory_space<vmem>>, vector<1x128xf32>
    %205 = vector.broadcast %204 : vector<1x128xf32> to vector<8x128xf32>
    %206 = arith.mulf %203, %205 : vector<8x128xf32>
    %c0_124 = arith.constant 0 : index
    %c0_125 = arith.constant 0 : index
    %207 = vector.load %arg13[%c0_124, %c0_125] : memref<1x128xf32, #tpu.memory_space<vmem>>, vector<1x128xf32>
    %208 = vector.broadcast %207 : vector<1x128xf32> to vector<8x128xf32>
    %209 = arith.addf %206, %208 : vector<8x128xf32>
    %210 = arith.truncf %209 : vector<8x128xf32> to vector<8x128xbf16>
    %c0_126 = arith.constant 0 : index
    %c0_127 = arith.constant 0 : index
    %c0_128 = arith.constant 0 : index
    %211 = vector.load %arg14[%c0_126, %c0_127, %c0_128] : memref<1x8x128xbf16, #tpu.memory_space<vmem>>, vector<1x8x128xbf16>
    %212 = vector.shape_cast %211 : vector<1x8x128xbf16> to vector<8x128xbf16>
    %213 = vector.shape_cast %210 : vector<8x128xbf16> to vector<1x8x128xbf16>
    tpu.vector_store %arg14[%c0_126, %c0_127, %c0_128], %213 {strides = array<i32>} : memref<1x8x128xbf16, #tpu.memory_space<vmem>>, vector<1x8x128xbf16>,
    return
  }
  func.func @transform_0(%arg0: i32) -> (i32, i32, i32) {
    %c0_i32 = arith.constant 0 : i32
    %c0_i32_0 = arith.constant 0 : i32
    %c0_i32_1 = arith.constant 0 : i32
    return %arg0, %c0_i32, %c0_i32_0 : i32, i32, i32
  }
  func.func @transform_1(%arg0: i32) -> (i32, i32, i32) {
    %c0_i32 = arith.constant 0 : i32
    %c0_i32_0 = arith.constant 0 : i32
    %c0_i32_1 = arith.constant 0 : i32
    return %arg0, %c0_i32, %c0_i32_0 : i32, i32, i32
  }
  func.func @transform_2(%arg0: i32) -> (i32, i32, i32) {
    %c0_i32 = arith.constant 0 : i32
    %c0_i32_0 = arith.constant 0 : i32
    %c0_i32_1 = arith.constant 0 : i32
    return %arg0, %c0_i32, %c0_i32_0 : i32, i32, i32
  }
  func.func @transform_3(%arg0: i32) -> (i32, i32, i32) {
    %c0_i32 = arith.constant 0 : i32
    %c0_i32_0 = arith.constant 0 : i32
    %c0_i32_1 = arith.constant 0 : i32
    %c0_i32_2 = arith.constant 0 : i32
    return %c0_i32, %c0_i32_0, %c0_i32_1 : i32, i32, i32
  }
  func.func @transform_4(%arg0: i32) -> (i32, i32, i32) {
    %c0_i32 = arith.constant 0 : i32
    %c0_i32_0 = arith.constant 0 : i32
    %c0_i32_1 = arith.constant 0 : i32
    %c0_i32_2 = arith.constant 0 : i32
    return %c0_i32, %c0_i32_0, %c0_i32_1 : i32, i32, i32
  }
  func.func @transform_5(%arg0: i32) -> (i32, i32, i32) {
    %c0_i32 = arith.constant 0 : i32
    %c0_i32_0 = arith.constant 0 : i32
    %c0_i32_1 = arith.constant 0 : i32
    %c0_i32_2 = arith.constant 0 : i32
    return %c0_i32, %c0_i32_0, %c0_i32_1 : i32, i32, i32
  }
  func.func @transform_6(%arg0: i32) -> (i32, i32, i32) {
    %c0_i32 = arith.constant 0 : i32
    %c0_i32_0 = arith.constant 0 : i32
    %c0_i32_1 = arith.constant 0 : i32
    %c0_i32_2 = arith.constant 0 : i32
    return %c0_i32, %c0_i32_0, %c0_i32_1 : i32, i32, i32
  }
  func.func @transform_7(%arg0: i32) -> (i32, i32, i32) {
    %c0_i32 = arith.constant 0 : i32
    %c0_i32_0 = arith.constant 0 : i32
    %c0_i32_1 = arith.constant 0 : i32
    %c0_i32_2 = arith.constant 0 : i32
    return %c0_i32, %c0_i32_0, %c0_i32_1 : i32, i32, i32
  }
  func.func @transform_8(%arg0: i32) -> (i32, i32, i32) {
    %c0_i32 = arith.constant 0 : i32
    %c0_i32_0 = arith.constant 0 : i32
    %c0_i32_1 = arith.constant 0 : i32
    %c0_i32_2 = arith.constant 0 : i32
    return %c0_i32, %c0_i32_0, %c0_i32_1 : i32, i32, i32
  }
  func.func @transform_9(%arg0: i32) -> (i32, i32) {
    %c0_i32 = arith.constant 0 : i32
    %c0_i32_0 = arith.constant 0 : i32
    %c0_i32_1 = arith.constant 0 : i32
    return %c0_i32, %c0_i32_0 : i32, i32
  }
  func.func @transform_10(%arg0: i32) -> (i32, i32) {
    %c0_i32 = arith.constant 0 : i32
    %c0_i32_0 = arith.constant 0 : i32
    %c0_i32_1 = arith.constant 0 : i32
    return %c0_i32, %c0_i32_0 : i32, i32
  }
  func.func @transform_11(%arg0: i32) -> (i32, i32) {
    %c0_i32 = arith.constant 0 : i32
    %c0_i32_0 = arith.constant 0 : i32
    %c0_i32_1 = arith.constant 0 : i32
    return %c0_i32, %c0_i32_0 : i32, i32
  }
  func.func @transform_12(%arg0: i32) -> (i32, i32) {
    %c0_i32 = arith.constant 0 : i32
    %c0_i32_0 = arith.constant 0 : i32
    %c0_i32_1 = arith.constant 0 : i32
    return %c0_i32, %c0_i32_0 : i32, i32
  }
  func.func @transform_13(%arg0: i32) -> (i32, i32, i32) {
    %c0_i32 = arith.constant 0 : i32
    %c0_i32_0 = arith.constant 0 : i32
    %c0_i32_1 = arith.constant 0 : i32
    return %arg0, %c0_i32, %c0_i32_0 : i32, i32, i32
  }
}

module attributes {stable_mosaic.version = 11 : i64} {
  func.func @_ffn_ln_kernel(%arg0: i32, %arg1: memref<16x128xbf16, #tpu.memory_space<vmem>>, %arg2: memref<128x256xbf16, #tpu.memory_space<vmem>>, %arg3: memref<1x256xf32, #tpu.memory_space<vmem>>, %arg4: memref<256x128xbf16, #tpu.memory_space<vmem>>, %arg5: memref<1x128xf32, #tpu.memory_space<vmem>>, %arg6: memref<1x128xf32, #tpu.memory_space<vmem>>, %arg7: memref<1x128xf32, #tpu.memory_space<vmem>>, %arg8: memref<16x128xbf16, #tpu.memory_space<vmem>>) attributes {dimension_semantics = [#tpu.dimension_semantics<parallel>], iteration_bounds = array<i64: 1>, scalar_prefetch = 0 : i64, scratch_operands = 0 : i64, tpu.core_type = #tpu.core_type<tc>, window_params = [{transform_indices = @transform_0, window_bounds = array<i64: 16, 128>}, {pipeline_mode = #tpu.pipeline_mode<synchronous>, transform_indices = @transform_1, window_bounds = array<i64: 128, 256>}, {pipeline_mode = #tpu.pipeline_mode<synchronous>, transform_indices = @transform_2, window_bounds = array<i64: 1, 256>}, {pipeline_mode = #tpu.pipeline_mode<synchronous>, transform_indices = @transform_3, window_bounds = array<i64: 256, 128>}, {pipeline_mode = #tpu.pipeline_mode<synchronous>, transform_indices = @transform_4, window_bounds = array<i64: 1, 128>}, {pipeline_mode = #tpu.pipeline_mode<synchronous>, transform_indices = @transform_5, window_bounds = array<i64: 1, 128>}, {pipeline_mode = #tpu.pipeline_mode<synchronous>, transform_indices = @transform_6, window_bounds = array<i64: 1, 128>}, {transform_indices = @transform_7, window_bounds = array<i64: 16, 128>}]} {
    %c0 = arith.constant 0 : index
    %c0_0 = arith.constant 0 : index
    %0 = vector.load %arg1[%c0, %c0_0] : memref<16x128xbf16, #tpu.memory_space<vmem>>, vector<16x128xbf16>
    %c0_1 = arith.constant 0 : index
    %c0_2 = arith.constant 0 : index
    %1 = vector.load %arg2[%c0_1, %c0_2] : memref<128x256xbf16, #tpu.memory_space<vmem>>, vector<128x256xbf16>
    %cst = arith.constant dense<0.000000e+00> : vector<16x256xf32>
    %2 = tpu.matmul %0, %1, %cst {dimension_numbers = #tpu.dot_dimension_numbers<[1], [0], [0], [1], [0, 0, 1, 1], [], []>} : vector<16x128xbf16>, vector<128x256xbf16>, vector<16x256xf32> -> vector<16x256xf32>
    %c0_3 = arith.constant 0 : index
    %c0_4 = arith.constant 0 : index
    %3 = vector.load %arg3[%c0_3, %c0_4] : memref<1x256xf32, #tpu.memory_space<vmem>>, vector<1x256xf32>
    %4 = vector.broadcast %3 : vector<1x256xf32> to vector<16x256xf32>
    %5 = arith.addf %2, %4 : vector<16x256xf32>
    %cst_5 = arith.constant 0.000000e+00 : f32
    %6 = vector.broadcast %cst_5 : f32 to vector<16x256xf32>
    %7 = arith.maximumf %5, %6 : vector<16x256xf32>
    %8 = arith.truncf %7 : vector<16x256xf32> to vector<16x256xbf16>
    %c0_6 = arith.constant 0 : index
    %c0_7 = arith.constant 0 : index
    %9 = vector.load %arg4[%c0_6, %c0_7] : memref<256x128xbf16, #tpu.memory_space<vmem>>, vector<256x128xbf16>
    %cst_8 = arith.constant dense<0.000000e+00> : vector<16x128xf32>
    %10 = tpu.matmul %8, %9, %cst_8 {dimension_numbers = #tpu.dot_dimension_numbers<[1], [0], [0], [1], [0, 0, 1, 1], [], []>} : vector<16x256xbf16>, vector<256x128xbf16>, vector<16x128xf32> -> vector<16x128xf32>
    %c0_9 = arith.constant 0 : index
    %c0_10 = arith.constant 0 : index
    %11 = vector.load %arg5[%c0_9, %c0_10] : memref<1x128xf32, #tpu.memory_space<vmem>>, vector<1x128xf32>
    %12 = vector.broadcast %11 : vector<1x128xf32> to vector<16x128xf32>
    %13 = arith.addf %10, %12 : vector<16x128xf32>
    %14 = arith.extf %0 : vector<16x128xbf16> to vector<16x128xf32>
    %15 = arith.addf %14, %13 : vector<16x128xf32>
    %cst_11 = arith.constant dense<0.000000e+00> : vector<16xf32>
    %16 = vector.multi_reduction <add>, %15, %cst_11 [1] : vector<16x128xf32> to vector<16xf32>
    %17 = vector.shape_cast %16 : vector<16xf32> to vector<16x1xf32>
    %cst_12 = arith.constant 1.280000e+02 : f32
    %18 = vector.broadcast %cst_12 : f32 to vector<16x1xf32>
    %19 = arith.divf %17, %18 : vector<16x1xf32>
    %20 = vector.broadcast %19 : vector<16x1xf32> to vector<16x128xf32>
    %21 = arith.subf %15, %20 : vector<16x128xf32>
    %22 = arith.mulf %21, %21 : vector<16x128xf32>
    %cst_13 = arith.constant dense<0.000000e+00> : vector<16xf32>
    %23 = vector.multi_reduction <add>, %22, %cst_13 [1] : vector<16x128xf32> to vector<16xf32>
    %24 = vector.shape_cast %23 : vector<16xf32> to vector<16x1xf32>
    %cst_14 = arith.constant 1.280000e+02 : f32
    %25 = vector.broadcast %cst_14 : f32 to vector<16x1xf32>
    %26 = arith.divf %24, %25 : vector<16x1xf32>
    %27 = vector.broadcast %19 : vector<16x1xf32> to vector<16x128xf32>
    %28 = arith.subf %15, %27 : vector<16x128xf32>
    %cst_15 = arith.constant 9.99999974E-6 : f32
    %29 = vector.broadcast %cst_15 : f32 to vector<16x1xf32>
    %30 = arith.addf %26, %29 : vector<16x1xf32>
    %31 = math.rsqrt %30 : vector<16x1xf32>
    %32 = vector.broadcast %31 : vector<16x1xf32> to vector<16x128xf32>
    %33 = arith.mulf %28, %32 : vector<16x128xf32>
    %c0_16 = arith.constant 0 : index
    %c0_17 = arith.constant 0 : index
    %34 = vector.load %arg6[%c0_16, %c0_17] : memref<1x128xf32, #tpu.memory_space<vmem>>, vector<1x128xf32>
    %35 = vector.broadcast %34 : vector<1x128xf32> to vector<16x128xf32>
    %36 = arith.mulf %33, %35 : vector<16x128xf32>
    %c0_18 = arith.constant 0 : index
    %c0_19 = arith.constant 0 : index
    %37 = vector.load %arg7[%c0_18, %c0_19] : memref<1x128xf32, #tpu.memory_space<vmem>>, vector<1x128xf32>
    %38 = vector.broadcast %37 : vector<1x128xf32> to vector<16x128xf32>
    %39 = arith.addf %36, %38 : vector<16x128xf32>
    %40 = arith.truncf %39 : vector<16x128xf32> to vector<16x128xbf16>
    %c0_20 = arith.constant 0 : index
    %c0_21 = arith.constant 0 : index
    %41 = vector.load %arg8[%c0_20, %c0_21] : memref<16x128xbf16, #tpu.memory_space<vmem>>, vector<16x128xbf16>
    tpu.vector_store %arg8[%c0_20, %c0_21], %40 {strides = array<i32>} : memref<16x128xbf16, #tpu.memory_space<vmem>>, vector<16x128xbf16>,
    return
  }
  func.func @transform_0(%arg0: i32) -> (i32, i32) {
    %c0_i32 = arith.constant 0 : i32
    %c0_i32_0 = arith.constant 0 : i32
    return %arg0, %c0_i32 : i32, i32
  }
  func.func @transform_1(%arg0: i32) -> (i32, i32) {
    %c0_i32 = arith.constant 0 : i32
    %c0_i32_0 = arith.constant 0 : i32
    %c0_i32_1 = arith.constant 0 : i32
    return %c0_i32, %c0_i32_0 : i32, i32
  }
  func.func @transform_2(%arg0: i32) -> (i32, i32) {
    %c0_i32 = arith.constant 0 : i32
    %c0_i32_0 = arith.constant 0 : i32
    %c0_i32_1 = arith.constant 0 : i32
    return %c0_i32, %c0_i32_0 : i32, i32
  }
  func.func @transform_3(%arg0: i32) -> (i32, i32) {
    %c0_i32 = arith.constant 0 : i32
    %c0_i32_0 = arith.constant 0 : i32
    %c0_i32_1 = arith.constant 0 : i32
    return %c0_i32, %c0_i32_0 : i32, i32
  }
  func.func @transform_4(%arg0: i32) -> (i32, i32) {
    %c0_i32 = arith.constant 0 : i32
    %c0_i32_0 = arith.constant 0 : i32
    %c0_i32_1 = arith.constant 0 : i32
    return %c0_i32, %c0_i32_0 : i32, i32
  }
  func.func @transform_5(%arg0: i32) -> (i32, i32) {
    %c0_i32 = arith.constant 0 : i32
    %c0_i32_0 = arith.constant 0 : i32
    %c0_i32_1 = arith.constant 0 : i32
    return %c0_i32, %c0_i32_0 : i32, i32
  }
  func.func @transform_6(%arg0: i32) -> (i32, i32) {
    %c0_i32 = arith.constant 0 : i32
    %c0_i32_0 = arith.constant 0 : i32
    %c0_i32_1 = arith.constant 0 : i32
    return %c0_i32, %c0_i32_0 : i32, i32
  }
  func.func @transform_7(%arg0: i32) -> (i32, i32) {
    %c0_i32 = arith.constant 0 : i32
    %c0_i32_0 = arith.constant 0 : i32
    return %arg0, %c0_i32 : i32, i32
  }
}

</mosaic_0001>

<bundles_post_ra>
// kernel: transformer_forward.11
= control target key start
LH: loop header
LB: loop body
LE: loop exit
PB: predicated region body
PF: predicated region fallthrough
CT: control target
= control target key end

     0   :  { %v541_v1 = vmov 0   ;;  %v47_v34 = vlaneseq  ;;  %s696_s1 = inlined_call_operand.vmem [shape: bf16[128,256], index: 1, kind: input, shape index: {}]   ;;  %s697_s3 = inlined_call_operand.vmem [shape: bf16[256,128], index: 3, kind: input, shape index: {}]   ;;  %s698_s0 = inlined_call_operand.vmem [shape: bf16[16,128], index: 0, kind: input, shape index: {}]   ;;  %s699_s2 = inlined_call_operand.vmem [shape: f32[1,256], index: 2, kind: input, shape index: {}]   ;;  %s700_s4 = inlined_call_operand.vmem [shape: f32[1,128], index: 4, kind: input, shape index: {}]   ;;  %s701_s5 = inlined_call_operand.vmem [shape: f32[1,128], index: 5, kind: input, shape index: {}]   ;;  %s702_s6 = inlined_call_operand.vmem [shape: f32[1,128], index: 6, kind: input, shape index: {}]   ;;  %s703_s7 = inlined_call_operand.vmem [shape: bf16[16,128], index: 7, kind: output, shape index: {}]  }
   0x1   :  { %v495_v0 = vld [vmem:[%s696_s1 + $0x4] ss:$8 sps:$4 sm:$0xff]   ;;  %175 = vmatprep.mubr.bf16.mxu0 %v541_v1  ;;  %v497_v2 = vld [vmem:[%s696_s1] ss:$8 sps:$4 sm:$0xff]   ;;  %v498_v3 = vld [vmem:[%s696_s1 + $0x14] ss:$8 sps:$4 sm:$0xff]  }
   0x2   :  { %143 = vmatprep.subr.bf16.mxu0 %v495_v0  ;;  %v500_v4 = vld [vmem:[%s696_s1 + $0x10] ss:$8 sps:$4 sm:$0xff]   ;;  %v501_v5 = vld [vmem:[%s696_s1 + $0x24] ss:$8 sps:$4 sm:$0xff]   ;;  %v503_v6 = vld [vmem:[%s696_s1 + $0x20] ss:$8 sps:$4 sm:$0xff]  }
   0x3   :  { %144 = vmatpush1.bf16.msra.mxu0 %v497_v2  ;;  %v504_v7 = vld [vmem:[%s696_s1 + $0x34] ss:$8 sps:$4 sm:$0xff]   ;;  %v506_v8 = vld [vmem:[%s696_s1 + $0x30] ss:$8 sps:$4 sm:$0xff]   ;;  %v507_v9 = vld [vmem:[%s696_s1 + $0x44] ss:$8 sps:$4 sm:$0xff]  }
   0x4   :  { %145 = vmatprep.subr.bf16.mxu0 %v498_v3  ;;  %v520_v10 = vld [vmem:[%s697_s3 + $0x40] sm:$0xff]   ;;  %v522_v13 = vld [vmem:[%s697_s3 + $0x48] sm:$0xff]   ;;  %v524_v15 = vld [vmem:[%s697_s3 + $0x50] sm:$0xff]   ;;  %v48_v35 = vshrl.u32 %v47_v34, 7 }
   0x5   :  { %v521_v11 = vld [vmem:[%s697_s3] sm:$0xff]   ;;  %472 = vmatprep.subr.bf16.mxu1 %v520_v10  ;;  %v523_v14 = vld [vmem:[%s697_s3 + $0x8] sm:$0xff]   ;;  %v510_v16 = vld [vmem:[%s696_s1 + $0x54] ss:$8 sps:$4 sm:$0xff]  }
   0x6   :  { %v509_v12 = vld [vmem:[%s696_s1 + $0x40] ss:$8 sps:$4 sm:$0xff]   ;;  %473 = vmatpush3.bf16.msra.mxu1 %v521_v11  ;;  %v512_v17 = vld [vmem:[%s696_s1 + $0x50] ss:$8 sps:$4 sm:$0xff]   ;;  %v513_v20 = vld [vmem:[%s696_s1 + $0x64] ss:$8 sps:$4 sm:$0xff]  }
   0x7   :  { %146 = vmatpush1.bf16.msra.mxu0 %v500_v4  ;;  %474 = vmatprep.subr.bf16.mxu1 %v522_v13  ;;  %v525_v18 = vld [vmem:[%s697_s3 + $0x10] sm:$0xff]   ;;  %v526_v19 = vld [vmem:[%s697_s3 + $0x58] sm:$0xff]   ;;  %v515_v21 = vld [vmem:[%s696_s1 + $0x60] ss:$8 sps:$4 sm:$0xff]   ;;  %v49_v36 = vsub.s32 0, %v48_v35  ;;  %v53_v38 = vsub.s32 1, %v48_v35 }
   0x8   :  { %147 = vmatprep.subr.bf16.mxu0 %v501_v5  ;;  %v527_v22 = vld [vmem:[%s697_s3 + $0x18] sm:$0xff]   ;;  %v528_v24 = vld [vmem:[%s697_s3 + $0x60] sm:$0xff]   ;;  %v530_v28 = vld [vmem:[%s697_s3 + $0x68] sm:$0xff]  }
   0x9   :  { %v516_v23 = vld [vmem:[%s696_s1 + $0x74] ss:$8 sps:$4 sm:$0xff]   ;;  %v529_v25 = vld [vmem:[%s697_s3 + $0x20] sm:$0xff]   ;;  %v518_v26 = vld [vmem:[%s696_s1 + $0x70] ss:$8 sps:$4 sm:$0xff]  }
   0xa   :  { %475 = vmatpush3.bf16.msra.mxu1 %v523_v14  ;;  %v27_v27 = vld [vmem:[%s698_s0] sm:$0xff]   ;;  %v531_v29 = vld [vmem:[%s697_s3 + $0x28] sm:$0xff]   ;;  %v532_v30 = vld [vmem:[%s697_s3 + $0x70] sm:$0xff]  }
   0xb   :  { %148 = vmatpush1.bf16.msra.mxu0 %v503_v6  ;;  %476 = vmatprep.subr.bf16.mxu1 %v524_v15  ;;  %v533_v31 = vld [vmem:[%s697_s3 + $0x30] sm:$0xff]   ;;  %v534_v32 = vld [vmem:[%s697_s3 + $0x78] sm:$0xff]   ;;  %v45_v37 = vld [vmem:[%s699_s2] sm:$0x3]  ;;  %v368_v60 = vunpack.c.l.bf16 %v27_v27  ;;  %v369_v2 = vunpack.c.h.bf16 %v27_v27 }
   0xc   :  { %149 = vmatprep.subr.bf16.mxu0 %v504_v7  ;;  %v535_v33 = vld [vmem:[%s697_s3 + $0x38] sm:$0xff]   ;;  %v50_v39 = vrot.slane %v45_v37, %v49_v36  ;;  %v54_v40 = vrot.slane %v45_v37, %v53_v38  ;;  %v444_v56 = vld [vmem:[%s700_s4] ss:$0 sm:$0xff] }
   0xe   :  { %477 = vmatpush3.bf16.msra.mxu1 %v525_v18 }
   0xf   :  { %150 = vmatpush1.bf16.msra.mxu0 %v506_v8  ;;  %478 = vmatprep.subr.bf16.mxu1 %v526_v19 }
  0x10   :  { %151 = vmatprep.subr.bf16.mxu0 %v507_v9 }
  0x12   :  { %479 = vmatpush3.bf16.msra.mxu1 %v527_v22 }
  0x13   :  { %152 = vmatpush1.bf16.msra.mxu0 %v509_v12  ;;  %480 = vmatprep.subr.bf16.mxu1 %v528_v24  ;;  %v462_v24 = vld [vmem:[%s702_s6] ss:$0 sm:$0xff] }
  0x14   :  { %153 = vmatprep.subr.bf16.mxu0 %v510_v16 }
  0x16   :  { %481 = vmatpush3.bf16.msra.mxu1 %v529_v25 }
  0x17   :  { %154 = vmatpush1.bf16.msra.mxu0 %v512_v17  ;;  %482 = vmatprep.subr.bf16.mxu1 %v530_v28 }
  0x18   :  { %155 = vmatprep.subr.bf16.mxu0 %v513_v20  ;;  %v461_v20 = vld [vmem:[%s701_s5] ss:$0 sm:$0xff] }
  0x1a   :  { %483 = vmatpush3.bf16.msra.mxu1 %v531_v29 }
  0x1b   :  { %156 = vmatpush1.bf16.msra.mxu0 %v515_v21  ;;  %484 = vmatprep.subr.bf16.mxu1 %v532_v30 }
  0x1c   :  { %157 = vmatprep.subr.bf16.mxu0 %v516_v23 }
  0x1e   :  { %485 = vmatpush3.bf16.msra.mxu1 %v533_v31 }
  0x1f   :  { %158 = vmatpush1.bf16.msra.mxu0 %v518_v26  ;;  %486 = vmatprep.subr.bf16.mxu1 %v534_v32 }
  0x22   :  { %176 = vmatmul.mubr.bf16.vlgmr.msra.gmra.mrb[0].mxu0 %v27_v27  ;;  %487 = vmatpush3.bf16.msra.mxu1 %v535_v33 }
  0xf5   :  { %v177_v41 = vpop.f32.mrb[0].mxu0 }
  0xf6   :  { %v178_v42 = vadd.f32 %v177_v41, %v50_v39  ;;  %v179_v43 = vpop.f32.mrb[1].mxu0 }
  0xf7   :  { %v180_v44 = vadd.f32 %v179_v43, %v54_v40  ;;  %v181_v45 = vpop.f32.mrb[2].mxu0 }
  0xf8   :  { %v182_v46 = vadd.f32 %v181_v45, %v50_v39  ;;  %v183_v47 = vpop.f32.mrb[3].mxu0  ;;  %v186_v49 = vmax.f32 %v178_v42, 0.0 }
  0xf9   :  { %v184_v48 = vadd.f32 %v183_v47, %v54_v40  ;;  %v187_v51 = vmax.f32 %v180_v44, 0.0 }
  0xfa   :  { %v188_v50 = vmax.f32 %v182_v46, 0.0 }
  0xfb   :  { %v189_v52 = vmax.f32 %v184_v48, 0.0 }
  0xfc   :  { %v190_v53 = vpack.c.bf16 %v188_v50, %v186_v49 }
  0xfd   :  { %v191_v54 = vpack.c.bf16 %v189_v52, %v187_v51 }
  0xff   :  { %359 = vmatprep.mubr.bf16.mxu1 %v191_v54 }
 0x100   :  { %360 = vmatmul.mubr.bf16.vlgmr.msra.gmra.mrb[0].mxu1 %v190_v53 }
 0x1d3   :  { %v488_v55 = vpop.f32.mrb[0].mxu1 }
 0x1d4   :  { %v489_v57 = vpop.f32.mrb[1].mxu1 }
 0x1d5   :  { %v490_v58 = vadd.f32 %v489_v57, %v488_v55  ;;  %v491_v59 = vpop.f32.mrb[2].mxu1 }
 0x1d6   :  { %v492_v61 = vpop.f32.mrb[3].mxu1 }
 0x1d7   :  { %v362_v62 = vadd.f32 %v490_v58, %v444_v56  ;;  %v493_v63 = vadd.f32 %v492_v61, %v491_v59 }
 0x1d9   :  { %v365_v0 = vadd.f32 %v493_v63, %v444_v56  ;;  %v370_v1 = vadd.f32 %v368_v60, %v362_v62 }
 0x1db   :  { %372 = vadd.xlane.f32.xlu0 %v370_v1  ;;  %v371_v3 = vadd.f32 %v369_v2, %v365_v0 }
 0x1df   :  { %374 = vadd.xlane.f32.xlu0 %v371_v3 }
 0x268   :  { %v373_v4 = vpop.xlane.xlu0 %372 }
 0x269   :  { %v377_v5 = vmul.f32 0.0078125, %v373_v4 }
 0x26b   :  { %v379_v6 = vsub.f32 %v370_v1, %v377_v5 }
 0x26c   :  { %v375_v7 = vpop.xlane.xlu0 %374 }
 0x26d   :  { %v378_v8 = vmul.f32 0.0078125, %v375_v7  ;;  %v381_v9 = vmul.f32 %v379_v6, %v379_v6 }
 0x26f   :  { %v380_v10 = vsub.f32 %v371_v3, %v378_v8  ;;  %383 = vadd.xlane.f32.xlu1 %v381_v9 }
 0x271   :  { %v382_v11 = vmul.f32 %v380_v10, %v380_v10 }
 0x273   :  { %385 = vadd.xlane.f32.xlu1 %v382_v11 }
 0x2fc   :  { %v384_v12 = vpop.xlane.xlu1 %383 }
 0x2fd   :  { %v387_v13 = vmul.f32 0.0078125, %v384_v12 }
 0x2ff   :  { %v389_v14 = vadd.f32 1e-05, %v387_v13 }
 0x300   :  { %v386_v15 = vpop.xlane.xlu1 %385 }
 0x301   :  { %537 = vrsqrt.f32 %v389_v14  ;;  %v388_v16 = vmul.f32 0.0078125, %v386_v15 }
 0x303   :  { %v390_v17 = vadd.f32 1e-05, %v388_v16 }
 0x305   :  { %539 = vrsqrt.f32 %v390_v17 }
 0x30b   :  { %v538_v18 = vpop.eup %537 }
 0x30c   :  { %v393_v19 = vmul.f32 %v538_v18, %v379_v6 }
 0x30e   :  { %v402_v22 = vmul.f32 %v461_v20, %v393_v19 }
 0x30f   :  { %v540_v21 = vpop.eup %539 }
 0x310   :  { %v394_v23 = vmul.f32 %v540_v21, %v380_v10  ;;  %v411_v26 = vadd.f32 %v462_v24, %v402_v22 }
 0x312   :  { %v403_v25 = vmul.f32 %v461_v20, %v394_v23 }
 0x314   :  { %v412_v27 = vadd.f32 %v462_v24, %v403_v25 }
 0x316   :  { %v470_v28 = vpack.c.bf16 %v412_v27, %v411_v26 }
 0x318   :  { %471 = vst [vmem:[%s703_s7] sm:$0xff] %v470_v28  }

// kernel: transformer_forward.10
= control target key start
LH: loop header
LB: loop body
LE: loop exit
PB: predicated region body
PF: predicated region fallthrough
CT: control target
= control target key end

     0   :  { %s3396_s21 = smov 0   ;;  %s4008_s0 = inlined_call_operand.vmem [shape: bf16[2,8,128], index: 0, kind: input, shape index: {}]   ;;  %s4009_s1 = inlined_call_operand.vmem [shape: s32[2,1,8], index: 1, kind: input, shape index: {}]   ;;  %s4010_s2 = inlined_call_operand.vmem [shape: bf16[4,128,32], index: 2, kind: input, shape index: {}]   ;;  %s4011_s3 = inlined_call_operand.vmem [shape: bf16[4,128,32], index: 3, kind: input, shape index: {}]   ;;  %s4012_s4 = inlined_call_operand.vmem [shape: bf16[4,128,32], index: 4, kind: input, shape index: {}]   ;;  %s4013_s5 = inlined_call_operand.vmem [shape: f32[4,1,32], index: 5, kind: input, shape index: {}]   ;;  %s4014_s6 = inlined_call_operand.vmem [shape: f32[4,1,32], index: 6, kind: input, shape index: {}]   ;;  %s4015_s7 = inlined_call_operand.vmem [shape: f32[4,1,32], index: 7, kind: input, shape index: {}]   ;;  %s4016_s8 = inlined_call_operand.vmem [shape: bf16[128,128], index: 8, kind: input, shape index: {}]   ;;  %s4017_s9 = inlined_call_operand.vmem [shape: f32[1,128], index: 9, kind: input, shape index: {}]   ;;  %s4018_s10 = inlined_call_operand.vmem [shape: f32[1,128], index: 10, kind: input, shape index: {}]   ;;  %s4019_s11 = inlined_call_operand.vmem [shape: f32[1,128], index: 11, kind: input, shape index: {}]   ;;  %s4020_s12 = inlined_call_operand.vmem [shape: bf16[2,8,128], index: 12, kind: output, shape index: {}]  }
   0x1 LB: > { %s2450_s22 = sadd.s32 4294967295, %s3323_s21   ;;  %p2454_p0 = scmp.ge.s32.totalorder %s3323_s21, 1  ;;  %s3323_s21 = sphi %s3396_s21, %s22_s21  }
   0x2   : > { %p369_p1 = scmp.lt.s32.totalorder %s3323_s21, 3 }
   0x4   : > { %p370_p2 = pnand %p2454_p0, %p369_p1 }
   0x5   : > { %v3194_v0 = vld [vmem:[%s4011_s3] sm:$0xff] (!%p370_p2)   ;;  %v3325_v1 = vmov (!%p370_p2), 0.0   ;;  %v3195_v2 = vld [vmem:[%s4011_s3 + $0x8] sm:$0xff] (!%p370_p2)   ;;  %vm3326_vm0 = vmmov (!%p370_p2), 0   ;;  %v3197_v5 = vld [vmem:[%s4011_s3 + $0x10] sm:$0xff] (!%p370_p2)   ;;  %p412_p3 = scmp.lt.s32.totalorder (!%p370_p2), %s2450_s22, 1  ;;  %v428_v41 = vlaneseq (!%p370_p2) }
   0x6   : > { %373 = sbr.rel (%p370_p2) target bundleno = 3998 (0xf9e), region = 68  ;;  %2892 = vmatprep.subr.bf16.mxu1 (!%p370_p2), %v3325_v1  ;;  %2872 = vmatprep.subr.bf16.mxu0 (!%p370_p2), %v3325_v1  ;;  %v3196_v3 = vld [vmem:[%s4010_s2] sm:$0xff] (!%p370_p2)   ;;  %v3198_v4 = vld [vmem:[%s4010_s2 + $0x8] sm:$0xff] (!%p370_p2)   ;;  %v3200_v6 = vld [vmem:[%s4010_s2 + $0x10] sm:$0xff] (!%p370_p2)   ;;  %vm769_vm1 = vcmask (!%p370_p2), 261120   ;;  %v3327_v45 = vmov (!%p370_p2), 0  }
   0x7   : > { %2893 = vmatpush3.bf16.msra.mxu1 (!%p370_p2), %v3194_v0  ;;  %2908 = vmatprep.mubr.msk.bf16.mxu1 (!%p370_p2), %vm3326_vm0, %v3325_v1  ;;  %v3199_v7 = vld [vmem:[%s4011_s3 + $0x18] sm:$0xff] (!%p370_p2)   ;;  %v3201_v9 = vld [vmem:[%s4011_s3 + $0x20] sm:$0xff] (!%p370_p2)   ;;  %v3203_v10 = vld [vmem:[%s4011_s3 + $0x28] sm:$0xff] (!%p370_p2)   ;;  %v429_v43 = vshrl.u32 (!%p370_p2), %v428_v41, 7  ;;  %vm818_vm4 = vcmask (!%p370_p2), 64512   ;;  %vm834_vm5 = vcmask (!%p370_p2), 1043456  }
   0x8   : > { %2894 = vmatprep.subr.bf16.mxu1 (!%p370_p2), %v3325_v1  ;;  %2888 = vmatprep.mubr.msk.bf16.mxu0 (!%p370_p2), %vm3326_vm0, %v3325_v1  ;;  %v3202_v8 = vld [vmem:[%s4010_s2 + $0x18] sm:$0xff] (!%p370_p2)   ;;  %v3204_v11 = vld [vmem:[%s4010_s2 + $0x20] sm:$0xff] (!%p370_p2)   ;;  %v3206_v12 = vld [vmem:[%s4010_s2 + $0x28] sm:$0xff] (!%p370_p2)   ;;  %s3328_s27 = smov (!%p370_p2), 32   ;;  %s3329_s13 = smov (!%p370_p2), 64   ;;  %vm2238_vm6 = vcmask (!%p370_p2), 523264  }
   0x9   : > { %2873 = vmatpush3.bf16.msra.mxu0 (!%p370_p2), %v3196_v3  ;;  %v3205_v13 = vld [vmem:[%s4011_s3 + $0x30] sm:$0xff] (!%p370_p2)   ;;  %v3207_v15 = vld [vmem:[%s4011_s3 + $0x38] sm:$0xff] (!%p370_p2)   ;;  %v2466_v18 = vld [vmem:[%s4014_s6] ss:$0 sm:$0xff] (!%p370_p2)  ;;  %v430_v44 = vsub.s32 (!%p370_p2), 0, %v429_v43  ;;  %s3330_s15 = smov (!%p370_p2), 96  }
   0xa   : > { %2874 = vmatprep.subr.bf16.mxu0 (!%p370_p2), %v3325_v1  ;;  %v3208_v14 = vld [vmem:[%s4010_s2 + $0x30] sm:$0xff] (!%p370_p2)   ;;  %v3209_v16 = vld [vmem:[%s4010_s2 + $0x38] sm:$0xff] (!%p370_p2)   ;;  %v2457_v23 = vld [vmem:[%s4013_s5] ss:$0 sm:$0xff] (!%p370_p2)  ;;  %vm2241_vm7 = vcmask (!%p370_p2), 785408  }
   0xb   : > { %2895 = vmatpush3.bf16.msra.mxu1 (!%p370_p2), %v3195_v2  ;;  %v3210_v33 = vld [vmem:[%s4012_s4] sm:$0xff] (!%p370_p2)   ;;  %v3211_v34 = vld [vmem:[%s4012_s4 + $0x8] sm:$0xff] (!%p370_p2)   ;;  %v3212_v35 = vld [vmem:[%s4012_s4 + $0x10] sm:$0xff] (!%p370_p2)  }
   0xc   : > { %2896 = vmatprep.subr.bf16.mxu1 (!%p370_p2), %v3325_v1  ;;  %v3213_v36 = vld [vmem:[%s4012_s4 + $0x18] sm:$0xff] (!%p370_p2)   ;;  %v3214_v37 = vld [vmem:[%s4012_s4 + $0x20] sm:$0xff] (!%p370_p2)   ;;  %v3215_v38 = vld [vmem:[%s4012_s4 + $0x28] sm:$0xff] (!%p370_p2)  }
   0xd   : > { %2875 = vmatpush3.bf16.msra.mxu0 %v3198_v4  ;;  %s4022_s22 = smov (!%p412_p3, %s2450_s22), 1  ;;  %v3216_v39 = vld [vmem:[%s4012_s4 + $0x30] sm:$0xff]   ;;  %v3217_v40 = vld [vmem:[%s4012_s4 + $0x38] sm:$0xff]   ;;  %v3218_v61 = vld [vmem:[%s4011_s3 + $0x40] sm:$0xff]  }
   0xe   : > { %2876 = vmatprep.subr.bf16.mxu0 %v3325_v1  ;;  %s2455_s29 = sshll.u32 %s4022_s22, 2  ;;  %s418_s18 = scalar_lea.vmem %s4009_s1, %s4022_s22  ;;  %v2475_v0 = vld [vmem:[%s4015_s7] ss:$0 sm:$0xff]  ;;  %v3219_v4 = vld [vmem:[%s4011_s3 + $0x48] sm:$0xff]  }
   0xf   : > { %2897 = vmatpush3.bf16.msra.mxu1 %v3197_v5  ;;  %s3479_s24 = scalar_lea.vmem %s4008_s0, %s2455_s29  ;;  %v425_v42 = vld [vmem:[%s418_s18] sm:$0x1]  ;;  %s422_s26 = scalar_lea.vmem %s4020_s12, %s2455_s29 }
  0x10   : > { %2898 = vmatprep.subr.bf16.mxu1 %v3325_v1  ;;  %v3486_v17 = vld [vmem:[%s3479_s24] sm:$0xf]  ;;  %vm426_vm2 = vcmp.ne.s32.totalorder %v425_v42, 0 }
  0x11   : > { %2877 = vmatpush3.bf16.msra.mxu0 %v3200_v6  ;;  %v427_v46 = vsel %vm426_vm2, 1, %v3327_v45 }
  0x12   : > { %2878 = vmatprep.subr.bf16.mxu0 %v3325_v1  ;;  %v3547_v47 = vrot.slane %v427_v46, %v430_v44  ;;  %v2503_v46 = vld [vmem:[%s4013_s5 + $0x1] ss:$0 sm:$0xff] }
  0x13   : > { %2899 = vmatpush3.bf16.msra.mxu1 %v3199_v7  ;;  %v3220_v7 = vld [vmem:[%s4011_s3 + $0x50] sm:$0xff]  }
  0x14   : > { %2900 = vmatprep.subr.bf16.mxu1 %v3325_v1  ;;  %vm432_vm3 = vcmp.eq.s32.totalorder %v3547_v47, 1 }
  0x15   : > { %2879 = vmatpush3.bf16.msra.mxu0 %v3202_v8  ;;  %v3222_v8 = vld [vmem:[%s4011_s3 + $0x58] sm:$0xff]  }
  0x16   : > { %2880 = vmatprep.subr.bf16.mxu0 %v3325_v1 }
  0x17   : > { %2901 = vmatpush3.bf16.msra.mxu1 %v3201_v9  ;;  %v3224_v9 = vld [vmem:[%s4011_s3 + $0x60] sm:$0xff]  }
  0x18   : > { %2902 = vmatprep.subr.bf16.mxu1 %v3325_v1 }
  0x19   : > { %2881 = vmatpush3.bf16.msra.mxu0 %v3204_v11  ;;  %v3228_v11 = vld [vmem:[%s4011_s3 + $0x70] sm:$0xff]  }
  0x1a   : > { %2882 = vmatprep.subr.bf16.mxu0 %v3325_v1 }
  0x1b   : > { %2903 = vmatpush3.bf16.msra.mxu1 %v3203_v10  ;;  %v3226_v10 = vld [vmem:[%s4011_s3 + $0x68] sm:$0xff]  }
  0x1c   : > { %2904 = vmatprep.subr.bf16.mxu1 %v3325_v1 }
  0x1d   : > { %2883 = vmatpush3.bf16.msra.mxu0 %v3206_v12  ;;  %v3230_v12 = vld [vmem:[%s4011_s3 + $0x78] sm:$0xff]  }
  0x1e   : > { %2884 = vmatprep.subr.bf16.mxu0 %v3325_v1 }
  0x1f   : > { %2905 = vmatpush3.bf16.msra.mxu1 %v3205_v13 }
  0x20   : > { %2906 = vmatprep.subr.bf16.mxu1 %v3325_v1 }
  0x21   : > { %2885 = vmatpush3.bf16.msra.mxu0 %v3208_v14 }
  0x22   : > { %2886 = vmatprep.subr.bf16.mxu0 %v3325_v1 }
  0x23   : > { %2907 = vmatpush3.bf16.msra.mxu1 %v3207_v15 }
  0x24   : > { %2932 = vmatprep.subr.bf16.mxu1 %v3325_v1 }
  0x25   : > { %2887 = vmatpush3.bf16.msra.mxu0 %v3209_v16  ;;  %v3221_v16 = vld [vmem:[%s4010_s2 + $0x40] sm:$0xff]  }
  0x26   : > { %2909 = vmatmul.mubr.bf16.vlgmr.msra.gmra.mrb[0].mxu1 %v3486_v17  ;;  %2912 = vmatprep.subr.bf16.mxu0 %v3325_v1 }
  0x27   : > { %2934 = vmatprep.mubr.msk.bf16.mxu1 %vm3326_vm0, %v3325_v1 }
  0x28   : > { %2889 = vmatmul.mubr.bf16.vlgmr.msra.gmra.mrb[0].mxu0 %v3486_v17 }
  0x29   : > { %2928 = vmatprep.mubr.msk.bf16.mxu0 %vm3326_vm0, %v3325_v1  ;;  %2913 = vmatpush3.bf16.msra.mxu0 %v3210_v33  ;;  %v3241_v33 = vld [vmem:[%s4012_s4 + $0x78] sm:$0xff]  }
  0x2a   : > { %2914 = vmatprep.subr.bf16.mxu0 %v3325_v1 }
  0x2d   : > { %2915 = vmatpush3.bf16.msra.mxu0 %v3211_v34  ;;  %v2529_v34 = vld [vmem:[%s4014_s6 + $0x1] ss:$0 sm:$0xff] }
  0x2e   : > { %2916 = vmatprep.subr.bf16.mxu0 %v3325_v1 }
  0x31   : > { %2917 = vmatpush3.bf16.msra.mxu0 %v3212_v35 }
  0x32   : > { %2918 = vmatprep.subr.bf16.mxu0 %v3325_v1 }
  0x35   : > { %2919 = vmatpush3.bf16.msra.mxu0 %v3213_v36 }
  0x36   : > { %2920 = vmatprep.subr.bf16.mxu0 %v3325_v1 }
  0x39   : > { %2921 = vmatpush3.bf16.msra.mxu0 %v3214_v37 }
  0x3a   : > { %2922 = vmatprep.subr.bf16.mxu0 %v3325_v1 }
  0x3d   : > { %2923 = vmatpush3.bf16.msra.mxu0 %v3215_v38 }
  0x3e   : > { %2924 = vmatprep.subr.bf16.mxu0 %v3325_v1 }
  0x41   : > { %2925 = vmatpush3.bf16.msra.mxu0 %v3216_v39 }
  0x42   : > { %2926 = vmatprep.subr.bf16.mxu0 %v3325_v1 }
  0x45   : > { %2927 = vmatpush3.bf16.msra.mxu0 %v3217_v40 }
  0x46   : > { %2964 = vmatprep.subr.bf16.mxu0 %v3325_v1 }
  0x48   : > { %2929 = vmatmul.mubr.bf16.vlgmr.msra.gmra.mrb[4].mxu0 %v3486_v17 }
  0x49   : > { %2980 = vmatprep.mubr.msk.bf16.mxu0 %vm3326_vm0, %v3325_v1  ;;  %2965 = vmatpush3.bf16.msra.mxu0 %v3218_v61 }
  0x4a   : > { %2966 = vmatprep.subr.bf16.mxu0 %v3325_v1 }
  0x4d   : > { %2967 = vmatpush3.bf16.msra.mxu0 %v3219_v4 }
  0x4e   : > { %2968 = vmatprep.subr.bf16.mxu0 %v3325_v1 }
  0x51   : > { %2969 = vmatpush3.bf16.msra.mxu0 %v3220_v7 }
  0x52   : > { %2970 = vmatprep.subr.bf16.mxu0 %v3325_v1 }
  0x55   : > { %2971 = vmatpush3.bf16.msra.mxu0 %v3222_v8 }
  0x56   : > { %2972 = vmatprep.subr.bf16.mxu0 %v3325_v1 }
  0x59   : > { %2973 = vmatpush3.bf16.msra.mxu0 %v3224_v9 }
  0x5a   : > { %2974 = vmatprep.subr.bf16.mxu0 %v3325_v1 }
  0x5d   : > { %2975 = vmatpush3.bf16.msra.mxu0 %v3226_v10 }
  0x5e   : > { %2976 = vmatprep.subr.bf16.mxu0 %v3325_v1 }
  0x61   : > { %2977 = vmatpush3.bf16.msra.mxu0 %v3228_v11  ;;  %v3244_v11 = vld [vmem:[%s4010_s2 + $0x80] sm:$0xff]  }
  0x62   : > { %2978 = vmatprep.subr.bf16.mxu0 %v3325_v1 }
  0x65   : > { %2979 = vmatpush3.bf16.msra.mxu0 %v3230_v12  ;;  %v3246_v12 = vld [vmem:[%s4010_s2 + $0x88] sm:$0xff]  }
  0x66   : > { %3016 = vmatprep.subr.bf16.mxu0 %v3325_v1 }
  0x68   : > { %2981 = vmatmul.mubr.bf16.vlgmr.msra.gmra.mrb[8].mxu0 %v3486_v17 }
  0x69   : > { %3032 = vmatprep.mubr.msk.bf16.mxu0 %vm3326_vm0, %v3325_v1  ;;  %3017 = vmatpush3.bf16.msra.mxu0 %v3244_v11 }
  0x6a   : > { %3018 = vmatprep.subr.bf16.mxu0 %v3325_v1 }
  0x6d   : > { %3019 = vmatpush3.bf16.msra.mxu0 %v3246_v12 }
  0x6e   : > { %3020 = vmatprep.subr.bf16.mxu0 %v3325_v1 }
  0xf9   : > { %v650_v19 = vpop.f32.mrb[0].mxu1 }
  0xfa   : > { %v651_v20 = vadd.f32 %v2466_v18, %v650_v19  ;;  %v2910_v21 = vpop.f32.mrb[1].mxu1  ;;  %v3223_v19 = vld [vmem:[%s4010_s2 + $0x48] sm:$0xff]  }
  0xfb   : > { %v653_v22 = vpop.f32.mrb[2].mxu1  ;;  %v538_v24 = vpop.f32.mrb[0].mxu0  ;;  %v3227_v21 = vld [vmem:[%s4010_s2 + $0x58] sm:$0xff]  }
  0xfc   : > { %v656_v25 = vpack.c.bf16 %v651_v20, %v651_v20  ;;  %v2911_v26 = vpop.f32.mrb[3].mxu1  ;;  %v2890_v27 = vpop.f32.mrb[1].mxu0  ;;  %v539_v30 = vadd.f32 %v2457_v23, %v538_v24  ;;  %v3225_v20 = vld [vmem:[%s4010_s2 + $0x50] sm:$0xff]   ;;  %v3229_v22 = vld [vmem:[%s4010_s2 + $0x60] sm:$0xff]   ;;  %v3231_v23 = vld [vmem:[%s4010_s2 + $0x68] sm:$0xff]  }
  0xfd   : > { %v541_v28 = vpop.f32.mrb[2].mxu0  ;;  %v3232_v24 = vld [vmem:[%s4010_s2 + $0x70] sm:$0xff]   ;;  %v3234_v26 = vld [vmem:[%s4012_s4 + $0x40] sm:$0xff]   ;;  %v3235_v27 = vld [vmem:[%s4012_s4 + $0x48] sm:$0xff]  }
  0xfe   : > { %v774_v29 = vsel %vm769_vm1, %v656_v25, 0  ;;  %v2891_v31 = vpop.f32.mrb[3].mxu0  ;;  %v544_v32 = vpack.c.bf16 %v539_v30, %v539_v30  ;;  %v3233_v25 = vld [vmem:[%s4010_s2 + $0x78] sm:$0xff]   ;;  %v3236_v28 = vld [vmem:[%s4012_s4 + $0x50] sm:$0xff]   ;;  %v3238_v30 = vld [vmem:[%s4012_s4 + $0x60] sm:$0xff]  }
  0xff   : > { %2933 = vmatpush3.bf16.xpose.msra.mxu1 %v774_v29  ;;  %v3237_v29 = vld [vmem:[%s4012_s4 + $0x58] sm:$0xff]   ;;  %v3239_v31 = vld [vmem:[%s4012_s4 + $0x68] sm:$0xff]  }
 0x100   : > { %2938 = vmatprep.subr.bf16.mxu1 %v3325_v1 }
 0x106   : > { %2935 = vmatmul.mubr.msk.bf16.vlgmr.msra.gmra.mrb[4].mxu1 %vm769_vm1, %v544_v32  ;;  %v3240_v32 = vld [vmem:[%s4012_s4 + $0x70] sm:$0xff]  }
 0x107   : > { %2940 = vmatprep.mubr.msk.bf16.mxu1 %vm3326_vm0, %v3325_v1 }
 0x11b   : > { %v762_v60 = vpop.f32.mrb[4].mxu0 }
 0x11c   : > { %v2930_v62 = vpop.f32.mrb[5].mxu0  ;;  %v763_v3 = vadd.f32 %v2475_v0, %v762_v60 }
 0x11d   : > { %v765_v63 = vpop.f32.mrb[6].mxu0 }
 0x11e   : > { %v2931_v2 = vpop.f32.mrb[7].mxu0  ;;  %v768_v5 = vpack.c.bf16 %v763_v3, %v763_v3 }
 0x120   : > { %v836_v6 = vsel %vm834_vm5, %v768_v5, 0 }
 0x121   : > { %2939 = vmatpush3.bf16.msra.mxu1 %v836_v6 }
 0x122   : > { %2944 = vmatprep.subr.bf16.mxu1 %v3325_v1 }
 0x13b   : > { %v1100_v35 = vpop.f32.mrb[8].mxu0 }
 0x13c   : > { %v1101_v36 = vadd.f32 %v2529_v34, %v1100_v35  ;;  %v2982_v37 = vpop.f32.mrb[9].mxu0 }
 0x13d   : > { %v1103_v38 = vpop.f32.mrb[10].mxu0 }
 0x13e   : > { %v1106_v39 = vpack.c.bf16 %v1101_v36, %v1101_v36  ;;  %v2983_v40 = vpop.f32.mrb[11].mxu0 }
 0x13f   : > { %v2609_v40 = vld [vmem:[%s4014_s6 + $0x2] ss:$0 sm:$0xff] }
 0x140   : > { %v1225_v41 = vsel %vm769_vm1, %v1106_v39, 0 }
 0x1d9   : > { %v810_v48 = vpop.f32.mrb[4].mxu1 }
 0x1da   : > { %v816_v49 = vmul.f32 0.17677669, %v810_v48  ;;  %v2936_v50 = vpop.f32.mrb[5].mxu1 }
 0x1db   : > { %v813_v51 = vpop.f32.mrb[6].mxu1 }
 0x1dc   : > { %v2937_v52 = vpop.f32.mrb[7].mxu1  ;;  %v817_v53 = vsel %vm432_vm3, %v816_v49, -1e+09 }
 0x1dd   : > { %v819_v54 = vsel %vm818_vm4, %v817_v53, -inf }
 0x1de   : > { %820 = vmax.xlane.f32.xlu0 %v819_v54  ;;  %v2555_v54 = vld [vmem:[%s4015_s7 + $0x1] ss:$0 sm:$0xff] }
 0x26b   : > { %v821_v55 = vpop.xlane.xlu0 %820 }
 0x26c   : > { %v822_v56 = vsub.f32 %v817_v53, %v821_v55 }
 0x26e   : > { %v823_v57 = vmul.f32 1.442695, %v822_v56 }
 0x270   : > { %3298 = vpow2.f32 %v823_v57 }
 0x27a   : > { %v3299_v58 = vpop.eup %3298 }
 0x27b   : > { %v825_v59 = vsel %vm818_vm4, %v3299_v58, 0.0 }
 0x27c   : > { %826 = vadd.xlane.f32.xlu0 %v825_v59 }
 0x309   : > { %v827_v13 = vpop.xlane.xlu0 %826 }
 0x30a   : > { %3300 = vrcp.f32 %v827_v13  ;;  %v3248_v13 = vld [vmem:[%s4010_s2 + $0x90] sm:$0xff]  }
 0x30b   : > { %3021 = vmatpush3.bf16.msra.mxu0 %v3248_v13  ;;  %v2635_v13 = vld [vmem:[%s4015_s7 + $0x2] ss:$0 sm:$0xff] }
 0x30c   : > { %3022 = vmatprep.subr.bf16.mxu0 %v3325_v1 }
 0x314   : > { %v3301_v14 = vpop.eup %3300 }
 0x315   : > { %v829_v15 = vmul.f32 %v3301_v14, %v3299_v58  ;;  %v3250_v14 = vld [vmem:[%s4010_s2 + $0x98] sm:$0xff]  }
 0x316   : > { %3023 = vmatpush3.bf16.msra.mxu0 %v3250_v14 }
 0x317   : > { %v830_v18 = vpack.c.bf16 %v829_v15, %v829_v15  ;;  %3024 = vmatprep.subr.bf16.mxu0 %v3325_v1  ;;  %v3252_v15 = vld [vmem:[%s4010_s2 + $0xa0] sm:$0xff]  }
 0x319   : > { %2941 = vmatmul.mubr.msk.bf16.vlgmr.msra.gmra.mrb[8].mxu1 %vm818_vm4, %v830_v18  ;;  %v3256_v18 = vld [vmem:[%s4010_s2 + $0xb0] sm:$0xff]  }
 0x31a   : > { %2945 = vmatpush3.bf16.msra.mxu1 %v3221_v16  ;;  %2960 = vmatprep.mubr.msk.bf16.mxu1 %vm3326_vm0, %v3325_v1  ;;  %v3254_v16 = vld [vmem:[%s4010_s2 + $0xa8] sm:$0xff]  }
 0x31b   : > { %2946 = vmatprep.subr.bf16.mxu1 %v3325_v1  ;;  %3025 = vmatpush3.bf16.msra.mxu0 %v3252_v15 }
 0x31c   : > { %3026 = vmatprep.subr.bf16.mxu0 %v3325_v1 }
 0x31e   : > { %2947 = vmatpush3.bf16.msra.mxu1 %v3223_v19  ;;  %v3257_v19 = vld [vmem:[%s4010_s2 + $0xb8] sm:$0xff]  }
 0x31f   : > { %2948 = vmatprep.subr.bf16.mxu1 %v3325_v1  ;;  %3027 = vmatpush3.bf16.msra.mxu0 %v3254_v16  ;;  %v3267_v16 = vld [vmem:[%s4011_s3 + $0xc8] sm:$0xff]  }
 0x320   : > { %3028 = vmatprep.subr.bf16.mxu0 %v3325_v1 }
 0x322   : > { %2949 = vmatpush3.bf16.msra.mxu1 %v3225_v20 }
 0x323   : > { %2950 = vmatprep.subr.bf16.mxu1 %v3325_v1  ;;  %3029 = vmatpush3.bf16.msra.mxu0 %v3256_v18 }
 0x324   : > { %3030 = vmatprep.subr.bf16.mxu0 %v3325_v1 }
 0x326   : > { %2951 = vmatpush3.bf16.msra.mxu1 %v3227_v21 }
 0x327   : > { %2952 = vmatprep.subr.bf16.mxu1 %v3325_v1  ;;  %3031 = vmatpush3.bf16.msra.mxu0 %v3257_v19 }
 0x328   : > { %3056 = vmatprep.subr.bf16.mxu0 %v3325_v1 }
 0x32a   : > { %2953 = vmatpush3.bf16.msra.mxu1 %v3229_v22  ;;  %3033 = vmatmul.mubr.bf16.vlgmr.msra.gmra.mrb[12].mxu0 %v3486_v17 }
 0x32b   : > { %2954 = vmatprep.subr.bf16.mxu1 %v3325_v1  ;;  %3072 = vmatprep.mubr.msk.bf16.mxu0 %vm3326_vm0, %v3325_v1 }
 0x32e   : > { %2955 = vmatpush3.bf16.msra.mxu1 %v3231_v23  ;;  %v3242_v23 = vld [vmem:[%s4011_s3 + $0x80] sm:$0xff]  }
 0x32f   : > { %2956 = vmatprep.subr.bf16.mxu1 %v3325_v1 }
 0x332   : > { %2957 = vmatpush3.bf16.msra.mxu1 %v3232_v24 }
 0x333   : > { %2958 = vmatprep.subr.bf16.mxu1 %v3325_v1 }
 0x336   : > { %2959 = vmatpush3.bf16.msra.mxu1 %v3233_v25  ;;  %v3243_v25 = vld [vmem:[%s4011_s3 + $0x88] sm:$0xff]  }
 0x337   : > { %2984 = vmatprep.subr.bf16.mxu1 %v3325_v1 }
 0x339   : > { %2961 = vmatmul.mubr.bf16.vlgmr.msra.gmra.mrb[12].mxu1 %v3486_v17 }
 0x33a   : > { %2985 = vmatpush3.bf16.msra.mxu1 %v3234_v26  ;;  %3000 = vmatprep.mubr.msk.bf16.mxu1 %vm3326_vm0, %v3325_v1  ;;  %v3245_v26 = vld [vmem:[%s4011_s3 + $0x90] sm:$0xff]  }
 0x33b   : > { %2986 = vmatprep.subr.bf16.mxu1 %v3325_v1 }
 0x33e   : > { %2987 = vmatpush3.bf16.msra.mxu1 %v3235_v27  ;;  %v3247_v27 = vld [vmem:[%s4011_s3 + $0x98] sm:$0xff]  }
 0x33f   : > { %2988 = vmatprep.subr.bf16.mxu1 %v3325_v1 }
 0x342   : > { %2989 = vmatpush3.bf16.msra.mxu1 %v3236_v28  ;;  %v3249_v28 = vld [vmem:[%s4011_s3 + $0xa0] sm:$0xff]  }
 0x343   : > { %2990 = vmatprep.subr.bf16.mxu1 %v3325_v1 }
 0x346   : > { %2991 = vmatpush3.bf16.msra.mxu1 %v3237_v29  ;;  %v3251_v29 = vld [vmem:[%s4011_s3 + $0xa8] sm:$0xff]  }
 0x347   : > { %2992 = vmatprep.subr.bf16.mxu1 %v3325_v1 }
 0x34a   : > { %2993 = vmatpush3.bf16.msra.mxu1 %v3238_v30  ;;  %v3253_v30 = vld [vmem:[%s4011_s3 + $0xb0] sm:$0xff]  }
 0x34b   : > { %2994 = vmatprep.subr.bf16.mxu1 %v3325_v1 }
 0x34e   : > { %2995 = vmatpush3.bf16.msra.mxu1 %v3239_v31  ;;  %v3255_v31 = vld [vmem:[%s4011_s3 + $0xb8] sm:$0xff]  }
 0x34f   : > { %2996 = vmatprep.subr.bf16.mxu1 %v3325_v1 }
 0x352   : > { %2997 = vmatpush3.bf16.msra.mxu1 %v3240_v32 }
 0x353   : > { %2998 = vmatprep.subr.bf16.mxu1 %v3325_v1 }
 0x356   : > { %2999 = vmatpush3.bf16.msra.mxu1 %v3241_v33 }
 0x357   : > { %3004 = vmatprep.subr.bf16.mxu1 %v3325_v1 }
 0x359   : > { %3001 = vmatmul.mubr.bf16.vlgmr.msra.gmra.mrb[16].mxu1 %v3486_v17 }
 0x35a   : > { %3006 = vmatprep.mubr.msk.bf16.mxu1 %vm3326_vm0, %v3325_v1 }
 0x35f   : > { %3005 = vmatpush3.bf16.xpose.msra.mxu1 %v1225_v41 }
 0x360   : > { %3010 = vmatprep.subr.bf16.mxu1 %v3325_v1 }
 0x3ec   : > { %v3672_v42 = vpop.f32.mrb[8].mxu1 }
 0x3ed   : > { %v2942_v43 = vpop.f32.mrb[9].mxu1 }
 0x3ee   : > { %v875_v44 = vpop.f32.mrb[10].mxu1 }
 0x3ef   : > { %v2943_v45 = vpop.f32.mrb[11].mxu1 }
 0x3fd   : > { %v1435_v32 = vpop.f32.mrb[12].mxu0 }
 0x3fe   : > { %v3034_v33 = vpop.f32.mrb[13].mxu0 }
 0x3ff   : > { %v1438_v34 = vpop.f32.mrb[14].mxu0  ;;  %v3273_v33 = vld [vmem:[%s4010_s2 + $0xd0] sm:$0xff]  }
 0x400   : > { %v3035_v35 = vpop.f32.mrb[15].mxu0  ;;  %v3275_v34 = vld [vmem:[%s4010_s2 + $0xd8] sm:$0xff]  }
 0x401   : > { %v3277_v35 = vld [vmem:[%s4010_s2 + $0xe0] sm:$0xff]  }
 0x40c   : > { %v986_v48 = vpop.f32.mrb[12].mxu1 }
 0x40d   : > { %v987_v49 = vadd.f32 %v2503_v46, %v986_v48  ;;  %v2962_v50 = vpop.f32.mrb[13].mxu1  ;;  %v2583_v46 = vld [vmem:[%s4013_s5 + $0x2] ss:$0 sm:$0xff] }
 0x40e   : > { %v989_v51 = vpop.f32.mrb[14].mxu1 }
 0x40f   : > { %v992_v52 = vpack.c.bf16 %v987_v49, %v987_v49  ;;  %v2963_v53 = vpop.f32.mrb[15].mxu1  ;;  %v1436_v51 = vadd.f32 %v2583_v46, %v1435_v32  ;;  %v3271_v32 = vld [vmem:[%s4010_s2 + $0xc8] sm:$0xff]  }
 0x410   : > { %v3258_v53 = vld [vmem:[%s4012_s4 + $0x80] sm:$0xff]  }
 0x411   : > { %3007 = vmatmul.mubr.msk.bf16.vlgmr.msra.gmra.mrb[20].mxu1 %vm769_vm1, %v992_v52  ;;  %v1441_v52 = vpack.c.bf16 %v1436_v51, %v1436_v51  ;;  %3057 = vmatpush3.bf16.msra.mxu0 %v3258_v53 }
 0x412   : > { %3012 = vmatprep.mubr.msk.bf16.mxu1 %vm3326_vm0, %v3325_v1  ;;  %3058 = vmatprep.subr.bf16.mxu0 %v3325_v1 }
 0x42c   : > { %v1214_v55 = vpop.f32.mrb[16].mxu1 }
 0x42d   : > { %v1215_v56 = vadd.f32 %v2555_v54, %v1214_v55  ;;  %v3002_v57 = vpop.f32.mrb[17].mxu1  ;;  %v3259_v54 = vld [vmem:[%s4012_s4 + $0x88] sm:$0xff]   ;;  %v3260_v55 = vld [vmem:[%s4012_s4 + $0x90] sm:$0xff]  }
 0x42e   : > { %v1217_v58 = vpop.f32.mrb[18].mxu1  ;;  %3059 = vmatpush3.bf16.msra.mxu0 %v3259_v54  ;;  %v3262_v57 = vld [vmem:[%s4012_s4 + $0xa0] sm:$0xff]  }
 0x42f   : > { %v1220_v59 = vpack.c.bf16 %v1215_v56, %v1215_v56  ;;  %v3003_v60 = vpop.f32.mrb[19].mxu1  ;;  %3060 = vmatprep.subr.bf16.mxu0 %v3325_v1  ;;  %v3261_v56 = vld [vmem:[%s4012_s4 + $0x98] sm:$0xff]   ;;  %v3263_v58 = vld [vmem:[%s4012_s4 + $0xa8] sm:$0xff]   ;;  %v2663_v54 = vld [vmem:[%s4013_s5 + $0x3] ss:$0 sm:$0xff] }
 0x430   : > { %v3265_v60 = vld [vmem:[%s4012_s4 + $0xb8] sm:$0xff]  }
 0x431   : > { %v1285_v61 = vsel %vm834_vm5, %v1220_v59, 0  ;;  %v3264_v59 = vld [vmem:[%s4012_s4 + $0xb0] sm:$0xff]  }
 0x432   : > { %3011 = vmatpush3.bf16.msra.mxu1 %v1285_v61  ;;  %3061 = vmatpush3.bf16.msra.mxu0 %v3260_v55 }
 0x433   : > { %3036 = vmatprep.subr.bf16.mxu1 %v3325_v1  ;;  %3062 = vmatprep.subr.bf16.mxu0 %v3325_v1 }
 0x436   : > { %3063 = vmatpush3.bf16.msra.mxu0 %v3261_v56 }
 0x437   : > { %3064 = vmatprep.subr.bf16.mxu0 %v3325_v1 }
 0x43a   : > { %3065 = vmatpush3.bf16.msra.mxu0 %v3262_v57 }
 0x43b   : > { %3066 = vmatprep.subr.bf16.mxu0 %v3325_v1 }
 0x43e   : > { %3067 = vmatpush3.bf16.msra.mxu0 %v3263_v58 }
 0x43f   : > { %3068 = vmatprep.subr.bf16.mxu0 %v3325_v1 }
 0x442   : > { %3069 = vmatpush3.bf16.msra.mxu0 %v3264_v59 }
 0x443   : > { %3070 = vmatprep.subr.bf16.mxu0 %v3325_v1 }
 0x446   : > { %3071 = vmatpush3.bf16.msra.mxu0 %v3265_v60 }
 0x447   : > { %3108 = vmatprep.subr.bf16.mxu0 %v3325_v1 }
 0x449   : > { %3073 = vmatmul.mubr.bf16.vlgmr.msra.gmra.mrb[16].mxu0 %v3486_v17 }
 0x44a   : > { %3124 = vmatprep.mubr.msk.bf16.mxu0 %vm3326_vm0, %v3325_v1 }
 0x4e4   : > { %v1261_v62 = vpop.f32.mrb[20].mxu1 }
 0x4e5   : > { %v1267_v63 = vmul.f32 0.17677669, %v1261_v62  ;;  %v3008_v0 = vpop.f32.mrb[21].mxu1 }
 0x4e6   : > { %v1264_v2 = vpop.f32.mrb[22].mxu1 }
 0x4e7   : > { %v3009_v3 = vpop.f32.mrb[23].mxu1  ;;  %v1268_v4 = vsel %vm432_vm3, %v1267_v63, -1e+09 }
 0x4e8   : > { %v1269_v5 = vsel %vm818_vm4, %v1268_v4, -inf }
 0x4e9   : > { %1270 = vmax.xlane.f32.xlu1 %v1269_v5 }
 0x576   : > { %v1271_v6 = vpop.xlane.xlu1 %1270 }
 0x577   : > { %v1272_v7 = vsub.f32 %v1268_v4, %v1271_v6 }
 0x579   : > { %v1273_v8 = vmul.f32 1.442695, %v1272_v7 }
 0x57b   : > { %3302 = vpow2.f32 %v1273_v8 }
 0x585   : > { %v3303_v9 = vpop.eup %3302 }
 0x586   : > { %v1275_v10 = vsel %vm818_vm4, %v3303_v9, 0.0 }
 0x587   : > { %1276 = vadd.xlane.f32.xlu1 %v1275_v10  ;;  %v3266_v10 = vld [vmem:[%s4011_s3 + $0xc0] sm:$0xff]  }
 0x588   : > { %3109 = vmatpush3.bf16.msra.mxu0 %v3266_v10 }
 0x589   : > { %3110 = vmatprep.subr.bf16.mxu0 %v3325_v1 }
 0x58c   : > { %3111 = vmatpush3.bf16.msra.mxu0 %v3267_v16 }
 0x58d   : > { %3112 = vmatprep.subr.bf16.mxu0 %v3325_v1 }
 0x614   : > { %v1277_v20 = vpop.xlane.xlu1 %1276 }
 0x615   : > { %3304 = vrcp.f32 %v1277_v20  ;;  %v3268_v20 = vld [vmem:[%s4011_s3 + $0xd0] sm:$0xff]  }
 0x616   : > { %3113 = vmatpush3.bf16.msra.mxu0 %v3268_v20 }
 0x617   : > { %3114 = vmatprep.subr.bf16.mxu0 %v3325_v1 }
 0x61f   : > { %v3305_v21 = vpop.eup %3304 }
 0x620   : > { %v1279_v22 = vmul.f32 %v3305_v21, %v3303_v9  ;;  %v1663_v9 = vpop.f32.mrb[16].mxu0  ;;  %v3270_v21 = vld [vmem:[%s4011_s3 + $0xd8] sm:$0xff]  }
 0x621   : > { %v3074_v11 = vpop.f32.mrb[17].mxu0  ;;  %v1664_v15 = vadd.f32 %v2635_v13, %v1663_v9  ;;  %3115 = vmatpush3.bf16.msra.mxu0 %v3270_v21  ;;  %v2715_v13 = vld [vmem:[%s4015_s7 + $0x3] ss:$0 sm:$0xff] }
 0x622   : > { %v1280_v24 = vpack.c.bf16 %v1279_v22, %v1279_v22  ;;  %v1666_v12 = vpop.f32.mrb[18].mxu0  ;;  %3116 = vmatprep.subr.bf16.mxu0 %v3325_v1  ;;  %v3272_v22 = vld [vmem:[%s4011_s3 + $0xe0] sm:$0xff]  }
 0x623   : > { %v3075_v14 = vpop.f32.mrb[19].mxu0  ;;  %v1669_v18 = vpack.c.bf16 %v1664_v15, %v1664_v15 }
 0x624   : > { %3013 = vmatmul.mubr.msk.bf16.vlgmr.msra.gmra.mrb[24].mxu1 %vm818_vm4, %v1280_v24  ;;  %v3276_v24 = vld [vmem:[%s4011_s3 + $0xf0] sm:$0xff]  }
 0x625   : > { %3037 = vmatpush3.bf16.msra.mxu1 %v3242_v23  ;;  %3052 = vmatprep.mubr.msk.bf16.mxu1 %vm3326_vm0, %v3325_v1  ;;  %v1734_v19 = vsel %vm834_vm5, %v1669_v18, 0  ;;  %v3274_v23 = vld [vmem:[%s4011_s3 + $0xe8] sm:$0xff]  }
 0x626   : > { %3038 = vmatprep.subr.bf16.mxu1 %v3325_v1  ;;  %3117 = vmatpush3.bf16.msra.mxu0 %v3272_v22 }
 0x627   : > { %3118 = vmatprep.subr.bf16.mxu0 %v3325_v1 }
 0x629   : > { %3039 = vmatpush3.bf16.msra.mxu1 %v3243_v25  ;;  %v3278_v25 = vld [vmem:[%s4011_s3 + $0xf8] sm:$0xff]  }
 0x62a   : > { %3040 = vmatprep.subr.bf16.mxu1 %v3325_v1  ;;  %3119 = vmatpush3.bf16.msra.mxu0 %v3274_v23 }
 0x62b   : > { %3120 = vmatprep.subr.bf16.mxu0 %v3325_v1 }
 0x62d   : > { %3041 = vmatpush3.bf16.msra.mxu1 %v3245_v26  ;;  %v3852_v26 = vld [vmem:[%s3479_s24] sm:$0xf] }
 0x62e   : > { %3042 = vmatprep.subr.bf16.mxu1 %v3325_v1  ;;  %3121 = vmatpush3.bf16.msra.mxu0 %v3276_v24 }
 0x62f   : > { %3122 = vmatprep.subr.bf16.mxu0 %v3325_v1 }
 0x631   : > { %3043 = vmatpush3.bf16.msra.mxu1 %v3247_v27 }
 0x632   : > { %3044 = vmatprep.subr.bf16.mxu1 %v3325_v1  ;;  %3123 = vmatpush3.bf16.msra.mxu0 %v3278_v25 }
 0x633   : > { %3148 = vmatprep.subr.bf16.mxu0 %v3325_v1 }
 0x635   : > { %3045 = vmatpush3.bf16.msra.mxu1 %v3249_v28  ;;  %3125 = vmatmul.mubr.bf16.vlgmr.msra.gmra.mrb[20].mxu0 %v3852_v26 }
 0x636   : > { %3046 = vmatprep.subr.bf16.mxu1 %v3325_v1  ;;  %3150 = vmatprep.mubr.msk.bf16.mxu0 %vm3326_vm0, %v3325_v1 }
 0x639   : > { %3047 = vmatpush3.bf16.msra.mxu1 %v3251_v29 }
 0x63a   : > { %3048 = vmatprep.subr.bf16.mxu1 %v3325_v1 }
 0x63d   : > { %3049 = vmatpush3.bf16.msra.mxu1 %v3253_v30  ;;  %v3269_v30 = vld [vmem:[%s4010_s2 + $0xc0] sm:$0xff]  }
 0x63e   : > { %3050 = vmatprep.subr.bf16.mxu1 %v3325_v1 }
 0x641   : > { %3051 = vmatpush3.bf16.msra.mxu1 %v3255_v31 }
 0x642   : > { %3076 = vmatprep.subr.bf16.mxu1 %v3325_v1 }
 0x644   : > { %3053 = vmatmul.mubr.bf16.vlgmr.msra.gmra.mrb[28].mxu1 %v3486_v17 }
 0x645   : > { %3078 = vmatprep.mubr.msk.bf16.mxu1 %vm3326_vm0, %v3325_v1 }
 0x6f7   : > { %v3762_v36 = vpop.f32.mrb[24].mxu1 }
 0x6f8   : > { %v3014_v37 = vpop.f32.mrb[25].mxu1  ;;  %v1327_v12 = vpack.c.bf16 %v3762_v36, %v3762_v36 }
 0x6f9   : > { %v1324_v38 = vpop.f32.mrb[26].mxu1  ;;  %v3279_v37 = vld [vmem:[%s4010_s2 + $0xe8] sm:$0xff]  }
 0x6fa   : > { %v3015_v39 = vpop.f32.mrb[27].mxu1  ;;  %v3280_v38 = vld [vmem:[%s4010_s2 + $0xf0] sm:$0xff]  }
 0x6fb   : > { %v3281_v39 = vld [vmem:[%s4010_s2 + $0xf8] sm:$0xff]  }
 0x717   : > { %v1549_v41 = vpop.f32.mrb[28].mxu1 }
 0x718   : > { %v1550_v43 = vadd.f32 %v2609_v40, %v1549_v41  ;;  %v3054_v44 = vpop.f32.mrb[29].mxu1  ;;  %v2689_v40 = vld [vmem:[%s4014_s6 + $0x3] ss:$0 sm:$0xff]  ;;  %v1998_v41 = vpop.f32.mrb[20].mxu0 }
 0x719   : > { %v1552_v45 = vpop.f32.mrb[30].mxu1  ;;  %v3126_v44 = vpop.f32.mrb[21].mxu0 }
 0x71a   : > { %v1555_v48 = vpack.c.bf16 %v1550_v43, %v1550_v43  ;;  %v3055_v49 = vpop.f32.mrb[31].mxu1  ;;  %v1999_v43 = vadd.f32 %v2689_v40, %v1998_v41  ;;  %v2001_v45 = vpop.f32.mrb[22].mxu0 }
 0x71c   : > { %v1674_v50 = vsel %vm769_vm1, %v1555_v48, 0  ;;  %v2004_v46 = vpack.c.bf16 %v1999_v43, %v1999_v43  ;;  %v3127_v48 = vpop.f32.mrb[23].mxu0 }
 0x71d   : > { %3077 = vmatpush3.bf16.xpose.msra.mxu1 %v1674_v50 }
 0x71e   : > { %3082 = vmatprep.subr.bf16.mxu1 %v3325_v1  ;;  %v2123_v49 = vsel %vm769_vm1, %v2004_v46, 0 }
 0x71f   : > { %3149 = vmatpush3.bf16.xpose.msra.mxu0 %v2123_v49  ;;  %v878_v49 = vpack.c.bf16 %v3672_v42, %v3672_v42 }
 0x720   : > { %3154 = vmatprep.subr.bf16.mxu0 %v3325_v1 }
 0x724   : > { %3079 = vmatmul.mubr.msk.bf16.vlgmr.msra.gmra.mrb[32].mxu1 %vm769_vm1, %v1441_v52 }
 0x725   : > { %3084 = vmatprep.mubr.msk.bf16.mxu1 %vm3326_vm0, %v3325_v1  ;;  %3083 = vmatpush3.bf16.msra.mxu1 %v1734_v19 }
 0x726   : > { %3088 = vmatprep.subr.bf16.mxu1 %v3325_v1 }
 0x7f7   : > { %v1710_v61 = vpop.f32.mrb[32].mxu1 }
 0x7f8   : > { %v1716_v62 = vmul.f32 0.17677669, %v1710_v61  ;;  %v3080_v63 = vpop.f32.mrb[33].mxu1  ;;  %v3282_v61 = vld [vmem:[%s4012_s4 + $0xc0] sm:$0xff]  }
 0x7f9   : > { %v1713_v0 = vpop.f32.mrb[34].mxu1  ;;  %v3284_v63 = vld [vmem:[%s4012_s4 + $0xd0] sm:$0xff]  }
 0x7fa   : > { %v3081_v2 = vpop.f32.mrb[35].mxu1  ;;  %v1717_v3 = vsel %vm432_vm3, %v1716_v62, -1e+09  ;;  %v3283_v62 = vld [vmem:[%s4012_s4 + $0xc8] sm:$0xff]   ;;  %v3285_v0 = vld [vmem:[%s4012_s4 + $0xd8] sm:$0xff]  }
 0x7fb   : > { %v1718_v4 = vsel %vm818_vm4, %v1717_v3, -inf  ;;  %v3286_v2 = vld [vmem:[%s4012_s4 + $0xe0] sm:$0xff]  }
 0x7fc   : > { %1719 = vmax.xlane.f32.xlu0 %v1718_v4  ;;  %v3288_v4 = vld [vmem:[%s4012_s4 + $0xf0] sm:$0xff]  }
 0x889   : > { %v1720_v5 = vpop.xlane.xlu0 %1719 }
 0x88a   : > { %v1721_v6 = vsub.f32 %v1717_v3, %v1720_v5  ;;  %v3287_v3 = vld [vmem:[%s4012_s4 + $0xe8] sm:$0xff]   ;;  %v3289_v5 = vld [vmem:[%s4012_s4 + $0xf8] sm:$0xff]  }
 0x88c   : > { %v1722_v7 = vmul.f32 1.442695, %v1721_v6 }
 0x88e   : > { %3306 = vpow2.f32 %v1722_v7 }
 0x898   : > { %v3307_v8 = vpop.eup %3306 }
 0x899   : > { %v1724_v17 = vsel %vm818_vm4, %v3307_v8, 0.0 }
 0x89a   : > { %1725 = vadd.xlane.f32.xlu1 %v1724_v17 }
 0x927   : > { %v1726_v27 = vpop.xlane.xlu1 %1725 }
 0x928   : > { %3308 = vrcp.f32 %v1726_v27 }
 0x932   : > { %v3309_v28 = vpop.eup %3308 }
 0x933   : > { %v1728_v29 = vmul.f32 %v3309_v28, %v3307_v8 }
 0x935   : > { %v1729_v31 = vpack.c.bf16 %v1728_v29, %v1728_v29 }
 0x937   : > { %3085 = vmatmul.mubr.msk.bf16.vlgmr.msra.gmra.mrb[36].mxu1 %vm818_vm4, %v1729_v31  ;;  %v3290_v31 = vld [vmem:[%s4016_s8] sm:$0xff]  }
 0x938   : > { %3089 = vmatpush3.bf16.msra.mxu1 %v3269_v30  ;;  %3104 = vmatprep.mubr.msk.bf16.mxu1 %vm3326_vm0, %v3325_v1 }
 0x939   : > { %3090 = vmatprep.subr.bf16.mxu1 %v3325_v1 }
 0x93c   : > { %3091 = vmatpush3.bf16.msra.mxu1 %v3271_v32  ;;  %v3291_v32 = vld [vmem:[%s4016_s8 + $0x8] sm:$0xff]  }
 0x93d   : > { %3092 = vmatprep.subr.bf16.mxu1 %v3325_v1 }
 0x940   : > { %3093 = vmatpush3.bf16.msra.mxu1 %v3273_v33  ;;  %v3292_v33 = vld [vmem:[%s4016_s8 + $0x10] sm:$0xff]  }
 0x941   : > { %3094 = vmatprep.subr.bf16.mxu1 %v3325_v1 }
 0x944   : > { %3095 = vmatpush3.bf16.msra.mxu1 %v3275_v34  ;;  %v3293_v34 = vld [vmem:[%s4016_s8 + $0x18] sm:$0xff]  }
 0x945   : > { %3096 = vmatprep.subr.bf16.mxu1 %v3325_v1 }
 0x948   : > { %3097 = vmatpush3.bf16.msra.mxu1 %v3277_v35  ;;  %v3294_v35 = vld [vmem:[%s4016_s8 + $0x20] sm:$0xff]  }
 0x949   : > { %3098 = vmatprep.subr.bf16.mxu1 %v3325_v1 }
 0x94c   : > { %3099 = vmatpush3.bf16.msra.mxu1 %v3279_v37  ;;  %v3295_v37 = vld [vmem:[%s4016_s8 + $0x28] sm:$0xff]  }
 0x94d   : > { %3100 = vmatprep.subr.bf16.mxu1 %v3325_v1 }
 0x950   : > { %3101 = vmatpush3.bf16.msra.mxu1 %v3280_v38  ;;  %v3296_v38 = vld [vmem:[%s4016_s8 + $0x30] sm:$0xff]  }
 0x951   : > { %3102 = vmatprep.subr.bf16.mxu1 %v3325_v1 }
 0x954   : > { %3103 = vmatpush3.bf16.msra.mxu1 %v3281_v39  ;;  %v3297_v39 = vld [vmem:[%s4016_s8 + $0x38] sm:$0xff]  }
 0x955   : > { %3128 = vmatprep.subr.bf16.mxu1 %v3325_v1 }
 0x957   : > { %3105 = vmatmul.mubr.bf16.vlgmr.msra.gmra.mrb[40].mxu1 %v3852_v26 }
 0x958   : > { %3144 = vmatprep.mubr.msk.bf16.mxu1 %vm3326_vm0, %v3325_v1  ;;  %3129 = vmatpush3.bf16.msra.mxu1 %v3282_v61 }
 0x959   : > { %3130 = vmatprep.subr.bf16.mxu1 %v3325_v1 }
 0x95c   : > { %3131 = vmatpush3.bf16.msra.mxu1 %v3283_v62 }
 0x95d   : > { %3132 = vmatprep.subr.bf16.mxu1 %v3325_v1 }
 0x960   : > { %3133 = vmatpush3.bf16.msra.mxu1 %v3284_v63 }
 0x961   : > { %3134 = vmatprep.subr.bf16.mxu1 %v3325_v1 }
 0x964   : > { %3135 = vmatpush3.bf16.msra.mxu1 %v3285_v0 }
 0x965   : > { %3136 = vmatprep.subr.bf16.mxu1 %v3325_v1 }
 0x968   : > { %3137 = vmatpush3.bf16.msra.mxu1 %v3286_v2 }
 0x969   : > { %3138 = vmatprep.subr.bf16.mxu1 %v3325_v1 }
 0x96c   : > { %3139 = vmatpush3.bf16.msra.mxu1 %v3287_v3 }
 0x96d   : > { %3140 = vmatprep.subr.bf16.mxu1 %v3325_v1 }
 0x970   : > { %3141 = vmatpush3.bf16.msra.mxu1 %v3288_v4 }
 0x971   : > { %3142 = vmatprep.subr.bf16.mxu1 %v3325_v1 }
 0x974   : > { %3143 = vmatpush3.bf16.msra.mxu1 %v3289_v5 }
 0x977   : > { %3145 = vmatmul.mubr.bf16.vlgmr.msra.gmra.mrb[44].mxu1 %v3852_v26 }
 0xa0a   : > { %v3900_v50 = vpop.f32.mrb[36].mxu1 }
 0xa0b   : > { %v3086_v51 = vpop.f32.mrb[37].mxu1  ;;  %v1776_v25 = vpack.c.bf16 %v3900_v50, %v3900_v50 }
 0xa0c   : > { %v1773_v52 = vpop.f32.mrb[38].mxu1 }
 0xa0d   : > { %v3087_v53 = vpop.f32.mrb[39].mxu1 }
 0xa0e   : > { %v2726_v53 = vld [vmem:[%s4017_s9] ss:$0 sm:$0xff] }
 0xa2a   : > { %v1884_v55 = vpop.f32.mrb[40].mxu1 }
 0xa2b   : > { %v1885_v56 = vadd.f32 %v2663_v54, %v1884_v55  ;;  %v3106_v57 = vpop.f32.mrb[41].mxu1  ;;  %v2356_v54 = vunpack.c.l.bf16 %v3852_v26  ;;  %v2735_v26 = vld [vmem:[%s4018_s10] ss:$0 sm:$0xff] }
 0xa2c   : > { %v1887_v58 = vpop.f32.mrb[42].mxu1 }
 0xa2d   : > { %v1890_v59 = vpack.c.bf16 %v1885_v56, %v1885_v56  ;;  %v3107_v60 = vpop.f32.mrb[43].mxu1 }
 0xa2f   : > { %3151 = vmatmul.mubr.msk.bf16.vlgmr.msra.gmra.mrb[24].mxu0 %vm769_vm1, %v1890_v59 }
 0xa30   : > { %3156 = vmatprep.mubr.msk.bf16.mxu0 %vm3326_vm0, %v3325_v1 }
 0xa4a   : > { %v2112_v14 = vpop.f32.mrb[44].mxu1 }
 0xa4b   : > { %v2113_v15 = vadd.f32 %v2715_v13, %v2112_v14  ;;  %v3146_v16 = vpop.f32.mrb[45].mxu1 }
 0xa4c   : > { %v2115_v18 = vpop.f32.mrb[46].mxu1 }
 0xa4d   : > { %v2118_v20 = vpack.c.bf16 %v2113_v15, %v2113_v15  ;;  %v3147_v47 = vpop.f32.mrb[47].mxu1 }
 0xa4f   : > { %v2183_v22 = vsel %vm834_vm5, %v2118_v20, 0 }
 0xa50   : > { %3155 = vmatpush3.bf16.msra.mxu0 %v2183_v22 }
 0xa51   : > { %3160 = vmatprep.subr.bf16.mxu0 %v3325_v1 }
 0xb02   : > { %v2159_v6 = vpop.f32.mrb[24].mxu0 }
 0xb03   : > { %v2165_v7 = vmul.f32 0.17677669, %v2159_v6  ;;  %v3152_v8 = vpop.f32.mrb[25].mxu0  ;;  %v2736_v6 = vld [vmem:[%s4019_s11] ss:$0 sm:$0xff] }
 0xb04   : > { %v2162_v17 = vpop.f32.mrb[26].mxu0 }
 0xb05   : > { %v3153_v9 = vpop.f32.mrb[27].mxu0  ;;  %v2166_v10 = vsel %vm432_vm3, %v2165_v7, -1e+09 }
 0xb06   : > { %v2167_v11 = vsel %vm818_vm4, %v2166_v10, -inf }
 0xb07   : > { %2168 = vmax.xlane.f32.xlu0 %v2167_v11 }
 0xb1d   : > { %2227 = vrot.lane.b32.xlu0 %v1327_v12, %s3328_s27 }
 0xb94   : > { %v2169_v19 = vpop.xlane.xlu0 %2168 }
 0xb95   : > { %v2170_v21 = vsub.f32 %v2166_v10, %v2169_v19 }
 0xb97   : > { %v2171_v23 = vmul.f32 1.442695, %v2170_v21 }
 0xb98   : > { %v2228_v46 = vpop.permute.xlu0 %2227 }
 0xb99   : > { %3310 = vpow2.f32 %v2171_v23  ;;  %v2237_v50 = vsel %vm769_vm1, %v878_v49, %v2228_v46 }
 0xba3   : > { %v3311_v36 = vpop.eup %3310 }
 0xba4   : > { %v2173_v24 = vsel %vm818_vm4, %v3311_v36, 0.0 }
 0xba5   : > { %2174 = vadd.xlane.f32.xlu1 %v2173_v24 }
 0xbb6   : > { %2230 = vrot.lane.b32.xlu1 %v1776_v25, %s3329_s13 }
 0xc32   : > { %v2175_v27 = vpop.xlane.xlu1 %2174 }
 0xc33   : > { %3312 = vrcp.f32 %v2175_v27 }
 0xc36   : > { %v2231_v48 = vpop.permute.xlu1 %2230 }
 0xc37   : > { %v2240_v51 = vsel %vm2238_vm6, %v2237_v50, %v2231_v48 }
 0xc3d   : > { %v3313_v28 = vpop.eup %3312 }
 0xc3e   : > { %v2177_v29 = vmul.f32 %v3313_v28, %v3311_v36 }
 0xc40   : > { %v2178_v30 = vpack.c.bf16 %v2177_v29, %v2177_v29 }
 0xc42   : > { %3157 = vmatmul.mubr.msk.bf16.vlgmr.msra.gmra.mrb[28].mxu0 %vm818_vm4, %v2178_v30 }
 0xc43   : > { %3176 = vmatprep.mubr.msk.bf16.mxu0 %vm3326_vm0, %v3325_v1  ;;  %3161 = vmatpush3.bf16.msra.mxu0 %v3290_v31 }
 0xc44   : > { %3162 = vmatprep.subr.bf16.mxu0 %v3325_v1 }
 0xc47   : > { %3163 = vmatpush3.bf16.msra.mxu0 %v3291_v32 }
 0xc48   : > { %3164 = vmatprep.subr.bf16.mxu0 %v3325_v1 }
 0xc4b   : > { %3165 = vmatpush3.bf16.msra.mxu0 %v3292_v33 }
 0xc4c   : > { %3166 = vmatprep.subr.bf16.mxu0 %v3325_v1 }
 0xc4f   : > { %3167 = vmatpush3.bf16.msra.mxu0 %v3293_v34 }
 0xc50   : > { %3168 = vmatprep.subr.bf16.mxu0 %v3325_v1 }
 0xc53   : > { %3169 = vmatpush3.bf16.msra.mxu0 %v3294_v35 }
 0xc54   : > { %3170 = vmatprep.subr.bf16.mxu0 %v3325_v1 }
 0xc57   : > { %3171 = vmatpush3.bf16.msra.mxu0 %v3295_v37 }
 0xc58   : > { %3172 = vmatprep.subr.bf16.mxu0 %v3325_v1 }
 0xc5b   : > { %3173 = vmatpush3.bf16.msra.mxu0 %v3296_v38 }
 0xc5c   : > { %3174 = vmatprep.subr.bf16.mxu0 %v3325_v1 }
 0xc5f   : > { %3175 = vmatpush3.bf16.msra.mxu0 %v3297_v39 }
 0xd15   : > { %v2219_v40 = vpop.f32.mrb[28].mxu0 }
 0xd16   : > { %v2225_v41 = vpack.c.bf16 %v2219_v40, %v2219_v40  ;;  %v3158_v43 = vpop.f32.mrb[29].mxu0 }
 0xd17   : > { %v2222_v44 = vpop.f32.mrb[30].mxu0 }
 0xd18   : > { %2233 = vrot.lane.b32.xlu1 %v2225_v41, %s3330_s15  ;;  %v3159_v45 = vpop.f32.mrb[31].mxu0 }
 0xd8a   : > { %v2234_v52 = vpop.permute.xlu1 %2233 }
 0xd8b   : > { %v2243_v1 = vsel %vm2241_vm7, %v2240_v51, %v2234_v52 }
 0xd8c   : > { %3177 = vmatmul.mubr.bf16.vlgmr.msra.gmra.mrb[32].mxu0 %v2243_v1 }
 0xe5f   : > { %v2350_v55 = vpop.f32.mrb[32].mxu0 }
 0xe60   : > { %v2351_v56 = vadd.f32 %v2726_v53, %v2350_v55  ;;  %v3178_v57 = vpop.f32.mrb[33].mxu0 }
 0xe61   : > { %v2353_v58 = vpop.f32.mrb[34].mxu0 }
 0xe62   : > { %v3179_v59 = vpop.f32.mrb[35].mxu0  ;;  %v2357_v42 = vadd.f32 %v2356_v54, %v2351_v56 }
 0xe64   : > { %2358 = vadd.xlane.f32.xlu1 %v2357_v42 }
 0xef1   : > { %v2359_v60 = vpop.xlane.xlu1 %2358 }
 0xef2   : > { %v2361_v61 = vmul.f32 0.0078125, %v2359_v60 }
 0xef4   : > { %v2362_v62 = vsub.f32 %v2357_v42, %v2361_v61 }
 0xef6   : > { %v2363_v63 = vmul.f32 %v2362_v62, %v2362_v62 }
 0xef8   : > { %2364 = vadd.xlane.f32.xlu0 %v2363_v63 }
 0xf85   : > { %v2365_v0 = vpop.xlane.xlu0 %2364 }
 0xf86   : > { %v2366_v2 = vmul.f32 0.0078125, %v2365_v0 }
 0xf88   : > { %v2367_v3 = vadd.f32 1e-05, %v2366_v2 }
 0xf8a   : > { %3314 = vrsqrt.f32 %v2367_v3 }
 0xf94   : > { %v3315_v4 = vpop.eup %3314 }
 0xf95   : > { %v2369_v5 = vmul.f32 %v3315_v4, %v2362_v62 }
 0xf97   : > { %v2377_v7 = vmul.f32 %v2735_v26, %v2369_v5 }
 0xf99   : > { %v2385_v8 = vadd.f32 %v2736_v6, %v2377_v7 }
 0xf9b   : > { %v2386_v17 = vpack.c.bf16 %v2385_v8, %v2385_v8 }
 0xf9d   : > { %2387 = vst [vmem:[%s422_s26] sm:$0xf] %v2386_v17 }
 0xf9e PF: > { %s22_s21 = sadd.s32 1, %s3323_s21  }
 0xf9f   : > { %p19_p4 = scmp.ge.s32.totalorder %s22_s21, 4  }
 0xfa1   :  { %21 = sbr.rel (!%p19_p4) target bundleno = 1 (0x1), region = 119 }

// kernel: transformer_forward.19
= control target key start
LH: loop header
LB: loop body
LE: loop exit
PB: predicated region body
PF: predicated region fallthrough
CT: control target
= control target key end

     0   :  { %v581_v2 = vmov 0   ;;  %s748_s0 = inlined_call_operand.vmem [shape: bf16[16,128], index: 0, kind: input, shape index: {}]   ;;  %s749_s1 = inlined_call_operand.vmem [shape: bf16[128,256], index: 1, kind: input, shape index: {}]   ;;  %s750_s2 = inlined_call_operand.vmem [shape: f32[1,256], index: 2, kind: input, shape index: {}]   ;;  %s751_s3 = inlined_call_operand.vmem [shape: bf16[256,128], index: 3, kind: input, shape index: {}]   ;;  %s752_s4 = inlined_call_operand.vmem [shape: f32[1,128], index: 4, kind: input, shape index: {}]   ;;  %s753_s5 = inlined_call_operand.vmem [shape: f32[1,128], index: 5, kind: input, shape index: {}]   ;;  %s754_s6 = inlined_call_operand.vmem [shape: f32[1,128], index: 6, kind: input, shape index: {}]   ;;  %s755_s7 = inlined_call_operand.hbm [shape: bf16[16,128], index: 7, kind: output, shape index: {}]  }
   0x1   :  { %v511_v0 = vld [vmem:[%s749_s1 + $0x4] ss:$8 sps:$4 sm:$0xff]   ;;  %v513_v1 = vld [vmem:[%s749_s1] ss:$8 sps:$4 sm:$0xff]   ;;  %176 = vmatprep.mubr.bf16.mxu0 %v581_v2  ;;  %v514_v3 = vld [vmem:[%s749_s1 + $0x14] ss:$8 sps:$4 sm:$0xff]  }
   0x2   :  { %144 = vmatprep.subr.bf16.mxu0 %v511_v0  ;;  %v516_v4 = vld [vmem:[%s749_s1 + $0x10] ss:$8 sps:$4 sm:$0xff]   ;;  %v517_v5 = vld [vmem:[%s749_s1 + $0x24] ss:$8 sps:$4 sm:$0xff]   ;;  %v519_v6 = vld [vmem:[%s749_s1 + $0x20] ss:$8 sps:$4 sm:$0xff]  }
   0x3   :  { %145 = vmatpush1.bf16.msra.mxu0 %v513_v1  ;;  %v520_v7 = vld [vmem:[%s749_s1 + $0x34] ss:$8 sps:$4 sm:$0xff]   ;;  %v522_v8 = vld [vmem:[%s749_s1 + $0x30] ss:$8 sps:$4 sm:$0xff]   ;;  %v523_v9 = vld [vmem:[%s749_s1 + $0x44] ss:$8 sps:$4 sm:$0xff]  }
   0x4   :  { %146 = vmatprep.subr.bf16.mxu0 %v514_v3  ;;  %v536_v10 = vld [vmem:[%s751_s3 + $0x40] sm:$0xff]   ;;  %v538_v13 = vld [vmem:[%s751_s3 + $0x48] sm:$0xff]   ;;  %v540_v15 = vld [vmem:[%s751_s3 + $0x50] sm:$0xff]  }
   0x5   :  { %v537_v11 = vld [vmem:[%s751_s3] sm:$0xff]   ;;  %485 = vmatprep.subr.bf16.mxu1 %v536_v10  ;;  %v539_v14 = vld [vmem:[%s751_s3 + $0x8] sm:$0xff]   ;;  %v526_v16 = vld [vmem:[%s749_s1 + $0x54] ss:$8 sps:$4 sm:$0xff]  }
   0x6   :  { %v525_v12 = vld [vmem:[%s749_s1 + $0x40] ss:$8 sps:$4 sm:$0xff]   ;;  %486 = vmatpush3.bf16.msra.mxu1 %v537_v11  ;;  %v528_v17 = vld [vmem:[%s749_s1 + $0x50] ss:$8 sps:$4 sm:$0xff]   ;;  %v529_v20 = vld [vmem:[%s749_s1 + $0x64] ss:$8 sps:$4 sm:$0xff]  }
   0x7   :  { %147 = vmatpush1.bf16.msra.mxu0 %v516_v4  ;;  %487 = vmatprep.subr.bf16.mxu1 %v538_v13  ;;  %v541_v18 = vld [vmem:[%s751_s3 + $0x10] sm:$0xff]   ;;  %v542_v19 = vld [vmem:[%s751_s3 + $0x58] sm:$0xff]   ;;  %v531_v21 = vld [vmem:[%s749_s1 + $0x60] ss:$8 sps:$4 sm:$0xff]  }
   0x8   :  { %148 = vmatprep.subr.bf16.mxu0 %v517_v5  ;;  %v543_v22 = vld [vmem:[%s751_s3 + $0x18] sm:$0xff]   ;;  %v544_v24 = vld [vmem:[%s751_s3 + $0x60] sm:$0xff]  }
   0x9   :  { %v532_v23 = vld [vmem:[%s749_s1 + $0x74] ss:$8 sps:$4 sm:$0xff]  }
   0xa   :  { %488 = vmatpush3.bf16.msra.mxu1 %v539_v14 }
   0xb   :  { %149 = vmatpush1.bf16.msra.mxu0 %v519_v6  ;;  %489 = vmatprep.subr.bf16.mxu1 %v540_v15 }
   0xc   :  { %150 = vmatprep.subr.bf16.mxu0 %v520_v7 }
   0xe   :  { %490 = vmatpush3.bf16.msra.mxu1 %v541_v18 }
   0xf   :  { %151 = vmatpush1.bf16.msra.mxu0 %v522_v8  ;;  %491 = vmatprep.subr.bf16.mxu1 %v542_v19 }
  0x10   :  { %152 = vmatprep.subr.bf16.mxu0 %v523_v9 }
  0x13   :  { %153 = vmatpush1.bf16.msra.mxu0 %v525_v12 }
  0x14   :  { %154 = vmatprep.subr.bf16.mxu0 %v526_v16 }
  0x17   :  { %155 = vmatpush1.bf16.msra.mxu0 %v528_v17 }
  0x18   :  { %156 = vmatprep.subr.bf16.mxu0 %v529_v20 }
  0x19   :  { %12 = vsyncpa [#allocation3], 0  ;;  %492 = vmatpush3.bf16.msra.mxu1 %v543_v22  ;;  %v545_v25 = vld [vmem:[%s751_s3 + $0x20] sm:$0xff]   ;;  %v534_v26 = vld [vmem:[%s749_s1 + $0x70] ss:$8 sps:$4 sm:$0xff]   ;;  %v48_v34 = vlaneseq  ;;  %s582_s24 = smov [#allocation2]  }
  0x1a   :  { %v28_v27 = vld [vmem:[%s748_s0] sm:$0xff]   ;;  %493 = vmatprep.subr.bf16.mxu1 %v544_v24  ;;  %v546_v28 = vld [vmem:[%s751_s3 + $0x68] sm:$0xff]   ;;  %v548_v30 = vld [vmem:[%s751_s3 + $0x70] sm:$0xff]   ;;  %s429_s25 = sshll.u32 %s582_s24, 4  ;;  %s430_s25 = int_to_ptr.vmem [resolvable:$true] %s429_s25 }
  0x1b   :  { %157 = vmatpush1.bf16.msra.mxu0 %v531_v21  ;;  %v547_v29 = vld [vmem:[%s751_s3 + $0x28] sm:$0xff]   ;;  %v549_v31 = vld [vmem:[%s751_s3 + $0x30] sm:$0xff]   ;;  %v550_v32 = vld [vmem:[%s751_s3 + $0x78] sm:$0xff]   ;;  %v49_v35 = vshrl.u32 %v48_v34, 7  ;;  %v369_v60 = vunpack.c.l.bf16 %v28_v27  ;;  %v370_v2 = vunpack.c.h.bf16 %v28_v27  ;;  %s557_s26 = scalar_lea.vmem %s430_s25, 128  ;;  %p562_p1 = scmp.lt.s32.totalorder %s430_s25, %s430_s25 }
  0x1c   :  { %158 = vmatprep.subr.bf16.mxu0 %v532_v23  ;;  %v551_v33 = vld [vmem:[%s751_s3 + $0x38] sm:$0xff]   ;;  %v46_v37 = vld [vmem:[%s750_s2] sm:$0x3]  ;;  %p558_p0 = scmp.ne.s32.totalorder %s430_s25, %s557_s26  ;;  %p563_p2 = scmp.lt.s32.totalorder %s557_s26, %s557_s26 }
  0x1d   :  { %494 = vmatpush3.bf16.msra.mxu1 %v545_v25  ;;  %v50_v36 = vsub.s32 0, %v49_v35  ;;  %v54_v38 = vsub.s32 1, %v49_v35  ;;  %v457_v56 = vld [vmem:[%s752_s4] ss:$0 sm:$0xff] }
  0x1e   :  { %495 = vmatprep.subr.bf16.mxu1 %v546_v28  ;;  %v474_v20 = vld [vmem:[%s753_s5] ss:$0 sm:$0xff]  ;;  %p564_p3 = por %p563_p2, %p562_p1 }
  0x1f   :  { %159 = vmatpush1.bf16.msra.mxu0 %v534_v26  ;;  %v51_v39 = vrot.slane %v46_v37, %v50_v36  ;;  %v55_v40 = vrot.slane %v46_v37, %v54_v38  ;;  %v475_v24 = vld [vmem:[%s754_s6] ss:$0 sm:$0xff] }
  0x20   :  { %p565_p4 = pnand %p564_p3, %p558_p0 }
  0x21   :  { %496 = vmatpush3.bf16.msra.mxu1 %v547_v29 }
  0x22   :  { %177 = vmatmul.mubr.bf16.vlgmr.msra.gmra.mrb[0].mxu0 %v28_v27  ;;  %497 = vmatprep.subr.bf16.mxu1 %v548_v30 }
  0x25   :  { %498 = vmatpush3.bf16.msra.mxu1 %v549_v31 }
  0x26   :  { %499 = vmatprep.subr.bf16.mxu1 %v550_v32 }
  0x29   :  { %500 = vmatpush3.bf16.msra.mxu1 %v551_v33 }
  0xf5   :  { %v178_v41 = vpop.f32.mrb[0].mxu0 }
  0xf6   :  { %v179_v42 = vadd.f32 %v178_v41, %v51_v39  ;;  %v180_v43 = vpop.f32.mrb[1].mxu0 }
  0xf7   :  { %v181_v44 = vadd.f32 %v180_v43, %v55_v40  ;;  %v182_v45 = vpop.f32.mrb[2].mxu0 }
  0xf8   :  { %v183_v46 = vadd.f32 %v182_v45, %v51_v39  ;;  %v184_v47 = vpop.f32.mrb[3].mxu0  ;;  %v187_v49 = vmax.f32 %v179_v42, 0.0 }
  0xf9   :  { %v185_v48 = vadd.f32 %v184_v47, %v55_v40  ;;  %v188_v51 = vmax.f32 %v181_v44, 0.0 }
  0xfa   :  { %v189_v50 = vmax.f32 %v183_v46, 0.0 }
  0xfb   :  { %v190_v52 = vmax.f32 %v185_v48, 0.0 }
  0xfc   :  { %v191_v53 = vpack.c.bf16 %v189_v50, %v187_v49 }
  0xfd   :  { %v192_v54 = vpack.c.bf16 %v190_v52, %v188_v51 }
  0xff   :  { %360 = vmatprep.mubr.bf16.mxu1 %v192_v54 }
 0x100   :  { %361 = vmatmul.mubr.bf16.vlgmr.msra.gmra.mrb[0].mxu1 %v191_v53 }
 0x1d3   :  { %v501_v55 = vpop.f32.mrb[0].mxu1 }
 0x1d4   :  { %v502_v57 = vpop.f32.mrb[1].mxu1 }
 0x1d5   :  { %v503_v58 = vadd.f32 %v502_v57, %v501_v55  ;;  %v504_v59 = vpop.f32.mrb[2].mxu1 }
 0x1d6   :  { %v505_v61 = vpop.f32.mrb[3].mxu1 }
 0x1d7   :  { %v363_v62 = vadd.f32 %v503_v58, %v457_v56  ;;  %v506_v63 = vadd.f32 %v505_v61, %v504_v59 }
 0x1d9   :  { %v366_v0 = vadd.f32 %v506_v63, %v457_v56  ;;  %v371_v1 = vadd.f32 %v369_v60, %v363_v62 }
 0x1db   :  { %373 = vadd.xlane.f32.xlu0 %v371_v1  ;;  %v372_v3 = vadd.f32 %v370_v2, %v366_v0 }
 0x1df   :  { %375 = vadd.xlane.f32.xlu0 %v372_v3 }
 0x268   :  { %v374_v4 = vpop.xlane.xlu0 %373 }
 0x269   :  { %v378_v5 = vmul.f32 0.0078125, %v374_v4 }
 0x26b   :  { %v380_v6 = vsub.f32 %v371_v1, %v378_v5 }
 0x26c   :  { %v376_v7 = vpop.xlane.xlu0 %375 }
 0x26d   :  { %v379_v8 = vmul.f32 0.0078125, %v376_v7  ;;  %v382_v9 = vmul.f32 %v380_v6, %v380_v6 }
 0x26f   :  { %v381_v10 = vsub.f32 %v372_v3, %v379_v8  ;;  %384 = vadd.xlane.f32.xlu1 %v382_v9 }
 0x271   :  { %v383_v11 = vmul.f32 %v381_v10, %v381_v10 }
 0x273   :  { %386 = vadd.xlane.f32.xlu1 %v383_v11 }
 0x2fc   :  { %v385_v12 = vpop.xlane.xlu1 %384 }
 0x2fd   :  { %v388_v13 = vmul.f32 0.0078125, %v385_v12 }
 0x2ff   :  { %v390_v14 = vadd.f32 1e-05, %v388_v13 }
 0x300   :  { %v387_v15 = vpop.xlane.xlu1 %386 }
 0x301   :  { %553 = vrsqrt.f32 %v390_v14  ;;  %v389_v16 = vmul.f32 0.0078125, %v387_v15 }
 0x303   :  { %v391_v17 = vadd.f32 1e-05, %v389_v16 }
 0x305   :  { %555 = vrsqrt.f32 %v391_v17 }
 0x30b   :  { %v554_v18 = vpop.eup %553 }
 0x30c   :  { %v394_v19 = vmul.f32 %v554_v18, %v380_v6 }
 0x30e   :  { %v403_v23 = vmul.f32 %v474_v20, %v394_v19 }
 0x30f   :  { %v556_v21 = vpop.eup %555 }
 0x310   :  { %v395_v22 = vmul.f32 %v556_v21, %v381_v10  ;;  %v412_v26 = vadd.f32 %v475_v24, %v403_v23 }
 0x312   :  { %v404_v25 = vmul.f32 %v474_v20, %v395_v22 }
 0x314   :  { %v413_v27 = vadd.f32 %v475_v24, %v404_v25 }
 0x316   :  { %v483_v28 = vpack.c.bf16 %v413_v27, %v412_v26 }
 0x318   :  { %484 = vst [vmem:[#allocation2] sm:$0xff] %v483_v28  }
 0x319   :  { %568 = shalt.err (!%p565_p4)
}
 0x31a   :  { %s569_s28 = scalar_lea.hbm %s755_s7, 128 }
 0x31b   :  { %p570_p5 = scmp.ne.s32.totalorder %s755_s7, %s569_s28  ;;  %p573_p6 = scmp.lt.u32.totalorder %s569_s28, %s755_s7 }
 0x31d   :  { %p575_p7 = pnand %p573_p6, %p570_p5 }
 0x31f   :  { %578 = shalt.err (!%p575_p7)
}
 0x320   :  { %s583_s9 = smov 64   ;;  %s584_s10 = smov 4  }
 0x321   :  { %435 = dma.vmem_to_hbm [thread:$0]  %s430_s25, 128, %s755_s7, [#allocation3], %s583_s9, %s583_s9, %s584_s10  }
 0x322   :  { %579 = dma.done.wait [#allocation3], 128  }
 0x323   :  { %580 = vsyncadd [#allocation3], 4294967168 }
 0x324   :  { %439 = vsyncpa [#allocation3], 1 }

// kernel: transformer_forward.14
= control target key start
LH: loop header
LB: loop body
LE: loop exit
PB: predicated region body
PF: predicated region fallthrough
CT: control target
= control target key end

     0   :  { %s3402_s21 = smov 0   ;;  %s4015_s0 = inlined_call_operand.vmem [shape: bf16[2,8,128], index: 0, kind: input, shape index: {}]   ;;  %s4016_s1 = inlined_call_operand.vmem [shape: s32[2,1,8], index: 1, kind: input, shape index: {}]   ;;  %s4017_s2 = inlined_call_operand.vmem [shape: bf16[4,128,32], index: 2, kind: input, shape index: {}]   ;;  %s4018_s3 = inlined_call_operand.vmem [shape: bf16[4,128,32], index: 3, kind: input, shape index: {}]   ;;  %s4019_s4 = inlined_call_operand.vmem [shape: bf16[4,128,32], index: 4, kind: input, shape index: {}]   ;;  %s4020_s5 = inlined_call_operand.vmem [shape: f32[4,1,32], index: 5, kind: input, shape index: {}]   ;;  %s4021_s6 = inlined_call_operand.vmem [shape: f32[4,1,32], index: 6, kind: input, shape index: {}]   ;;  %s4022_s7 = inlined_call_operand.vmem [shape: f32[4,1,32], index: 7, kind: input, shape index: {}]   ;;  %s4023_s8 = inlined_call_operand.vmem [shape: bf16[128,128], index: 8, kind: input, shape index: {}]   ;;  %s4024_s9 = inlined_call_operand.vmem [shape: f32[1,128], index: 9, kind: input, shape index: {}]   ;;  %s4025_s10 = inlined_call_operand.vmem [shape: f32[1,128], index: 10, kind: input, shape index: {}]   ;;  %s4026_s11 = inlined_call_operand.vmem [shape: f32[1,128], index: 11, kind: input, shape index: {}]   ;;  %s4027_s12 = inlined_call_operand.vmem [shape: bf16[2,8,128], index: 12, kind: output, shape index: {}]  }
   0x1 LB: > { %s2456_s22 = sadd.s32 4294967295, %s3329_s21   ;;  %p2460_p0 = scmp.ge.s32.totalorder %s3329_s21, 1  ;;  %s3329_s21 = sphi %s3402_s21, %s22_s21  }
   0x2   : > { %p369_p1 = scmp.lt.s32.totalorder %s3329_s21, 3 }
   0x4   : > { %p370_p2 = pnand %p2460_p0, %p369_p1 }
   0x5   : > { %v3200_v0 = vld [vmem:[%s4018_s3] sm:$0xff] (!%p370_p2)   ;;  %v3331_v1 = vmov (!%p370_p2), 0.0   ;;  %v3201_v2 = vld [vmem:[%s4018_s3 + $0x8] sm:$0xff] (!%p370_p2)   ;;  %vm3332_vm0 = vmmov (!%p370_p2), 0   ;;  %v3203_v5 = vld [vmem:[%s4018_s3 + $0x10] sm:$0xff] (!%p370_p2)   ;;  %p412_p3 = scmp.lt.s32.totalorder (!%p370_p2), %s2456_s22, 1  ;;  %v428_v41 = vlaneseq (!%p370_p2) }
   0x6   : > { %373 = sbr.rel (%p370_p2) target bundleno = 3998 (0xf9e), region = 68  ;;  %2898 = vmatprep.subr.bf16.mxu1 (!%p370_p2), %v3331_v1  ;;  %2878 = vmatprep.subr.bf16.mxu0 (!%p370_p2), %v3331_v1  ;;  %v3202_v3 = vld [vmem:[%s4017_s2] sm:$0xff] (!%p370_p2)   ;;  %v3204_v4 = vld [vmem:[%s4017_s2 + $0x8] sm:$0xff] (!%p370_p2)   ;;  %v3206_v6 = vld [vmem:[%s4017_s2 + $0x10] sm:$0xff] (!%p370_p2)   ;;  %vm775_vm1 = vcmask (!%p370_p2), 261120   ;;  %v3333_v45 = vmov (!%p370_p2), 0  }
   0x7   : > { %2899 = vmatpush3.bf16.msra.mxu1 (!%p370_p2), %v3200_v0  ;;  %2914 = vmatprep.mubr.msk.bf16.mxu1 (!%p370_p2), %vm3332_vm0, %v3331_v1  ;;  %v3205_v7 = vld [vmem:[%s4018_s3 + $0x18] sm:$0xff] (!%p370_p2)   ;;  %v3207_v9 = vld [vmem:[%s4018_s3 + $0x20] sm:$0xff] (!%p370_p2)   ;;  %v3209_v10 = vld [vmem:[%s4018_s3 + $0x28] sm:$0xff] (!%p370_p2)   ;;  %v429_v43 = vshrl.u32 (!%p370_p2), %v428_v41, 7  ;;  %v436_v48 = vand.u32 (!%p370_p2), 127, %v428_v41  ;;  %vm824_vm6 = vcmask (!%p370_p2), 64512  }
   0x8   : > { %2900 = vmatprep.subr.bf16.mxu1 (!%p370_p2), %v3331_v1  ;;  %2894 = vmatprep.mubr.msk.bf16.mxu0 (!%p370_p2), %vm3332_vm0, %v3331_v1  ;;  %v3208_v8 = vld [vmem:[%s4017_s2 + $0x18] sm:$0xff] (!%p370_p2)   ;;  %v3210_v11 = vld [vmem:[%s4017_s2 + $0x20] sm:$0xff] (!%p370_p2)   ;;  %v3212_v12 = vld [vmem:[%s4017_s2 + $0x28] sm:$0xff] (!%p370_p2)   ;;  %vm840_vm7 = vcmask (!%p370_p2), 1043456   ;;  %s3334_s27 = smov (!%p370_p2), 32   ;;  %s3335_s13 = smov (!%p370_p2), 64  }
   0x9   : > { %2879 = vmatpush3.bf16.msra.mxu0 (!%p370_p2), %v3202_v3  ;;  %v3211_v13 = vld [vmem:[%s4018_s3 + $0x30] sm:$0xff] (!%p370_p2)   ;;  %v3213_v15 = vld [vmem:[%s4018_s3 + $0x38] sm:$0xff] (!%p370_p2)   ;;  %v2472_v18 = vld [vmem:[%s4021_s6] ss:$0 sm:$0xff] (!%p370_p2)  ;;  %v430_v44 = vsub.s32 (!%p370_p2), 0, %v429_v43  ;;  %vm437_vm4 = vcmp.le.s32.totalorder (!%p370_p2), %v436_v48, %v429_v43  ;;  %s3336_s15 = smov (!%p370_p2), 96  }
   0xa   : > { %2880 = vmatprep.subr.bf16.mxu0 (!%p370_p2), %v3331_v1  ;;  %v3214_v14 = vld [vmem:[%s4017_s2 + $0x30] sm:$0xff] (!%p370_p2)   ;;  %v3215_v16 = vld [vmem:[%s4017_s2 + $0x38] sm:$0xff] (!%p370_p2)   ;;  %v2463_v23 = vld [vmem:[%s4020_s5] ss:$0 sm:$0xff] (!%p370_p2)  ;;  %vm2244_vm8 = vcmask (!%p370_p2), 523264   ;;  %vm2247_vm9 = vcmask (!%p370_p2), 785408  }
   0xb   : > { %2901 = vmatpush3.bf16.msra.mxu1 (!%p370_p2), %v3201_v2  ;;  %v3216_v33 = vld [vmem:[%s4019_s4] sm:$0xff] (!%p370_p2)   ;;  %v3217_v34 = vld [vmem:[%s4019_s4 + $0x8] sm:$0xff] (!%p370_p2)   ;;  %v3218_v35 = vld [vmem:[%s4019_s4 + $0x10] sm:$0xff] (!%p370_p2)  }
   0xc   : > { %2902 = vmatprep.subr.bf16.mxu1 (!%p370_p2), %v3331_v1  ;;  %v3219_v36 = vld [vmem:[%s4019_s4 + $0x18] sm:$0xff] (!%p370_p2)   ;;  %v3220_v37 = vld [vmem:[%s4019_s4 + $0x20] sm:$0xff] (!%p370_p2)   ;;  %v3221_v38 = vld [vmem:[%s4019_s4 + $0x28] sm:$0xff] (!%p370_p2)  }
   0xd   : > { %2881 = vmatpush3.bf16.msra.mxu0 %v3204_v4  ;;  %s4031_s22 = smov (!%p412_p3, %s2456_s22), 1  ;;  %v3222_v39 = vld [vmem:[%s4019_s4 + $0x30] sm:$0xff]   ;;  %v3223_v40 = vld [vmem:[%s4019_s4 + $0x38] sm:$0xff]   ;;  %v3224_v63 = vld [vmem:[%s4018_s3 + $0x40] sm:$0xff]  }
   0xe   : > { %2882 = vmatprep.subr.bf16.mxu0 %v3331_v1  ;;  %s2461_s29 = sshll.u32 %s4031_s22, 2  ;;  %s418_s18 = scalar_lea.vmem %s4016_s1, %s4031_s22  ;;  %v2481_v3 = vld [vmem:[%s4022_s7] ss:$0 sm:$0xff]  ;;  %v2509_v48 = vld [vmem:[%s4020_s5 + $0x1] ss:$0 sm:$0xff] }
   0xf   : > { %2903 = vmatpush3.bf16.msra.mxu1 %v3203_v5  ;;  %s3485_s24 = scalar_lea.vmem %s4015_s0, %s2461_s29  ;;  %v425_v42 = vld [vmem:[%s418_s18] sm:$0x1]  ;;  %s422_s26 = scalar_lea.vmem %s4027_s12, %s2461_s29 }
  0x10   : > { %2904 = vmatprep.subr.bf16.mxu1 %v3331_v1  ;;  %v3492_v17 = vld [vmem:[%s3485_s24] sm:$0xf]  ;;  %vm426_vm2 = vcmp.ne.s32.totalorder %v425_v42, 0 }
  0x11   : > { %2883 = vmatpush3.bf16.msra.mxu0 %v3206_v6  ;;  %v427_v46 = vsel %vm426_vm2, 1, %v3333_v45  ;;  %v3225_v6 = vld [vmem:[%s4018_s3 + $0x48] sm:$0xff]  }
  0x12   : > { %2884 = vmatprep.subr.bf16.mxu0 %v3331_v1  ;;  %v431_v47 = vrot.slane %v427_v46, %v430_v44 }
  0x13   : > { %2905 = vmatpush3.bf16.msra.mxu1 %v3205_v7 }
  0x14   : > { %2906 = vmatprep.subr.bf16.mxu1 %v3331_v1  ;;  %vm432_vm3 = vcmp.eq.s32.totalorder %v431_v47, 1 }
  0x15   : > { %2885 = vmatpush3.bf16.msra.mxu0 %v3208_v8  ;;  %vm3553_vm5 = vmand %vm432_vm3, %vm437_vm4 }
  0x16   : > { %2886 = vmatprep.subr.bf16.mxu0 %v3331_v1 }
  0x17   : > { %2907 = vmatpush3.bf16.msra.mxu1 %v3207_v9  ;;  %v3226_v9 = vld [vmem:[%s4018_s3 + $0x50] sm:$0xff]  }
  0x18   : > { %2908 = vmatprep.subr.bf16.mxu1 %v3331_v1 }
  0x19   : > { %2887 = vmatpush3.bf16.msra.mxu0 %v3210_v11  ;;  %v3230_v11 = vld [vmem:[%s4018_s3 + $0x60] sm:$0xff]  }
  0x1a   : > { %2888 = vmatprep.subr.bf16.mxu0 %v3331_v1 }
  0x1b   : > { %2909 = vmatpush3.bf16.msra.mxu1 %v3209_v10  ;;  %v3228_v10 = vld [vmem:[%s4018_s3 + $0x58] sm:$0xff]  }
  0x1c   : > { %2910 = vmatprep.subr.bf16.mxu1 %v3331_v1 }
  0x1d   : > { %2889 = vmatpush3.bf16.msra.mxu0 %v3212_v12  ;;  %v3232_v12 = vld [vmem:[%s4018_s3 + $0x68] sm:$0xff]  }
  0x1e   : > { %2890 = vmatprep.subr.bf16.mxu0 %v3331_v1 }
  0x1f   : > { %2911 = vmatpush3.bf16.msra.mxu1 %v3211_v13  ;;  %v3234_v13 = vld [vmem:[%s4018_s3 + $0x70] sm:$0xff]  }
  0x20   : > { %2912 = vmatprep.subr.bf16.mxu1 %v3331_v1 }
  0x21   : > { %2891 = vmatpush3.bf16.msra.mxu0 %v3214_v14  ;;  %v3236_v14 = vld [vmem:[%s4018_s3 + $0x78] sm:$0xff]  }
  0x22   : > { %2892 = vmatprep.subr.bf16.mxu0 %v3331_v1 }
  0x23   : > { %2913 = vmatpush3.bf16.msra.mxu1 %v3213_v15 }
  0x24   : > { %2938 = vmatprep.subr.bf16.mxu1 %v3331_v1 }
  0x25   : > { %2893 = vmatpush3.bf16.msra.mxu0 %v3215_v16 }
  0x26   : > { %2915 = vmatmul.mubr.bf16.vlgmr.msra.gmra.mrb[0].mxu1 %v3492_v17  ;;  %2918 = vmatprep.subr.bf16.mxu0 %v3331_v1 }
  0x27   : > { %2940 = vmatprep.mubr.msk.bf16.mxu1 %vm3332_vm0, %v3331_v1 }
  0x28   : > { %2895 = vmatmul.mubr.bf16.vlgmr.msra.gmra.mrb[0].mxu0 %v3492_v17 }
  0x29   : > { %2934 = vmatprep.mubr.msk.bf16.mxu0 %vm3332_vm0, %v3331_v1  ;;  %2919 = vmatpush3.bf16.msra.mxu0 %v3216_v33  ;;  %v3245_v33 = vld [vmem:[%s4019_s4 + $0x68] sm:$0xff]  }
  0x2a   : > { %2920 = vmatprep.subr.bf16.mxu0 %v3331_v1 }
  0x2d   : > { %2921 = vmatpush3.bf16.msra.mxu0 %v3217_v34  ;;  %v3246_v34 = vld [vmem:[%s4019_s4 + $0x70] sm:$0xff]  }
  0x2e   : > { %2922 = vmatprep.subr.bf16.mxu0 %v3331_v1 }
  0x31   : > { %2923 = vmatpush3.bf16.msra.mxu0 %v3218_v35  ;;  %v3247_v35 = vld [vmem:[%s4019_s4 + $0x78] sm:$0xff]  }
  0x32   : > { %2924 = vmatprep.subr.bf16.mxu0 %v3331_v1 }
  0x35   : > { %2925 = vmatpush3.bf16.msra.mxu0 %v3219_v36  ;;  %v2535_v36 = vld [vmem:[%s4021_s6 + $0x1] ss:$0 sm:$0xff] }
  0x36   : > { %2926 = vmatprep.subr.bf16.mxu0 %v3331_v1 }
  0x39   : > { %2927 = vmatpush3.bf16.msra.mxu0 %v3220_v37 }
  0x3a   : > { %2928 = vmatprep.subr.bf16.mxu0 %v3331_v1 }
  0x3d   : > { %2929 = vmatpush3.bf16.msra.mxu0 %v3221_v38 }
  0x3e   : > { %2930 = vmatprep.subr.bf16.mxu0 %v3331_v1 }
  0x41   : > { %2931 = vmatpush3.bf16.msra.mxu0 %v3222_v39 }
  0x42   : > { %2932 = vmatprep.subr.bf16.mxu0 %v3331_v1 }
  0x45   : > { %2933 = vmatpush3.bf16.msra.mxu0 %v3223_v40 }
  0x46   : > { %2970 = vmatprep.subr.bf16.mxu0 %v3331_v1 }
  0x48   : > { %2935 = vmatmul.mubr.bf16.vlgmr.msra.gmra.mrb[4].mxu0 %v3492_v17 }
  0x49   : > { %2986 = vmatprep.mubr.msk.bf16.mxu0 %vm3332_vm0, %v3331_v1  ;;  %2971 = vmatpush3.bf16.msra.mxu0 %v3224_v63 }
  0x4a   : > { %2972 = vmatprep.subr.bf16.mxu0 %v3331_v1 }
  0x4d   : > { %2973 = vmatpush3.bf16.msra.mxu0 %v3225_v6 }
  0x4e   : > { %2974 = vmatprep.subr.bf16.mxu0 %v3331_v1 }
  0x51   : > { %2975 = vmatpush3.bf16.msra.mxu0 %v3226_v9 }
  0x52   : > { %2976 = vmatprep.subr.bf16.mxu0 %v3331_v1 }
  0x55   : > { %2977 = vmatpush3.bf16.msra.mxu0 %v3228_v10 }
  0x56   : > { %2978 = vmatprep.subr.bf16.mxu0 %v3331_v1 }
  0x59   : > { %2979 = vmatpush3.bf16.msra.mxu0 %v3230_v11 }
  0x5a   : > { %2980 = vmatprep.subr.bf16.mxu0 %v3331_v1 }
  0x5d   : > { %2981 = vmatpush3.bf16.msra.mxu0 %v3232_v12 }
  0x5e   : > { %2982 = vmatprep.subr.bf16.mxu0 %v3331_v1 }
  0x61   : > { %2983 = vmatpush3.bf16.msra.mxu0 %v3234_v13  ;;  %v3250_v13 = vld [vmem:[%s4017_s2 + $0x80] sm:$0xff]  }
  0x62   : > { %2984 = vmatprep.subr.bf16.mxu0 %v3331_v1 }
  0x65   : > { %2985 = vmatpush3.bf16.msra.mxu0 %v3236_v14  ;;  %v3252_v14 = vld [vmem:[%s4017_s2 + $0x88] sm:$0xff]  }
  0x66   : > { %3022 = vmatprep.subr.bf16.mxu0 %v3331_v1 }
  0x68   : > { %2987 = vmatmul.mubr.bf16.vlgmr.msra.gmra.mrb[8].mxu0 %v3492_v17 }
  0x69   : > { %3038 = vmatprep.mubr.msk.bf16.mxu0 %vm3332_vm0, %v3331_v1  ;;  %3023 = vmatpush3.bf16.msra.mxu0 %v3250_v13 }
  0x6a   : > { %3024 = vmatprep.subr.bf16.mxu0 %v3331_v1 }
  0x6d   : > { %3025 = vmatpush3.bf16.msra.mxu0 %v3252_v14 }
  0x6e   : > { %3026 = vmatprep.subr.bf16.mxu0 %v3331_v1 }
  0xf9   : > { %v656_v19 = vpop.f32.mrb[0].mxu1 }
  0xfa   : > { %v657_v20 = vadd.f32 %v2472_v18, %v656_v19  ;;  %v2916_v21 = vpop.f32.mrb[1].mxu1  ;;  %v3227_v19 = vld [vmem:[%s4017_s2 + $0x40] sm:$0xff]  }
  0xfb   : > { %v659_v22 = vpop.f32.mrb[2].mxu1  ;;  %v544_v24 = vpop.f32.mrb[0].mxu0  ;;  %v3229_v21 = vld [vmem:[%s4017_s2 + $0x48] sm:$0xff]  }
  0xfc   : > { %v662_v25 = vpack.c.bf16 %v657_v20, %v657_v20  ;;  %v2917_v26 = vpop.f32.mrb[3].mxu1  ;;  %v2896_v27 = vpop.f32.mrb[1].mxu0  ;;  %v545_v30 = vadd.f32 %v2463_v23, %v544_v24  ;;  %v3231_v22 = vld [vmem:[%s4017_s2 + $0x50] sm:$0xff]   ;;  %v3233_v23 = vld [vmem:[%s4017_s2 + $0x58] sm:$0xff]   ;;  %v3235_v24 = vld [vmem:[%s4017_s2 + $0x60] sm:$0xff]  }
  0xfd   : > { %v547_v28 = vpop.f32.mrb[2].mxu0  ;;  %v3238_v26 = vld [vmem:[%s4017_s2 + $0x70] sm:$0xff]   ;;  %v3239_v27 = vld [vmem:[%s4017_s2 + $0x78] sm:$0xff]  }
  0xfe   : > { %v780_v29 = vsel %vm775_vm1, %v662_v25, 0  ;;  %v2897_v31 = vpop.f32.mrb[3].mxu0  ;;  %v550_v32 = vpack.c.bf16 %v545_v30, %v545_v30  ;;  %v3237_v25 = vld [vmem:[%s4017_s2 + $0x68] sm:$0xff]   ;;  %v3240_v28 = vld [vmem:[%s4019_s4 + $0x40] sm:$0xff]   ;;  %v3242_v30 = vld [vmem:[%s4019_s4 + $0x50] sm:$0xff]  }
  0xff   : > { %2939 = vmatpush3.bf16.xpose.msra.mxu1 %v780_v29  ;;  %v3241_v29 = vld [vmem:[%s4019_s4 + $0x48] sm:$0xff]   ;;  %v3243_v31 = vld [vmem:[%s4019_s4 + $0x58] sm:$0xff]  }
 0x100   : > { %2944 = vmatprep.subr.bf16.mxu1 %v3331_v1 }
 0x106   : > { %2941 = vmatmul.mubr.msk.bf16.vlgmr.msra.gmra.mrb[4].mxu1 %vm775_vm1, %v550_v32  ;;  %v3244_v32 = vld [vmem:[%s4019_s4 + $0x60] sm:$0xff]  }
 0x107   : > { %2946 = vmatprep.mubr.msk.bf16.mxu1 %vm3332_vm0, %v3331_v1 }
 0x11b   : > { %v768_v62 = vpop.f32.mrb[4].mxu0 }
 0x11c   : > { %v2936_v0 = vpop.f32.mrb[5].mxu0  ;;  %v769_v5 = vadd.f32 %v2481_v3, %v768_v62 }
 0x11d   : > { %v771_v2 = vpop.f32.mrb[6].mxu0 }
 0x11e   : > { %v2937_v4 = vpop.f32.mrb[7].mxu0  ;;  %v774_v7 = vpack.c.bf16 %v769_v5, %v769_v5 }
 0x120   : > { %v842_v8 = vsel %vm840_vm7, %v774_v7, 0 }
 0x121   : > { %2945 = vmatpush3.bf16.msra.mxu1 %v842_v8 }
 0x122   : > { %2950 = vmatprep.subr.bf16.mxu1 %v3331_v1 }
 0x13b   : > { %v1106_v37 = vpop.f32.mrb[8].mxu0 }
 0x13c   : > { %v1107_v38 = vadd.f32 %v2535_v36, %v1106_v37  ;;  %v2988_v39 = vpop.f32.mrb[9].mxu0 }
 0x13d   : > { %v1109_v40 = vpop.f32.mrb[10].mxu0 }
 0x13e   : > { %v1112_v41 = vpack.c.bf16 %v1107_v38, %v1107_v38  ;;  %v2989_v42 = vpop.f32.mrb[11].mxu0 }
 0x13f   : > { %v2615_v42 = vld [vmem:[%s4021_s6 + $0x2] ss:$0 sm:$0xff] }
 0x140   : > { %v1231_v43 = vsel %vm775_vm1, %v1112_v41, 0 }
 0x1d9   : > { %v816_v49 = vpop.f32.mrb[4].mxu1 }
 0x1da   : > { %v822_v51 = vmul.f32 0.17677669, %v816_v49  ;;  %v2942_v52 = vpop.f32.mrb[5].mxu1 }
 0x1db   : > { %v819_v53 = vpop.f32.mrb[6].mxu1 }
 0x1dc   : > { %v2943_v54 = vpop.f32.mrb[7].mxu1  ;;  %v823_v55 = vsel %vm3553_vm5, %v822_v51, -1e+09 }
 0x1dd   : > { %v825_v56 = vsel %vm824_vm6, %v823_v55, -inf }
 0x1de   : > { %826 = vmax.xlane.f32.xlu0 %v825_v56  ;;  %v2561_v56 = vld [vmem:[%s4022_s7 + $0x1] ss:$0 sm:$0xff] }
 0x26b   : > { %v827_v57 = vpop.xlane.xlu0 %826 }
 0x26c   : > { %v828_v58 = vsub.f32 %v823_v55, %v827_v57 }
 0x26e   : > { %v829_v59 = vmul.f32 1.442695, %v828_v58 }
 0x270   : > { %3304 = vpow2.f32 %v829_v59 }
 0x27a   : > { %v3305_v60 = vpop.eup %3304 }
 0x27b   : > { %v831_v61 = vsel %vm824_vm6, %v3305_v60, 0.0 }
 0x27c   : > { %832 = vadd.xlane.f32.xlu0 %v831_v61 }
 0x309   : > { %v833_v15 = vpop.xlane.xlu0 %832 }
 0x30a   : > { %3306 = vrcp.f32 %v833_v15  ;;  %v3254_v15 = vld [vmem:[%s4017_s2 + $0x90] sm:$0xff]  }
 0x30b   : > { %3027 = vmatpush3.bf16.msra.mxu0 %v3254_v15  ;;  %v2641_v15 = vld [vmem:[%s4022_s7 + $0x2] ss:$0 sm:$0xff] }
 0x30c   : > { %3028 = vmatprep.subr.bf16.mxu0 %v3331_v1 }
 0x314   : > { %v3307_v16 = vpop.eup %3306 }
 0x315   : > { %v835_v18 = vmul.f32 %v3307_v16, %v3305_v60  ;;  %v3256_v16 = vld [vmem:[%s4017_s2 + $0x98] sm:$0xff]  }
 0x316   : > { %3029 = vmatpush3.bf16.msra.mxu0 %v3256_v16 }
 0x317   : > { %v836_v20 = vpack.c.bf16 %v835_v18, %v835_v18  ;;  %3030 = vmatprep.subr.bf16.mxu0 %v3331_v1  ;;  %v3258_v18 = vld [vmem:[%s4017_s2 + $0xa0] sm:$0xff]  }
 0x319   : > { %2947 = vmatmul.mubr.msk.bf16.vlgmr.msra.gmra.mrb[8].mxu1 %vm824_vm6, %v836_v20  ;;  %v3262_v20 = vld [vmem:[%s4017_s2 + $0xb0] sm:$0xff]  }
 0x31a   : > { %2951 = vmatpush3.bf16.msra.mxu1 %v3227_v19  ;;  %2966 = vmatprep.mubr.msk.bf16.mxu1 %vm3332_vm0, %v3331_v1  ;;  %v3260_v19 = vld [vmem:[%s4017_s2 + $0xa8] sm:$0xff]  }
 0x31b   : > { %2952 = vmatprep.subr.bf16.mxu1 %v3331_v1  ;;  %3031 = vmatpush3.bf16.msra.mxu0 %v3258_v18 }
 0x31c   : > { %3032 = vmatprep.subr.bf16.mxu0 %v3331_v1 }
 0x31e   : > { %2953 = vmatpush3.bf16.msra.mxu1 %v3229_v21  ;;  %v3263_v21 = vld [vmem:[%s4017_s2 + $0xb8] sm:$0xff]  }
 0x31f   : > { %2954 = vmatprep.subr.bf16.mxu1 %v3331_v1  ;;  %3033 = vmatpush3.bf16.msra.mxu0 %v3260_v19  ;;  %v3273_v19 = vld [vmem:[%s4018_s3 + $0xc8] sm:$0xff]  }
 0x320   : > { %3034 = vmatprep.subr.bf16.mxu0 %v3331_v1 }
 0x322   : > { %2955 = vmatpush3.bf16.msra.mxu1 %v3231_v22 }
 0x323   : > { %2956 = vmatprep.subr.bf16.mxu1 %v3331_v1  ;;  %3035 = vmatpush3.bf16.msra.mxu0 %v3262_v20 }
 0x324   : > { %3036 = vmatprep.subr.bf16.mxu0 %v3331_v1 }
 0x326   : > { %2957 = vmatpush3.bf16.msra.mxu1 %v3233_v23 }
 0x327   : > { %2958 = vmatprep.subr.bf16.mxu1 %v3331_v1  ;;  %3037 = vmatpush3.bf16.msra.mxu0 %v3263_v21 }
 0x328   : > { %3062 = vmatprep.subr.bf16.mxu0 %v3331_v1 }
 0x32a   : > { %2959 = vmatpush3.bf16.msra.mxu1 %v3235_v24  ;;  %3039 = vmatmul.mubr.bf16.vlgmr.msra.gmra.mrb[12].mxu0 %v3492_v17 }
 0x32b   : > { %2960 = vmatprep.subr.bf16.mxu1 %v3331_v1  ;;  %3078 = vmatprep.mubr.msk.bf16.mxu0 %vm3332_vm0, %v3331_v1 }
 0x32e   : > { %2961 = vmatpush3.bf16.msra.mxu1 %v3237_v25  ;;  %v3248_v25 = vld [vmem:[%s4018_s3 + $0x80] sm:$0xff]  }
 0x32f   : > { %2962 = vmatprep.subr.bf16.mxu1 %v3331_v1 }
 0x332   : > { %2963 = vmatpush3.bf16.msra.mxu1 %v3238_v26 }
 0x333   : > { %2964 = vmatprep.subr.bf16.mxu1 %v3331_v1 }
 0x336   : > { %2965 = vmatpush3.bf16.msra.mxu1 %v3239_v27  ;;  %v3249_v27 = vld [vmem:[%s4018_s3 + $0x88] sm:$0xff]  }
 0x337   : > { %2990 = vmatprep.subr.bf16.mxu1 %v3331_v1 }
 0x339   : > { %2967 = vmatmul.mubr.bf16.vlgmr.msra.gmra.mrb[12].mxu1 %v3492_v17 }
 0x33a   : > { %2991 = vmatpush3.bf16.msra.mxu1 %v3240_v28  ;;  %3006 = vmatprep.mubr.msk.bf16.mxu1 %vm3332_vm0, %v3331_v1  ;;  %v3251_v28 = vld [vmem:[%s4018_s3 + $0x90] sm:$0xff]  }
 0x33b   : > { %2992 = vmatprep.subr.bf16.mxu1 %v3331_v1 }
 0x33e   : > { %2993 = vmatpush3.bf16.msra.mxu1 %v3241_v29  ;;  %v3253_v29 = vld [vmem:[%s4018_s3 + $0x98] sm:$0xff]  }
 0x33f   : > { %2994 = vmatprep.subr.bf16.mxu1 %v3331_v1 }
 0x342   : > { %2995 = vmatpush3.bf16.msra.mxu1 %v3242_v30  ;;  %v3255_v30 = vld [vmem:[%s4018_s3 + $0xa0] sm:$0xff]  }
 0x343   : > { %2996 = vmatprep.subr.bf16.mxu1 %v3331_v1 }
 0x346   : > { %2997 = vmatpush3.bf16.msra.mxu1 %v3243_v31  ;;  %v3257_v31 = vld [vmem:[%s4018_s3 + $0xa8] sm:$0xff]  }
 0x347   : > { %2998 = vmatprep.subr.bf16.mxu1 %v3331_v1 }
 0x34a   : > { %2999 = vmatpush3.bf16.msra.mxu1 %v3244_v32  ;;  %v3259_v32 = vld [vmem:[%s4018_s3 + $0xb0] sm:$0xff]  }
 0x34b   : > { %3000 = vmatprep.subr.bf16.mxu1 %v3331_v1 }
 0x34e   : > { %3001 = vmatpush3.bf16.msra.mxu1 %v3245_v33  ;;  %v3261_v33 = vld [vmem:[%s4018_s3 + $0xb8] sm:$0xff]  }
 0x34f   : > { %3002 = vmatprep.subr.bf16.mxu1 %v3331_v1 }
 0x352   : > { %3003 = vmatpush3.bf16.msra.mxu1 %v3246_v34 }
 0x353   : > { %3004 = vmatprep.subr.bf16.mxu1 %v3331_v1 }
 0x356   : > { %3005 = vmatpush3.bf16.msra.mxu1 %v3247_v35 }
 0x357   : > { %3010 = vmatprep.subr.bf16.mxu1 %v3331_v1 }
 0x359   : > { %3007 = vmatmul.mubr.bf16.vlgmr.msra.gmra.mrb[16].mxu1 %v3492_v17 }
 0x35a   : > { %3012 = vmatprep.mubr.msk.bf16.mxu1 %vm3332_vm0, %v3331_v1 }
 0x35f   : > { %3011 = vmatpush3.bf16.xpose.msra.mxu1 %v1231_v43 }
 0x360   : > { %3016 = vmatprep.subr.bf16.mxu1 %v3331_v1 }
 0x3ec   : > { %v3679_v44 = vpop.f32.mrb[8].mxu1 }
 0x3ed   : > { %v2948_v45 = vpop.f32.mrb[9].mxu1 }
 0x3ee   : > { %v881_v46 = vpop.f32.mrb[10].mxu1 }
 0x3ef   : > { %v2949_v47 = vpop.f32.mrb[11].mxu1 }
 0x3fd   : > { %v1441_v34 = vpop.f32.mrb[12].mxu0 }
 0x3fe   : > { %v3040_v35 = vpop.f32.mrb[13].mxu0 }
 0x3ff   : > { %v1444_v36 = vpop.f32.mrb[14].mxu0  ;;  %v3279_v35 = vld [vmem:[%s4017_s2 + $0xd0] sm:$0xff]  }
 0x400   : > { %v3041_v37 = vpop.f32.mrb[15].mxu0  ;;  %v3281_v36 = vld [vmem:[%s4017_s2 + $0xd8] sm:$0xff]  }
 0x401   : > { %v3283_v37 = vld [vmem:[%s4017_s2 + $0xe0] sm:$0xff]  }
 0x40c   : > { %v992_v49 = vpop.f32.mrb[12].mxu1 }
 0x40d   : > { %v993_v51 = vadd.f32 %v2509_v48, %v992_v49  ;;  %v2968_v52 = vpop.f32.mrb[13].mxu1  ;;  %v2589_v48 = vld [vmem:[%s4020_s5 + $0x2] ss:$0 sm:$0xff] }
 0x40e   : > { %v995_v53 = vpop.f32.mrb[14].mxu1 }
 0x40f   : > { %v998_v54 = vpack.c.bf16 %v993_v51, %v993_v51  ;;  %v2969_v55 = vpop.f32.mrb[15].mxu1  ;;  %v1442_v53 = vadd.f32 %v2589_v48, %v1441_v34  ;;  %v3277_v34 = vld [vmem:[%s4017_s2 + $0xc8] sm:$0xff]  }
 0x410   : > { %v3264_v55 = vld [vmem:[%s4019_s4 + $0x80] sm:$0xff]  }
 0x411   : > { %3013 = vmatmul.mubr.msk.bf16.vlgmr.msra.gmra.mrb[20].mxu1 %vm775_vm1, %v998_v54  ;;  %v1447_v54 = vpack.c.bf16 %v1442_v53, %v1442_v53  ;;  %3063 = vmatpush3.bf16.msra.mxu0 %v3264_v55 }
 0x412   : > { %3018 = vmatprep.mubr.msk.bf16.mxu1 %vm3332_vm0, %v3331_v1  ;;  %3064 = vmatprep.subr.bf16.mxu0 %v3331_v1 }
 0x42c   : > { %v1220_v57 = vpop.f32.mrb[16].mxu1 }
 0x42d   : > { %v1221_v58 = vadd.f32 %v2561_v56, %v1220_v57  ;;  %v3008_v59 = vpop.f32.mrb[17].mxu1  ;;  %v3265_v56 = vld [vmem:[%s4019_s4 + $0x88] sm:$0xff]   ;;  %v3266_v57 = vld [vmem:[%s4019_s4 + $0x90] sm:$0xff]  }
 0x42e   : > { %v1223_v60 = vpop.f32.mrb[18].mxu1  ;;  %3065 = vmatpush3.bf16.msra.mxu0 %v3265_v56  ;;  %v3268_v59 = vld [vmem:[%s4019_s4 + $0xa0] sm:$0xff]  }
 0x42f   : > { %v1226_v61 = vpack.c.bf16 %v1221_v58, %v1221_v58  ;;  %v3009_v62 = vpop.f32.mrb[19].mxu1  ;;  %3066 = vmatprep.subr.bf16.mxu0 %v3331_v1  ;;  %v3267_v58 = vld [vmem:[%s4019_s4 + $0x98] sm:$0xff]   ;;  %v3269_v60 = vld [vmem:[%s4019_s4 + $0xa8] sm:$0xff]   ;;  %v2669_v56 = vld [vmem:[%s4020_s5 + $0x3] ss:$0 sm:$0xff] }
 0x430   : > { %v3271_v62 = vld [vmem:[%s4019_s4 + $0xb8] sm:$0xff]  }
 0x431   : > { %v1291_v63 = vsel %vm840_vm7, %v1226_v61, 0  ;;  %v3270_v61 = vld [vmem:[%s4019_s4 + $0xb0] sm:$0xff]  }
 0x432   : > { %3017 = vmatpush3.bf16.msra.mxu1 %v1291_v63  ;;  %3067 = vmatpush3.bf16.msra.mxu0 %v3266_v57 }
 0x433   : > { %3042 = vmatprep.subr.bf16.mxu1 %v3331_v1  ;;  %3068 = vmatprep.subr.bf16.mxu0 %v3331_v1 }
 0x436   : > { %3069 = vmatpush3.bf16.msra.mxu0 %v3267_v58 }
 0x437   : > { %3070 = vmatprep.subr.bf16.mxu0 %v3331_v1 }
 0x43a   : > { %3071 = vmatpush3.bf16.msra.mxu0 %v3268_v59 }
 0x43b   : > { %3072 = vmatprep.subr.bf16.mxu0 %v3331_v1 }
 0x43e   : > { %3073 = vmatpush3.bf16.msra.mxu0 %v3269_v60 }
 0x43f   : > { %3074 = vmatprep.subr.bf16.mxu0 %v3331_v1 }
 0x442   : > { %3075 = vmatpush3.bf16.msra.mxu0 %v3270_v61 }
 0x443   : > { %3076 = vmatprep.subr.bf16.mxu0 %v3331_v1 }
 0x446   : > { %3077 = vmatpush3.bf16.msra.mxu0 %v3271_v62 }
 0x447   : > { %3114 = vmatprep.subr.bf16.mxu0 %v3331_v1 }
 0x449   : > { %3079 = vmatmul.mubr.bf16.vlgmr.msra.gmra.mrb[16].mxu0 %v3492_v17 }
 0x44a   : > { %3130 = vmatprep.mubr.msk.bf16.mxu0 %vm3332_vm0, %v3331_v1 }
 0x4e4   : > { %v1267_v0 = vpop.f32.mrb[20].mxu1 }
 0x4e5   : > { %v1273_v2 = vmul.f32 0.17677669, %v1267_v0  ;;  %v3014_v3 = vpop.f32.mrb[21].mxu1 }
 0x4e6   : > { %v1270_v4 = vpop.f32.mrb[22].mxu1 }
 0x4e7   : > { %v3015_v5 = vpop.f32.mrb[23].mxu1  ;;  %v1274_v6 = vsel %vm3553_vm5, %v1273_v2, -1e+09 }
 0x4e8   : > { %v1275_v7 = vsel %vm824_vm6, %v1274_v6, -inf }
 0x4e9   : > { %1276 = vmax.xlane.f32.xlu1 %v1275_v7 }
 0x576   : > { %v1277_v8 = vpop.xlane.xlu1 %1276 }
 0x577   : > { %v1278_v9 = vsub.f32 %v1274_v6, %v1277_v8 }
 0x579   : > { %v1279_v10 = vmul.f32 1.442695, %v1278_v9 }
 0x57b   : > { %3308 = vpow2.f32 %v1279_v10 }
 0x585   : > { %v3309_v11 = vpop.eup %3308 }
 0x586   : > { %v1281_v12 = vsel %vm824_vm6, %v3309_v11, 0.0 }
 0x587   : > { %1282 = vadd.xlane.f32.xlu1 %v1281_v12  ;;  %v3272_v12 = vld [vmem:[%s4018_s3 + $0xc0] sm:$0xff]  }
 0x588   : > { %3115 = vmatpush3.bf16.msra.mxu0 %v3272_v12 }
 0x589   : > { %3116 = vmatprep.subr.bf16.mxu0 %v3331_v1 }
 0x58c   : > { %3117 = vmatpush3.bf16.msra.mxu0 %v3273_v19 }
 0x58d   : > { %3118 = vmatprep.subr.bf16.mxu0 %v3331_v1 }
 0x614   : > { %v1283_v22 = vpop.xlane.xlu1 %1282 }
 0x615   : > { %3310 = vrcp.f32 %v1283_v22  ;;  %v3274_v22 = vld [vmem:[%s4018_s3 + $0xd0] sm:$0xff]  }
 0x616   : > { %3119 = vmatpush3.bf16.msra.mxu0 %v3274_v22 }
 0x617   : > { %3120 = vmatprep.subr.bf16.mxu0 %v3331_v1 }
 0x61f   : > { %v3311_v23 = vpop.eup %3310 }
 0x620   : > { %v1285_v24 = vmul.f32 %v3311_v23, %v3309_v11  ;;  %v1669_v11 = vpop.f32.mrb[16].mxu0  ;;  %v3276_v23 = vld [vmem:[%s4018_s3 + $0xd8] sm:$0xff]  }
 0x621   : > { %v3080_v13 = vpop.f32.mrb[17].mxu0  ;;  %v1670_v18 = vadd.f32 %v2641_v15, %v1669_v11  ;;  %3121 = vmatpush3.bf16.msra.mxu0 %v3276_v23  ;;  %v2721_v15 = vld [vmem:[%s4022_s7 + $0x3] ss:$0 sm:$0xff] }
 0x622   : > { %v1286_v26 = vpack.c.bf16 %v1285_v24, %v1285_v24  ;;  %v1672_v14 = vpop.f32.mrb[18].mxu0  ;;  %3122 = vmatprep.subr.bf16.mxu0 %v3331_v1  ;;  %v3278_v24 = vld [vmem:[%s4018_s3 + $0xe0] sm:$0xff]  }
 0x623   : > { %v3081_v16 = vpop.f32.mrb[19].mxu0  ;;  %v1675_v20 = vpack.c.bf16 %v1670_v18, %v1670_v18 }
 0x624   : > { %3019 = vmatmul.mubr.msk.bf16.vlgmr.msra.gmra.mrb[24].mxu1 %vm824_vm6, %v1286_v26  ;;  %v3282_v26 = vld [vmem:[%s4018_s3 + $0xf0] sm:$0xff]  }
 0x625   : > { %3043 = vmatpush3.bf16.msra.mxu1 %v3248_v25  ;;  %3058 = vmatprep.mubr.msk.bf16.mxu1 %vm3332_vm0, %v3331_v1  ;;  %v1740_v21 = vsel %vm840_vm7, %v1675_v20, 0  ;;  %v3280_v25 = vld [vmem:[%s4018_s3 + $0xe8] sm:$0xff]  }
 0x626   : > { %3044 = vmatprep.subr.bf16.mxu1 %v3331_v1  ;;  %3123 = vmatpush3.bf16.msra.mxu0 %v3278_v24 }
 0x627   : > { %3124 = vmatprep.subr.bf16.mxu0 %v3331_v1 }
 0x629   : > { %3045 = vmatpush3.bf16.msra.mxu1 %v3249_v27  ;;  %v3284_v27 = vld [vmem:[%s4018_s3 + $0xf8] sm:$0xff]  }
 0x62a   : > { %3046 = vmatprep.subr.bf16.mxu1 %v3331_v1  ;;  %3125 = vmatpush3.bf16.msra.mxu0 %v3280_v25 }
 0x62b   : > { %3126 = vmatprep.subr.bf16.mxu0 %v3331_v1 }
 0x62d   : > { %3047 = vmatpush3.bf16.msra.mxu1 %v3251_v28  ;;  %v3859_v28 = vld [vmem:[%s3485_s24] sm:$0xf] }
 0x62e   : > { %3048 = vmatprep.subr.bf16.mxu1 %v3331_v1  ;;  %3127 = vmatpush3.bf16.msra.mxu0 %v3282_v26 }
 0x62f   : > { %3128 = vmatprep.subr.bf16.mxu0 %v3331_v1 }
 0x631   : > { %3049 = vmatpush3.bf16.msra.mxu1 %v3253_v29 }
 0x632   : > { %3050 = vmatprep.subr.bf16.mxu1 %v3331_v1  ;;  %3129 = vmatpush3.bf16.msra.mxu0 %v3284_v27 }
 0x633   : > { %3154 = vmatprep.subr.bf16.mxu0 %v3331_v1 }
 0x635   : > { %3051 = vmatpush3.bf16.msra.mxu1 %v3255_v30  ;;  %3131 = vmatmul.mubr.bf16.vlgmr.msra.gmra.mrb[20].mxu0 %v3859_v28 }
 0x636   : > { %3052 = vmatprep.subr.bf16.mxu1 %v3331_v1  ;;  %3156 = vmatprep.mubr.msk.bf16.mxu0 %vm3332_vm0, %v3331_v1 }
 0x639   : > { %3053 = vmatpush3.bf16.msra.mxu1 %v3257_v31 }
 0x63a   : > { %3054 = vmatprep.subr.bf16.mxu1 %v3331_v1 }
 0x63d   : > { %3055 = vmatpush3.bf16.msra.mxu1 %v3259_v32  ;;  %v3275_v32 = vld [vmem:[%s4017_s2 + $0xc0] sm:$0xff]  }
 0x63e   : > { %3056 = vmatprep.subr.bf16.mxu1 %v3331_v1 }
 0x641   : > { %3057 = vmatpush3.bf16.msra.mxu1 %v3261_v33 }
 0x642   : > { %3082 = vmatprep.subr.bf16.mxu1 %v3331_v1 }
 0x644   : > { %3059 = vmatmul.mubr.bf16.vlgmr.msra.gmra.mrb[28].mxu1 %v3492_v17 }
 0x645   : > { %3084 = vmatprep.mubr.msk.bf16.mxu1 %vm3332_vm0, %v3331_v1 }
 0x6f7   : > { %v3769_v38 = vpop.f32.mrb[24].mxu1 }
 0x6f8   : > { %v3020_v39 = vpop.f32.mrb[25].mxu1  ;;  %v1333_v14 = vpack.c.bf16 %v3769_v38, %v3769_v38 }
 0x6f9   : > { %v1330_v40 = vpop.f32.mrb[26].mxu1  ;;  %v3285_v39 = vld [vmem:[%s4017_s2 + $0xe8] sm:$0xff]  }
 0x6fa   : > { %v3021_v41 = vpop.f32.mrb[27].mxu1  ;;  %v3286_v40 = vld [vmem:[%s4017_s2 + $0xf0] sm:$0xff]  }
 0x6fb   : > { %v3287_v41 = vld [vmem:[%s4017_s2 + $0xf8] sm:$0xff]  }
 0x717   : > { %v1555_v43 = vpop.f32.mrb[28].mxu1 }
 0x718   : > { %v1556_v45 = vadd.f32 %v2615_v42, %v1555_v43  ;;  %v3060_v46 = vpop.f32.mrb[29].mxu1  ;;  %v2695_v42 = vld [vmem:[%s4021_s6 + $0x3] ss:$0 sm:$0xff]  ;;  %v2004_v43 = vpop.f32.mrb[20].mxu0 }
 0x719   : > { %v1558_v47 = vpop.f32.mrb[30].mxu1  ;;  %v3132_v46 = vpop.f32.mrb[21].mxu0 }
 0x71a   : > { %v1561_v49 = vpack.c.bf16 %v1556_v45, %v1556_v45  ;;  %v3061_v51 = vpop.f32.mrb[31].mxu1  ;;  %v2005_v45 = vadd.f32 %v2695_v42, %v2004_v43  ;;  %v2007_v47 = vpop.f32.mrb[22].mxu0 }
 0x71c   : > { %v1680_v52 = vsel %vm775_vm1, %v1561_v49, 0  ;;  %v2010_v48 = vpack.c.bf16 %v2005_v45, %v2005_v45  ;;  %v3133_v49 = vpop.f32.mrb[23].mxu0 }
 0x71d   : > { %3083 = vmatpush3.bf16.xpose.msra.mxu1 %v1680_v52 }
 0x71e   : > { %3088 = vmatprep.subr.bf16.mxu1 %v3331_v1  ;;  %v2129_v51 = vsel %vm775_vm1, %v2010_v48, 0 }
 0x71f   : > { %3155 = vmatpush3.bf16.xpose.msra.mxu0 %v2129_v51  ;;  %v884_v51 = vpack.c.bf16 %v3679_v44, %v3679_v44 }
 0x720   : > { %3160 = vmatprep.subr.bf16.mxu0 %v3331_v1 }
 0x724   : > { %3085 = vmatmul.mubr.msk.bf16.vlgmr.msra.gmra.mrb[32].mxu1 %vm775_vm1, %v1447_v54 }
 0x725   : > { %3090 = vmatprep.mubr.msk.bf16.mxu1 %vm3332_vm0, %v3331_v1  ;;  %3089 = vmatpush3.bf16.msra.mxu1 %v1740_v21 }
 0x726   : > { %3094 = vmatprep.subr.bf16.mxu1 %v3331_v1 }
 0x7f7   : > { %v1716_v63 = vpop.f32.mrb[32].mxu1 }
 0x7f8   : > { %v1722_v0 = vmul.f32 0.17677669, %v1716_v63  ;;  %v3086_v2 = vpop.f32.mrb[33].mxu1  ;;  %v3288_v63 = vld [vmem:[%s4019_s4 + $0xc0] sm:$0xff]  }
 0x7f9   : > { %v1719_v3 = vpop.f32.mrb[34].mxu1  ;;  %v3290_v2 = vld [vmem:[%s4019_s4 + $0xd0] sm:$0xff]  }
 0x7fa   : > { %v3087_v4 = vpop.f32.mrb[35].mxu1  ;;  %v1723_v5 = vsel %vm3553_vm5, %v1722_v0, -1e+09  ;;  %v3289_v0 = vld [vmem:[%s4019_s4 + $0xc8] sm:$0xff]   ;;  %v3291_v3 = vld [vmem:[%s4019_s4 + $0xd8] sm:$0xff]  }
 0x7fb   : > { %v1724_v6 = vsel %vm824_vm6, %v1723_v5, -inf  ;;  %v3292_v4 = vld [vmem:[%s4019_s4 + $0xe0] sm:$0xff]  }
 0x7fc   : > { %1725 = vmax.xlane.f32.xlu0 %v1724_v6  ;;  %v3294_v6 = vld [vmem:[%s4019_s4 + $0xf0] sm:$0xff]  }
 0x889   : > { %v1726_v7 = vpop.xlane.xlu0 %1725 }
 0x88a   : > { %v1727_v8 = vsub.f32 %v1723_v5, %v1726_v7  ;;  %v3293_v5 = vld [vmem:[%s4019_s4 + $0xe8] sm:$0xff]   ;;  %v3295_v7 = vld [vmem:[%s4019_s4 + $0xf8] sm:$0xff]  }
 0x88c   : > { %v1728_v9 = vmul.f32 1.442695, %v1727_v8 }
 0x88e   : > { %3312 = vpow2.f32 %v1728_v9 }
 0x898   : > { %v3313_v10 = vpop.eup %3312 }
 0x899   : > { %v1730_v17 = vsel %vm824_vm6, %v3313_v10, 0.0 }
 0x89a   : > { %1731 = vadd.xlane.f32.xlu1 %v1730_v17 }
 0x927   : > { %v1732_v29 = vpop.xlane.xlu1 %1731 }
 0x928   : > { %3314 = vrcp.f32 %v1732_v29 }
 0x932   : > { %v3315_v30 = vpop.eup %3314 }
 0x933   : > { %v1734_v31 = vmul.f32 %v3315_v30, %v3313_v10 }
 0x935   : > { %v1735_v33 = vpack.c.bf16 %v1734_v31, %v1734_v31 }
 0x937   : > { %3091 = vmatmul.mubr.msk.bf16.vlgmr.msra.gmra.mrb[36].mxu1 %vm824_vm6, %v1735_v33  ;;  %v3296_v33 = vld [vmem:[%s4023_s8] sm:$0xff]  }
 0x938   : > { %3095 = vmatpush3.bf16.msra.mxu1 %v3275_v32  ;;  %3110 = vmatprep.mubr.msk.bf16.mxu1 %vm3332_vm0, %v3331_v1 }
 0x939   : > { %3096 = vmatprep.subr.bf16.mxu1 %v3331_v1 }
 0x93c   : > { %3097 = vmatpush3.bf16.msra.mxu1 %v3277_v34  ;;  %v3297_v34 = vld [vmem:[%s4023_s8 + $0x8] sm:$0xff]  }
 0x93d   : > { %3098 = vmatprep.subr.bf16.mxu1 %v3331_v1 }
 0x940   : > { %3099 = vmatpush3.bf16.msra.mxu1 %v3279_v35  ;;  %v3298_v35 = vld [vmem:[%s4023_s8 + $0x10] sm:$0xff]  }
 0x941   : > { %3100 = vmatprep.subr.bf16.mxu1 %v3331_v1 }
 0x944   : > { %3101 = vmatpush3.bf16.msra.mxu1 %v3281_v36  ;;  %v3299_v36 = vld [vmem:[%s4023_s8 + $0x18] sm:$0xff]  }
 0x945   : > { %3102 = vmatprep.subr.bf16.mxu1 %v3331_v1 }
 0x948   : > { %3103 = vmatpush3.bf16.msra.mxu1 %v3283_v37  ;;  %v3300_v37 = vld [vmem:[%s4023_s8 + $0x20] sm:$0xff]  }
 0x949   : > { %3104 = vmatprep.subr.bf16.mxu1 %v3331_v1 }
 0x94c   : > { %3105 = vmatpush3.bf16.msra.mxu1 %v3285_v39  ;;  %v3301_v39 = vld [vmem:[%s4023_s8 + $0x28] sm:$0xff]  }
 0x94d   : > { %3106 = vmatprep.subr.bf16.mxu1 %v3331_v1 }
 0x950   : > { %3107 = vmatpush3.bf16.msra.mxu1 %v3286_v40  ;;  %v3302_v40 = vld [vmem:[%s4023_s8 + $0x30] sm:$0xff]  }
 0x951   : > { %3108 = vmatprep.subr.bf16.mxu1 %v3331_v1 }
 0x954   : > { %3109 = vmatpush3.bf16.msra.mxu1 %v3287_v41  ;;  %v3303_v41 = vld [vmem:[%s4023_s8 + $0x38] sm:$0xff]  }
 0x955   : > { %3134 = vmatprep.subr.bf16.mxu1 %v3331_v1 }
 0x957   : > { %3111 = vmatmul.mubr.bf16.vlgmr.msra.gmra.mrb[40].mxu1 %v3859_v28 }
 0x958   : > { %3150 = vmatprep.mubr.msk.bf16.mxu1 %vm3332_vm0, %v3331_v1  ;;  %3135 = vmatpush3.bf16.msra.mxu1 %v3288_v63 }
 0x959   : > { %3136 = vmatprep.subr.bf16.mxu1 %v3331_v1 }
 0x95c   : > { %3137 = vmatpush3.bf16.msra.mxu1 %v3289_v0 }
 0x95d   : > { %3138 = vmatprep.subr.bf16.mxu1 %v3331_v1 }
 0x960   : > { %3139 = vmatpush3.bf16.msra.mxu1 %v3290_v2 }
 0x961   : > { %3140 = vmatprep.subr.bf16.mxu1 %v3331_v1 }
 0x964   : > { %3141 = vmatpush3.bf16.msra.mxu1 %v3291_v3 }
 0x965   : > { %3142 = vmatprep.subr.bf16.mxu1 %v3331_v1 }
 0x968   : > { %3143 = vmatpush3.bf16.msra.mxu1 %v3292_v4 }
 0x969   : > { %3144 = vmatprep.subr.bf16.mxu1 %v3331_v1 }
 0x96c   : > { %3145 = vmatpush3.bf16.msra.mxu1 %v3293_v5 }
 0x96d   : > { %3146 = vmatprep.subr.bf16.mxu1 %v3331_v1 }
 0x970   : > { %3147 = vmatpush3.bf16.msra.mxu1 %v3294_v6 }
 0x971   : > { %3148 = vmatprep.subr.bf16.mxu1 %v3331_v1 }
 0x974   : > { %3149 = vmatpush3.bf16.msra.mxu1 %v3295_v7 }
 0x977   : > { %3151 = vmatmul.mubr.bf16.vlgmr.msra.gmra.mrb[44].mxu1 %v3859_v28 }
 0xa0a   : > { %v3907_v52 = vpop.f32.mrb[36].mxu1 }
 0xa0b   : > { %v3092_v53 = vpop.f32.mrb[37].mxu1  ;;  %v1782_v27 = vpack.c.bf16 %v3907_v52, %v3907_v52 }
 0xa0c   : > { %v1779_v54 = vpop.f32.mrb[38].mxu1 }
 0xa0d   : > { %v3093_v55 = vpop.f32.mrb[39].mxu1 }
 0xa0e   : > { %v2732_v55 = vld [vmem:[%s4024_s9] ss:$0 sm:$0xff] }
 0xa2a   : > { %v1890_v57 = vpop.f32.mrb[40].mxu1 }
 0xa2b   : > { %v1891_v58 = vadd.f32 %v2669_v56, %v1890_v57  ;;  %v3112_v59 = vpop.f32.mrb[41].mxu1  ;;  %v2362_v56 = vunpack.c.l.bf16 %v3859_v28  ;;  %v2741_v28 = vld [vmem:[%s4025_s10] ss:$0 sm:$0xff] }
 0xa2c   : > { %v1893_v60 = vpop.f32.mrb[42].mxu1 }
 0xa2d   : > { %v1896_v61 = vpack.c.bf16 %v1891_v58, %v1891_v58  ;;  %v3113_v62 = vpop.f32.mrb[43].mxu1 }
 0xa2f   : > { %3157 = vmatmul.mubr.msk.bf16.vlgmr.msra.gmra.mrb[24].mxu0 %vm775_vm1, %v1896_v61 }
 0xa30   : > { %3162 = vmatprep.mubr.msk.bf16.mxu0 %vm3332_vm0, %v3331_v1 }
 0xa4a   : > { %v2118_v16 = vpop.f32.mrb[44].mxu1 }
 0xa4b   : > { %v2119_v18 = vadd.f32 %v2721_v15, %v2118_v16  ;;  %v3152_v19 = vpop.f32.mrb[45].mxu1 }
 0xa4c   : > { %v2121_v20 = vpop.f32.mrb[46].mxu1 }
 0xa4d   : > { %v2124_v22 = vpack.c.bf16 %v2119_v18, %v2119_v18  ;;  %v3153_v50 = vpop.f32.mrb[47].mxu1 }
 0xa4f   : > { %v2189_v24 = vsel %vm840_vm7, %v2124_v22, 0 }
 0xa50   : > { %3161 = vmatpush3.bf16.msra.mxu0 %v2189_v24 }
 0xa51   : > { %3166 = vmatprep.subr.bf16.mxu0 %v3331_v1 }
 0xb02   : > { %v2165_v8 = vpop.f32.mrb[24].mxu0 }
 0xb03   : > { %v2171_v9 = vmul.f32 0.17677669, %v2165_v8  ;;  %v3158_v10 = vpop.f32.mrb[25].mxu0  ;;  %v2742_v8 = vld [vmem:[%s4026_s11] ss:$0 sm:$0xff] }
 0xb04   : > { %v2168_v17 = vpop.f32.mrb[26].mxu0 }
 0xb05   : > { %v3159_v11 = vpop.f32.mrb[27].mxu0  ;;  %v2172_v12 = vsel %vm3553_vm5, %v2171_v9, -1e+09 }
 0xb06   : > { %v2173_v13 = vsel %vm824_vm6, %v2172_v12, -inf }
 0xb07   : > { %2174 = vmax.xlane.f32.xlu0 %v2173_v13 }
 0xb1d   : > { %2233 = vrot.lane.b32.xlu0 %v1333_v14, %s3334_s27 }
 0xb94   : > { %v2175_v21 = vpop.xlane.xlu0 %2174 }
 0xb95   : > { %v2176_v23 = vsub.f32 %v2172_v12, %v2175_v21 }
 0xb97   : > { %v2177_v25 = vmul.f32 1.442695, %v2176_v23 }
 0xb98   : > { %v2234_v48 = vpop.permute.xlu0 %2233 }
 0xb99   : > { %3316 = vpow2.f32 %v2177_v25  ;;  %v2243_v52 = vsel %vm775_vm1, %v884_v51, %v2234_v48 }
 0xba3   : > { %v3317_v38 = vpop.eup %3316 }
 0xba4   : > { %v2179_v26 = vsel %vm824_vm6, %v3317_v38, 0.0 }
 0xba5   : > { %2180 = vadd.xlane.f32.xlu1 %v2179_v26 }
 0xbb6   : > { %2236 = vrot.lane.b32.xlu1 %v1782_v27, %s3335_s13 }
 0xc32   : > { %v2181_v29 = vpop.xlane.xlu1 %2180 }
 0xc33   : > { %3318 = vrcp.f32 %v2181_v29 }
 0xc36   : > { %v2237_v49 = vpop.permute.xlu1 %2236 }
 0xc37   : > { %v2246_v53 = vsel %vm2244_vm8, %v2243_v52, %v2237_v49 }
 0xc3d   : > { %v3319_v30 = vpop.eup %3318 }
 0xc3e   : > { %v2183_v31 = vmul.f32 %v3319_v30, %v3317_v38 }
 0xc40   : > { %v2184_v32 = vpack.c.bf16 %v2183_v31, %v2183_v31 }
 0xc42   : > { %3163 = vmatmul.mubr.msk.bf16.vlgmr.msra.gmra.mrb[28].mxu0 %vm824_vm6, %v2184_v32 }
 0xc43   : > { %3182 = vmatprep.mubr.msk.bf16.mxu0 %vm3332_vm0, %v3331_v1  ;;  %3167 = vmatpush3.bf16.msra.mxu0 %v3296_v33 }
 0xc44   : > { %3168 = vmatprep.subr.bf16.mxu0 %v3331_v1 }
 0xc47   : > { %3169 = vmatpush3.bf16.msra.mxu0 %v3297_v34 }
 0xc48   : > { %3170 = vmatprep.subr.bf16.mxu0 %v3331_v1 }
 0xc4b   : > { %3171 = vmatpush3.bf16.msra.mxu0 %v3298_v35 }
 0xc4c   : > { %3172 = vmatprep.subr.bf16.mxu0 %v3331_v1 }
 0xc4f   : > { %3173 = vmatpush3.bf16.msra.mxu0 %v3299_v36 }
 0xc50   : > { %3174 = vmatprep.subr.bf16.mxu0 %v3331_v1 }
 0xc53   : > { %3175 = vmatpush3.bf16.msra.mxu0 %v3300_v37 }
 0xc54   : > { %3176 = vmatprep.subr.bf16.mxu0 %v3331_v1 }
 0xc57   : > { %3177 = vmatpush3.bf16.msra.mxu0 %v3301_v39 }
 0xc58   : > { %3178 = vmatprep.subr.bf16.mxu0 %v3331_v1 }
 0xc5b   : > { %3179 = vmatpush3.bf16.msra.mxu0 %v3302_v40 }
 0xc5c   : > { %3180 = vmatprep.subr.bf16.mxu0 %v3331_v1 }
 0xc5f   : > { %3181 = vmatpush3.bf16.msra.mxu0 %v3303_v41 }
 0xd15   : > { %v2225_v42 = vpop.f32.mrb[28].mxu0 }
 0xd16   : > { %v2231_v43 = vpack.c.bf16 %v2225_v42, %v2225_v42  ;;  %v3164_v45 = vpop.f32.mrb[29].mxu0 }
 0xd17   : > { %v2228_v46 = vpop.f32.mrb[30].mxu0 }
 0xd18   : > { %2239 = vrot.lane.b32.xlu1 %v2231_v43, %s3336_s15  ;;  %v3165_v47 = vpop.f32.mrb[31].mxu0 }
 0xd8a   : > { %v2240_v54 = vpop.permute.xlu1 %2239 }
 0xd8b   : > { %v2249_v1 = vsel %vm2247_vm9, %v2246_v53, %v2240_v54 }
 0xd8c   : > { %3183 = vmatmul.mubr.bf16.vlgmr.msra.gmra.mrb[32].mxu0 %v2249_v1 }
 0xe5f   : > { %v2356_v57 = vpop.f32.mrb[32].mxu0 }
 0xe60   : > { %v2357_v58 = vadd.f32 %v2732_v55, %v2356_v57  ;;  %v3184_v59 = vpop.f32.mrb[33].mxu0 }
 0xe61   : > { %v2359_v60 = vpop.f32.mrb[34].mxu0 }
 0xe62   : > { %v3185_v61 = vpop.f32.mrb[35].mxu0  ;;  %v2363_v44 = vadd.f32 %v2362_v56, %v2357_v58 }
 0xe64   : > { %2364 = vadd.xlane.f32.xlu1 %v2363_v44 }
 0xef1   : > { %v2365_v62 = vpop.xlane.xlu1 %2364 }
 0xef2   : > { %v2367_v63 = vmul.f32 0.0078125, %v2365_v62 }
 0xef4   : > { %v2368_v0 = vsub.f32 %v2363_v44, %v2367_v63 }
 0xef6   : > { %v2369_v2 = vmul.f32 %v2368_v0, %v2368_v0 }
 0xef8   : > { %2370 = vadd.xlane.f32.xlu0 %v2369_v2 }
 0xf85   : > { %v2371_v3 = vpop.xlane.xlu0 %2370 }
 0xf86   : > { %v2372_v4 = vmul.f32 0.0078125, %v2371_v3 }
 0xf88   : > { %v2373_v5 = vadd.f32 1e-05, %v2372_v4 }
 0xf8a   : > { %3320 = vrsqrt.f32 %v2373_v5 }
 0xf94   : > { %v3321_v6 = vpop.eup %3320 }
 0xf95   : > { %v2375_v7 = vmul.f32 %v3321_v6, %v2368_v0 }
 0xf97   : > { %v2383_v9 = vmul.f32 %v2741_v28, %v2375_v7 }
 0xf99   : > { %v2391_v10 = vadd.f32 %v2742_v8, %v2383_v9 }
 0xf9b   : > { %v2392_v17 = vpack.c.bf16 %v2391_v10, %v2391_v10 }
 0xf9d   : > { %2393 = vst [vmem:[%s422_s26] sm:$0xf] %v2392_v17 }
 0xf9e PF: > { %s22_s21 = sadd.s32 1, %s3329_s21  }
 0xf9f   : > { %p19_p4 = scmp.ge.s32.totalorder %s22_s21, 4  }
 0xfa1   :  { %21 = sbr.rel (!%p19_p4) target bundleno = 1 (0x1), region = 119 }

// kernel: transformer_forward.15
= control target key start
LH: loop header
LB: loop body
LE: loop exit
PB: predicated region body
PF: predicated region fallthrough
CT: control target
= control target key end

     0   :  { %s3460_s25 = smov 0   ;;  %s4084_s0 = inlined_call_operand.vmem [shape: bf16[2,8,128], index: 0, kind: input, shape index: {}]   ;;  %s4085_s1 = inlined_call_operand.vmem [shape: bf16[2,8,128], index: 1, kind: input, shape index: {}]   ;;  %s4086_s2 = inlined_call_operand.vmem [shape: s32[2,1,8], index: 2, kind: input, shape index: {}]   ;;  %s4087_s3 = inlined_call_operand.vmem [shape: bf16[4,128,32], index: 3, kind: input, shape index: {}]   ;;  %s4088_s4 = inlined_call_operand.vmem [shape: bf16[4,128,32], index: 4, kind: input, shape index: {}]   ;;  %s4089_s5 = inlined_call_operand.vmem [shape: bf16[4,128,32], index: 5, kind: input, shape index: {}]   ;;  %s4090_s6 = inlined_call_operand.vmem [shape: f32[4,1,32], index: 6, kind: input, shape index: {}]   ;;  %s4091_s7 = inlined_call_operand.vmem [shape: f32[4,1,32], index: 7, kind: input, shape index: {}]   ;;  %s4092_s8 = inlined_call_operand.vmem [shape: f32[4,1,32], index: 8, kind: input, shape index: {}]   ;;  %s4093_s9 = inlined_call_operand.vmem [shape: bf16[128,128], index: 9, kind: input, shape index: {}]   ;;  %s4094_s10 = inlined_call_operand.vmem [shape: f32[1,128], index: 10, kind: input, shape index: {}]   ;;  %s4095_s11 = inlined_call_operand.vmem [shape: f32[1,128], index: 11, kind: input, shape index: {}]   ;;  %s4096_s12 = inlined_call_operand.vmem [shape: f32[1,128], index: 12, kind: input, shape index: {}]   ;;  %s4097_s13 = inlined_call_operand.vmem [shape: bf16[2,8,128], index: 13, kind: output, shape index: {}]  }
   0x1 LB: > { %s2507_s26 = sadd.s32 4294967295, %s3382_s25   ;;  %p2511_p0 = scmp.ge.s32.totalorder %s3382_s25, 1  ;;  %s3382_s25 = sphi %s3460_s25, %s23_s25  }
   0x2   : > { %p403_p1 = scmp.lt.s32.totalorder %s3382_s25, 3 }
   0x4   : > { %p404_p2 = pnand %p2511_p0, %p403_p1 }
   0x5   : > { %v3252_v0 = vld [vmem:[%s4088_s4] sm:$0xff] (!%p404_p2)   ;;  %v3384_v1 = vmov (!%p404_p2), 0.0   ;;  %v3253_v2 = vld [vmem:[%s4088_s4 + $0x8] sm:$0xff] (!%p404_p2)   ;;  %vm3385_vm0 = vmmov (!%p404_p2), 0   ;;  %v3255_v5 = vld [vmem:[%s4088_s4 + $0x10] sm:$0xff] (!%p404_p2)   ;;  %p452_p3 = scmp.lt.s32.totalorder (!%p404_p2), %s2507_s26, 1  ;;  %v473_v42 = vlaneseq (!%p404_p2) }
   0x6   : > { %407 = sbr.rel (%p404_p2) target bundleno = 3998 (0xf9e), region = 72  ;;  %2950 = vmatprep.subr.bf16.mxu1 (!%p404_p2), %v3384_v1  ;;  %2930 = vmatprep.subr.bf16.mxu0 (!%p404_p2), %v3384_v1  ;;  %v3254_v3 = vld [vmem:[%s4087_s3] sm:$0xff] (!%p404_p2)   ;;  %v3256_v4 = vld [vmem:[%s4087_s3 + $0x8] sm:$0xff] (!%p404_p2)   ;;  %v3258_v6 = vld [vmem:[%s4087_s3 + $0x10] sm:$0xff] (!%p404_p2)   ;;  %vm814_vm1 = vcmask (!%p404_p2), 261120   ;;  %v3386_v46 = vmov (!%p404_p2), 0  }
   0x7   : > { %2951 = vmatpush3.bf16.msra.mxu1 (!%p404_p2), %v3252_v0  ;;  %2966 = vmatprep.mubr.msk.bf16.mxu1 (!%p404_p2), %vm3385_vm0, %v3384_v1  ;;  %v3257_v7 = vld [vmem:[%s4088_s4 + $0x18] sm:$0xff] (!%p404_p2)   ;;  %v3259_v9 = vld [vmem:[%s4088_s4 + $0x20] sm:$0xff] (!%p404_p2)   ;;  %v3261_v10 = vld [vmem:[%s4088_s4 + $0x28] sm:$0xff] (!%p404_p2)   ;;  %v474_v44 = vshrl.u32 (!%p404_p2), %v473_v42, 7  ;;  %vm863_vm4 = vcmask (!%p404_p2), 64512   ;;  %vm879_vm5 = vcmask (!%p404_p2), 1043456  }
   0x8   : > { %2952 = vmatprep.subr.bf16.mxu1 (!%p404_p2), %v3384_v1  ;;  %2946 = vmatprep.mubr.msk.bf16.mxu0 (!%p404_p2), %vm3385_vm0, %v3384_v1  ;;  %v3260_v8 = vld [vmem:[%s4087_s3 + $0x18] sm:$0xff] (!%p404_p2)   ;;  %v3262_v11 = vld [vmem:[%s4087_s3 + $0x20] sm:$0xff] (!%p404_p2)   ;;  %v3264_v12 = vld [vmem:[%s4087_s3 + $0x28] sm:$0xff] (!%p404_p2)   ;;  %s3387_s18 = smov (!%p404_p2), 32   ;;  %s3388_s22 = smov (!%p404_p2), 64   ;;  %vm2283_vm6 = vcmask (!%p404_p2), 523264  }
   0x9   : > { %2931 = vmatpush3.bf16.msra.mxu0 (!%p404_p2), %v3254_v3  ;;  %v3263_v13 = vld [vmem:[%s4088_s4 + $0x30] sm:$0xff] (!%p404_p2)   ;;  %v3265_v15 = vld [vmem:[%s4088_s4 + $0x38] sm:$0xff] (!%p404_p2)   ;;  %v2524_v19 = vld [vmem:[%s4091_s7] ss:$0 sm:$0xff] (!%p404_p2)  ;;  %v475_v45 = vsub.s32 (!%p404_p2), 0, %v474_v44  ;;  %s3389_s24 = smov (!%p404_p2), 96  }
   0xa   : > { %2932 = vmatprep.subr.bf16.mxu0 (!%p404_p2), %v3384_v1  ;;  %v3266_v14 = vld [vmem:[%s4087_s3 + $0x30] sm:$0xff] (!%p404_p2)   ;;  %v3267_v16 = vld [vmem:[%s4087_s3 + $0x38] sm:$0xff] (!%p404_p2)   ;;  %v2515_v24 = vld [vmem:[%s4090_s6] ss:$0 sm:$0xff] (!%p404_p2)  ;;  %vm2286_vm7 = vcmask (!%p404_p2), 785408  }
   0xb   : > { %2953 = vmatpush3.bf16.msra.mxu1 (!%p404_p2), %v3253_v2  ;;  %v3268_v34 = vld [vmem:[%s4089_s5] sm:$0xff] (!%p404_p2)   ;;  %v3269_v35 = vld [vmem:[%s4089_s5 + $0x8] sm:$0xff] (!%p404_p2)   ;;  %v3270_v36 = vld [vmem:[%s4089_s5 + $0x10] sm:$0xff] (!%p404_p2)  }
   0xc   : > { %2954 = vmatprep.subr.bf16.mxu1 (!%p404_p2), %v3384_v1  ;;  %v3271_v37 = vld [vmem:[%s4089_s5 + $0x18] sm:$0xff] (!%p404_p2)   ;;  %v3272_v38 = vld [vmem:[%s4089_s5 + $0x20] sm:$0xff] (!%p404_p2)   ;;  %v3273_v39 = vld [vmem:[%s4089_s5 + $0x28] sm:$0xff] (!%p404_p2)  }
   0xd   : > { %2933 = vmatpush3.bf16.msra.mxu0 %v3256_v4  ;;  %s4099_s26 = smov (!%p452_p3, %s2507_s26), 1  ;;  %v3274_v40 = vld [vmem:[%s4089_s5 + $0x30] sm:$0xff]   ;;  %v3275_v41 = vld [vmem:[%s4089_s5 + $0x38] sm:$0xff]   ;;  %v3276_v62 = vld [vmem:[%s4088_s4 + $0x40] sm:$0xff]  }
   0xe   : > { %2934 = vmatprep.subr.bf16.mxu0 %v3384_v1  ;;  %s3521_s17 = sshll.u32 %s4099_s26, 2  ;;  %s462_s16 = scalar_lea.vmem %s4086_s2, %s4099_s26  ;;  %v2533_v2 = vld [vmem:[%s4092_s8] ss:$0 sm:$0xff] }
   0xf   : > { %2955 = vmatpush3.bf16.msra.mxu1 %v3255_v5  ;;  %s3544_s30 = scalar_lea.vmem %s4085_s1, %s3521_s17  ;;  %s3554_s19 = scalar_lea.vmem %s4084_s0, %s3521_s17  ;;  %v470_v43 = vld [vmem:[%s462_s16] sm:$0x1]  ;;  %v3277_v5 = vld [vmem:[%s4088_s4 + $0x48] sm:$0xff]  }
  0x10   : > { %2956 = vmatprep.subr.bf16.mxu1 %v3384_v1  ;;  %v3557_v17 = vld [vmem:[%s3544_s30] sm:$0xf]  ;;  %vm471_vm2 = vcmp.ne.s32.totalorder %v470_v43, 0  ;;  %s466_s26 = scalar_lea.vmem %s4097_s13, %s3521_s17 }
  0x11   : > { %2935 = vmatpush3.bf16.msra.mxu0 %v3258_v6  ;;  %v3561_v18 = vld [vmem:[%s3554_s19] sm:$0xf]  ;;  %v472_v47 = vsel %vm471_vm2, 1, %v3386_v46 }
  0x12   : > { %2936 = vmatprep.subr.bf16.mxu0 %v3384_v1  ;;  %v3621_v48 = vrot.slane %v472_v47, %v475_v45 }
  0x13   : > { %2957 = vmatpush3.bf16.msra.mxu1 %v3257_v7 }
  0x14   : > { %2958 = vmatprep.subr.bf16.mxu1 %v3384_v1  ;;  %vm477_vm3 = vcmp.eq.s32.totalorder %v3621_v48, 1 }
  0x15   : > { %2937 = vmatpush3.bf16.msra.mxu0 %v3260_v8  ;;  %v3278_v8 = vld [vmem:[%s4088_s4 + $0x50] sm:$0xff]  }
  0x16   : > { %2938 = vmatprep.subr.bf16.mxu0 %v3384_v1 }
  0x17   : > { %2959 = vmatpush3.bf16.msra.mxu1 %v3259_v9  ;;  %v3280_v9 = vld [vmem:[%s4088_s4 + $0x58] sm:$0xff]  }
  0x18   : > { %2960 = vmatprep.subr.bf16.mxu1 %v3384_v1 }
  0x19   : > { %2939 = vmatpush3.bf16.msra.mxu0 %v3262_v11  ;;  %v3284_v11 = vld [vmem:[%s4088_s4 + $0x68] sm:$0xff]  }
  0x1a   : > { %2940 = vmatprep.subr.bf16.mxu0 %v3384_v1 }
  0x1b   : > { %2961 = vmatpush3.bf16.msra.mxu1 %v3261_v10  ;;  %v3282_v10 = vld [vmem:[%s4088_s4 + $0x60] sm:$0xff]  }
  0x1c   : > { %2962 = vmatprep.subr.bf16.mxu1 %v3384_v1 }
  0x1d   : > { %2941 = vmatpush3.bf16.msra.mxu0 %v3264_v12  ;;  %v3286_v12 = vld [vmem:[%s4088_s4 + $0x70] sm:$0xff]  }
  0x1e   : > { %2942 = vmatprep.subr.bf16.mxu0 %v3384_v1 }
  0x1f   : > { %2963 = vmatpush3.bf16.msra.mxu1 %v3263_v13  ;;  %v3288_v13 = vld [vmem:[%s4088_s4 + $0x78] sm:$0xff]  }
  0x20   : > { %2964 = vmatprep.subr.bf16.mxu1 %v3384_v1 }
  0x21   : > { %2943 = vmatpush3.bf16.msra.mxu0 %v3266_v14 }
  0x22   : > { %2944 = vmatprep.subr.bf16.mxu0 %v3384_v1 }
  0x23   : > { %2965 = vmatpush3.bf16.msra.mxu1 %v3265_v15 }
  0x24   : > { %2990 = vmatprep.subr.bf16.mxu1 %v3384_v1 }
  0x25   : > { %2945 = vmatpush3.bf16.msra.mxu0 %v3267_v16 }
  0x26   : > { %2967 = vmatmul.mubr.bf16.vlgmr.msra.gmra.mrb[0].mxu1 %v3557_v17  ;;  %2970 = vmatprep.subr.bf16.mxu0 %v3384_v1 }
  0x27   : > { %2992 = vmatprep.mubr.msk.bf16.mxu1 %vm3385_vm0, %v3384_v1 }
  0x28   : > { %2947 = vmatmul.mubr.bf16.vlgmr.msra.gmra.mrb[0].mxu0 %v3561_v18 }
  0x29   : > { %2986 = vmatprep.mubr.msk.bf16.mxu0 %vm3385_vm0, %v3384_v1  ;;  %2971 = vmatpush3.bf16.msra.mxu0 %v3268_v34  ;;  %v3298_v34 = vld [vmem:[%s4089_s5 + $0x70] sm:$0xff]  }
  0x2a   : > { %2972 = vmatprep.subr.bf16.mxu0 %v3384_v1 }
  0x2d   : > { %2973 = vmatpush3.bf16.msra.mxu0 %v3269_v35  ;;  %v3299_v35 = vld [vmem:[%s4089_s5 + $0x78] sm:$0xff]  }
  0x2e   : > { %2974 = vmatprep.subr.bf16.mxu0 %v3384_v1 }
  0x31   : > { %2975 = vmatpush3.bf16.msra.mxu0 %v3270_v36  ;;  %v2587_v36 = vld [vmem:[%s4091_s7 + $0x1] ss:$0 sm:$0xff] }
  0x32   : > { %2976 = vmatprep.subr.bf16.mxu0 %v3384_v1 }
  0x35   : > { %2977 = vmatpush3.bf16.msra.mxu0 %v3271_v37 }
  0x36   : > { %2978 = vmatprep.subr.bf16.mxu0 %v3384_v1 }
  0x39   : > { %2979 = vmatpush3.bf16.msra.mxu0 %v3272_v38 }
  0x3a   : > { %2980 = vmatprep.subr.bf16.mxu0 %v3384_v1 }
  0x3d   : > { %2981 = vmatpush3.bf16.msra.mxu0 %v3273_v39 }
  0x3e   : > { %2982 = vmatprep.subr.bf16.mxu0 %v3384_v1 }
  0x41   : > { %2983 = vmatpush3.bf16.msra.mxu0 %v3274_v40 }
  0x42   : > { %2984 = vmatprep.subr.bf16.mxu0 %v3384_v1 }
  0x45   : > { %2985 = vmatpush3.bf16.msra.mxu0 %v3275_v41 }
  0x46   : > { %3022 = vmatprep.subr.bf16.mxu0 %v3384_v1 }
  0x48   : > { %2987 = vmatmul.mubr.bf16.vlgmr.msra.gmra.mrb[4].mxu0 %v3557_v17 }
  0x49   : > { %3038 = vmatprep.mubr.msk.bf16.mxu0 %vm3385_vm0, %v3384_v1  ;;  %3023 = vmatpush3.bf16.msra.mxu0 %v3276_v62 }
  0x4a   : > { %3024 = vmatprep.subr.bf16.mxu0 %v3384_v1 }
  0x4d   : > { %3025 = vmatpush3.bf16.msra.mxu0 %v3277_v5 }
  0x4e   : > { %3026 = vmatprep.subr.bf16.mxu0 %v3384_v1 }
  0x51   : > { %3027 = vmatpush3.bf16.msra.mxu0 %v3278_v8 }
  0x52   : > { %3028 = vmatprep.subr.bf16.mxu0 %v3384_v1 }
  0x55   : > { %3029 = vmatpush3.bf16.msra.mxu0 %v3280_v9 }
  0x56   : > { %3030 = vmatprep.subr.bf16.mxu0 %v3384_v1 }
  0x59   : > { %3031 = vmatpush3.bf16.msra.mxu0 %v3282_v10 }
  0x5a   : > { %3032 = vmatprep.subr.bf16.mxu0 %v3384_v1 }
  0x5d   : > { %3033 = vmatpush3.bf16.msra.mxu0 %v3284_v11 }
  0x5e   : > { %3034 = vmatprep.subr.bf16.mxu0 %v3384_v1 }
  0x61   : > { %3035 = vmatpush3.bf16.msra.mxu0 %v3286_v12 }
  0x62   : > { %3036 = vmatprep.subr.bf16.mxu0 %v3384_v1 }
  0x65   : > { %3037 = vmatpush3.bf16.msra.mxu0 %v3288_v13  ;;  %v3302_v13 = vld [vmem:[%s4087_s3 + $0x80] sm:$0xff]  }
  0x66   : > { %3074 = vmatprep.subr.bf16.mxu0 %v3384_v1 }
  0x68   : > { %3039 = vmatmul.mubr.bf16.vlgmr.msra.gmra.mrb[8].mxu0 %v3557_v17 }
  0x69   : > { %3090 = vmatprep.mubr.msk.bf16.mxu0 %vm3385_vm0, %v3384_v1  ;;  %3075 = vmatpush3.bf16.msra.mxu0 %v3302_v13 }
  0x6a   : > { %3076 = vmatprep.subr.bf16.mxu0 %v3384_v1 }
  0xf9   : > { %v695_v20 = vpop.f32.mrb[0].mxu1 }
  0xfa   : > { %v696_v21 = vadd.f32 %v2524_v19, %v695_v20  ;;  %v2968_v22 = vpop.f32.mrb[1].mxu1  ;;  %v3279_v19 = vld [vmem:[%s4087_s3 + $0x40] sm:$0xff]  }
  0xfb   : > { %v698_v23 = vpop.f32.mrb[2].mxu1  ;;  %v583_v25 = vpop.f32.mrb[0].mxu0  ;;  %v3283_v22 = vld [vmem:[%s4087_s3 + $0x50] sm:$0xff]  }
  0xfc   : > { %v701_v26 = vpack.c.bf16 %v696_v21, %v696_v21  ;;  %v2969_v27 = vpop.f32.mrb[3].mxu1  ;;  %v2948_v28 = vpop.f32.mrb[1].mxu0  ;;  %v584_v31 = vadd.f32 %v2515_v24, %v583_v25  ;;  %v3281_v21 = vld [vmem:[%s4087_s3 + $0x48] sm:$0xff]   ;;  %v3285_v23 = vld [vmem:[%s4087_s3 + $0x58] sm:$0xff]   ;;  %v3287_v24 = vld [vmem:[%s4087_s3 + $0x60] sm:$0xff]  }
  0xfd   : > { %v586_v29 = vpop.f32.mrb[2].mxu0  ;;  %v3289_v25 = vld [vmem:[%s4087_s3 + $0x68] sm:$0xff]   ;;  %v3291_v27 = vld [vmem:[%s4087_s3 + $0x78] sm:$0xff]   ;;  %v3292_v28 = vld [vmem:[%s4089_s5 + $0x40] sm:$0xff]  }
  0xfe   : > { %v819_v30 = vsel %vm814_vm1, %v701_v26, 0  ;;  %v2949_v32 = vpop.f32.mrb[3].mxu0  ;;  %v589_v33 = vpack.c.bf16 %v584_v31, %v584_v31  ;;  %v3290_v26 = vld [vmem:[%s4087_s3 + $0x70] sm:$0xff]   ;;  %v3293_v29 = vld [vmem:[%s4089_s5 + $0x48] sm:$0xff]   ;;  %v3295_v31 = vld [vmem:[%s4089_s5 + $0x58] sm:$0xff]  }
  0xff   : > { %2991 = vmatpush3.bf16.xpose.msra.mxu1 %v819_v30  ;;  %v3294_v30 = vld [vmem:[%s4089_s5 + $0x50] sm:$0xff]   ;;  %v3296_v32 = vld [vmem:[%s4089_s5 + $0x60] sm:$0xff]  }
 0x100   : > { %2996 = vmatprep.subr.bf16.mxu1 %v3384_v1 }
 0x106   : > { %2993 = vmatmul.mubr.msk.bf16.vlgmr.msra.gmra.mrb[4].mxu1 %vm814_vm1, %v589_v33  ;;  %v3297_v33 = vld [vmem:[%s4089_s5 + $0x68] sm:$0xff]  }
 0x107   : > { %2998 = vmatprep.mubr.msk.bf16.mxu1 %vm3385_vm0, %v3384_v1 }
 0x11b   : > { %v807_v61 = vpop.f32.mrb[4].mxu0 }
 0x11c   : > { %v2988_v63 = vpop.f32.mrb[5].mxu0  ;;  %v808_v4 = vadd.f32 %v2533_v2, %v807_v61 }
 0x11d   : > { %v810_v0 = vpop.f32.mrb[6].mxu0 }
 0x11e   : > { %v2989_v3 = vpop.f32.mrb[7].mxu0  ;;  %v813_v6 = vpack.c.bf16 %v808_v4, %v808_v4 }
 0x120   : > { %v881_v7 = vsel %vm879_vm5, %v813_v6, 0 }
 0x121   : > { %2997 = vmatpush3.bf16.msra.mxu1 %v881_v7 }
 0x122   : > { %3002 = vmatprep.subr.bf16.mxu1 %v3384_v1 }
 0x13b   : > { %v1145_v37 = vpop.f32.mrb[8].mxu0 }
 0x13c   : > { %v1146_v38 = vadd.f32 %v2587_v36, %v1145_v37  ;;  %v3040_v39 = vpop.f32.mrb[9].mxu0 }
 0x13d   : > { %v1148_v40 = vpop.f32.mrb[10].mxu0 }
 0x13e   : > { %v1151_v41 = vpack.c.bf16 %v1146_v38, %v1146_v38  ;;  %v3041_v42 = vpop.f32.mrb[11].mxu0 }
 0x13f   : > { %v2667_v42 = vld [vmem:[%s4091_s7 + $0x2] ss:$0 sm:$0xff] }
 0x140   : > { %v1270_v43 = vsel %vm814_vm1, %v1151_v41, 0 }
 0x1d9   : > { %v855_v49 = vpop.f32.mrb[4].mxu1 }
 0x1da   : > { %v861_v50 = vmul.f32 0.17677669, %v855_v49  ;;  %v2994_v51 = vpop.f32.mrb[5].mxu1  ;;  %v2561_v49 = vld [vmem:[%s4090_s6 + $0x1] ss:$0 sm:$0xff] }
 0x1db   : > { %v858_v52 = vpop.f32.mrb[6].mxu1 }
 0x1dc   : > { %v2995_v53 = vpop.f32.mrb[7].mxu1  ;;  %v862_v54 = vsel %vm477_vm3, %v861_v50, -1e+09 }
 0x1dd   : > { %v864_v55 = vsel %vm863_vm4, %v862_v54, -inf }
 0x1de   : > { %865 = vmax.xlane.f32.xlu0 %v864_v55 }
 0x26b   : > { %v866_v56 = vpop.xlane.xlu0 %865 }
 0x26c   : > { %v867_v57 = vsub.f32 %v862_v54, %v866_v56  ;;  %v2613_v56 = vld [vmem:[%s4092_s8 + $0x1] ss:$0 sm:$0xff] }
 0x26e   : > { %v868_v58 = vmul.f32 1.442695, %v867_v57 }
 0x270   : > { %3356 = vpow2.f32 %v868_v58 }
 0x27a   : > { %v3357_v59 = vpop.eup %3356 }
 0x27b   : > { %v870_v60 = vsel %vm863_vm4, %v3357_v59, 0.0 }
 0x27c   : > { %871 = vadd.xlane.f32.xlu0 %v870_v60 }
 0x309   : > { %v872_v14 = vpop.xlane.xlu0 %871 }
 0x30a   : > { %3358 = vrcp.f32 %v872_v14  ;;  %v3304_v14 = vld [vmem:[%s4087_s3 + $0x88] sm:$0xff]  }
 0x30b   : > { %3077 = vmatpush3.bf16.msra.mxu0 %v3304_v14 }
 0x30c   : > { %3078 = vmatprep.subr.bf16.mxu0 %v3384_v1 }
 0x314   : > { %v3359_v15 = vpop.eup %3358 }
 0x315   : > { %v874_v16 = vmul.f32 %v3359_v15, %v3357_v59  ;;  %v3306_v15 = vld [vmem:[%s4087_s3 + $0x90] sm:$0xff]  }
 0x316   : > { %3079 = vmatpush3.bf16.msra.mxu0 %v3306_v15  ;;  %v2693_v15 = vld [vmem:[%s4092_s8 + $0x2] ss:$0 sm:$0xff] }
 0x317   : > { %v875_v20 = vpack.c.bf16 %v874_v16, %v874_v16  ;;  %3080 = vmatprep.subr.bf16.mxu0 %v3384_v1  ;;  %v3308_v16 = vld [vmem:[%s4087_s3 + $0x98] sm:$0xff]  }
 0x319   : > { %2999 = vmatmul.mubr.msk.bf16.vlgmr.msra.gmra.mrb[8].mxu1 %vm863_vm4, %v875_v20  ;;  %v3312_v20 = vld [vmem:[%s4087_s3 + $0xa8] sm:$0xff]  }
 0x31a   : > { %3003 = vmatpush3.bf16.msra.mxu1 %v3279_v19  ;;  %3018 = vmatprep.mubr.msk.bf16.mxu1 %vm3385_vm0, %v3384_v1  ;;  %v3310_v19 = vld [vmem:[%s4087_s3 + $0xa0] sm:$0xff]  }
 0x31b   : > { %3004 = vmatprep.subr.bf16.mxu1 %v3384_v1  ;;  %3081 = vmatpush3.bf16.msra.mxu0 %v3308_v16 }
 0x31c   : > { %3082 = vmatprep.subr.bf16.mxu0 %v3384_v1 }
 0x31e   : > { %3005 = vmatpush3.bf16.msra.mxu1 %v3281_v21  ;;  %v3314_v21 = vld [vmem:[%s4087_s3 + $0xb0] sm:$0xff]  }
 0x31f   : > { %3006 = vmatprep.subr.bf16.mxu1 %v3384_v1  ;;  %3083 = vmatpush3.bf16.msra.mxu0 %v3310_v19 }
 0x320   : > { %3084 = vmatprep.subr.bf16.mxu0 %v3384_v1 }
 0x322   : > { %3007 = vmatpush3.bf16.msra.mxu1 %v3283_v22  ;;  %v3315_v22 = vld [vmem:[%s4087_s3 + $0xb8] sm:$0xff]  }
 0x323   : > { %3008 = vmatprep.subr.bf16.mxu1 %v3384_v1  ;;  %3085 = vmatpush3.bf16.msra.mxu0 %v3312_v20  ;;  %v3325_v20 = vld [vmem:[%s4088_s4 + $0xc8] sm:$0xff]  }
 0x324   : > { %3086 = vmatprep.subr.bf16.mxu0 %v3384_v1 }
 0x326   : > { %3009 = vmatpush3.bf16.msra.mxu1 %v3285_v23 }
 0x327   : > { %3010 = vmatprep.subr.bf16.mxu1 %v3384_v1  ;;  %3087 = vmatpush3.bf16.msra.mxu0 %v3314_v21 }
 0x328   : > { %3088 = vmatprep.subr.bf16.mxu0 %v3384_v1 }
 0x32a   : > { %3011 = vmatpush3.bf16.msra.mxu1 %v3287_v24 }
 0x32b   : > { %3012 = vmatprep.subr.bf16.mxu1 %v3384_v1  ;;  %3089 = vmatpush3.bf16.msra.mxu0 %v3315_v22 }
 0x32c   : > { %3114 = vmatprep.subr.bf16.mxu0 %v3384_v1 }
 0x32e   : > { %3013 = vmatpush3.bf16.msra.mxu1 %v3289_v25  ;;  %3091 = vmatmul.mubr.bf16.vlgmr.msra.gmra.mrb[12].mxu0 %v3561_v18 }
 0x32f   : > { %3014 = vmatprep.subr.bf16.mxu1 %v3384_v1  ;;  %3130 = vmatprep.mubr.msk.bf16.mxu0 %vm3385_vm0, %v3384_v1 }
 0x332   : > { %3015 = vmatpush3.bf16.msra.mxu1 %v3290_v26  ;;  %v3300_v26 = vld [vmem:[%s4088_s4 + $0x80] sm:$0xff]  }
 0x333   : > { %3016 = vmatprep.subr.bf16.mxu1 %v3384_v1 }
 0x336   : > { %3017 = vmatpush3.bf16.msra.mxu1 %v3291_v27 }
 0x337   : > { %3042 = vmatprep.subr.bf16.mxu1 %v3384_v1 }
 0x339   : > { %3019 = vmatmul.mubr.bf16.vlgmr.msra.gmra.mrb[12].mxu1 %v3561_v18  ;;  %v3303_v18 = vld [vmem:[%s4088_s4 + $0x90] sm:$0xff]  }
 0x33a   : > { %3043 = vmatpush3.bf16.msra.mxu1 %v3292_v28  ;;  %3058 = vmatprep.mubr.msk.bf16.mxu1 %vm3385_vm0, %v3384_v1  ;;  %v3301_v28 = vld [vmem:[%s4088_s4 + $0x88] sm:$0xff]  }
 0x33b   : > { %3044 = vmatprep.subr.bf16.mxu1 %v3384_v1 }
 0x33e   : > { %3045 = vmatpush3.bf16.msra.mxu1 %v3293_v29  ;;  %v3305_v29 = vld [vmem:[%s4088_s4 + $0x98] sm:$0xff]  }
 0x33f   : > { %3046 = vmatprep.subr.bf16.mxu1 %v3384_v1 }
 0x342   : > { %3047 = vmatpush3.bf16.msra.mxu1 %v3294_v30  ;;  %v3307_v30 = vld [vmem:[%s4088_s4 + $0xa0] sm:$0xff]  }
 0x343   : > { %3048 = vmatprep.subr.bf16.mxu1 %v3384_v1 }
 0x346   : > { %3049 = vmatpush3.bf16.msra.mxu1 %v3295_v31  ;;  %v3309_v31 = vld [vmem:[%s4088_s4 + $0xa8] sm:$0xff]  }
 0x347   : > { %3050 = vmatprep.subr.bf16.mxu1 %v3384_v1 }
 0x34a   : > { %3051 = vmatpush3.bf16.msra.mxu1 %v3296_v32  ;;  %v3311_v32 = vld [vmem:[%s4088_s4 + $0xb0] sm:$0xff]  }
 0x34b   : > { %3052 = vmatprep.subr.bf16.mxu1 %v3384_v1 }
 0x34e   : > { %3053 = vmatpush3.bf16.msra.mxu1 %v3297_v33  ;;  %v3313_v33 = vld [vmem:[%s4088_s4 + $0xb8] sm:$0xff]  }
 0x34f   : > { %3054 = vmatprep.subr.bf16.mxu1 %v3384_v1 }
 0x352   : > { %3055 = vmatpush3.bf16.msra.mxu1 %v3298_v34 }
 0x353   : > { %3056 = vmatprep.subr.bf16.mxu1 %v3384_v1 }
 0x356   : > { %3057 = vmatpush3.bf16.msra.mxu1 %v3299_v35 }
 0x357   : > { %3062 = vmatprep.subr.bf16.mxu1 %v3384_v1 }
 0x359   : > { %3059 = vmatmul.mubr.bf16.vlgmr.msra.gmra.mrb[16].mxu1 %v3557_v17 }
 0x35a   : > { %3064 = vmatprep.mubr.msk.bf16.mxu1 %vm3385_vm0, %v3384_v1 }
 0x35f   : > { %3063 = vmatpush3.bf16.xpose.msra.mxu1 %v1270_v43 }
 0x360   : > { %3068 = vmatprep.subr.bf16.mxu1 %v3384_v1 }
 0x3ec   : > { %v3746_v44 = vpop.f32.mrb[8].mxu1 }
 0x3ed   : > { %v3000_v45 = vpop.f32.mrb[9].mxu1 }
 0x3ee   : > { %v920_v46 = vpop.f32.mrb[10].mxu1 }
 0x3ef   : > { %v3001_v47 = vpop.f32.mrb[11].mxu1 }
 0x401   : > { %v1480_v34 = vpop.f32.mrb[12].mxu0 }
 0x402   : > { %v3092_v35 = vpop.f32.mrb[13].mxu0 }
 0x403   : > { %v1483_v36 = vpop.f32.mrb[14].mxu0  ;;  %v3331_v35 = vld [vmem:[%s4087_s3 + $0xd0] sm:$0xff]  }
 0x404   : > { %v3093_v37 = vpop.f32.mrb[15].mxu0  ;;  %v3333_v36 = vld [vmem:[%s4087_s3 + $0xd8] sm:$0xff]  }
 0x405   : > { %v3335_v37 = vld [vmem:[%s4087_s3 + $0xe0] sm:$0xff]  }
 0x40c   : > { %v1031_v50 = vpop.f32.mrb[12].mxu1 }
 0x40d   : > { %v1032_v51 = vadd.f32 %v2561_v49, %v1031_v50  ;;  %v3020_v52 = vpop.f32.mrb[13].mxu1  ;;  %v2641_v49 = vld [vmem:[%s4090_s6 + $0x2] ss:$0 sm:$0xff] }
 0x40e   : > { %v1034_v53 = vpop.f32.mrb[14].mxu1 }
 0x40f   : > { %v1037_v54 = vpack.c.bf16 %v1032_v51, %v1032_v51  ;;  %v3021_v55 = vpop.f32.mrb[15].mxu1  ;;  %v1481_v53 = vadd.f32 %v2641_v49, %v1480_v34  ;;  %v3329_v34 = vld [vmem:[%s4087_s3 + $0xc8] sm:$0xff]  }
 0x410   : > { %v3316_v55 = vld [vmem:[%s4089_s5 + $0x80] sm:$0xff]  }
 0x411   : > { %3065 = vmatmul.mubr.msk.bf16.vlgmr.msra.gmra.mrb[20].mxu1 %vm814_vm1, %v1037_v54  ;;  %v1486_v54 = vpack.c.bf16 %v1481_v53, %v1481_v53  ;;  %3115 = vmatpush3.bf16.msra.mxu0 %v3316_v55 }
 0x412   : > { %3070 = vmatprep.mubr.msk.bf16.mxu1 %vm3385_vm0, %v3384_v1  ;;  %3116 = vmatprep.subr.bf16.mxu0 %v3384_v1 }
 0x42c   : > { %v1259_v57 = vpop.f32.mrb[16].mxu1 }
 0x42d   : > { %v1260_v58 = vadd.f32 %v2613_v56, %v1259_v57  ;;  %v3060_v59 = vpop.f32.mrb[17].mxu1  ;;  %v3317_v56 = vld [vmem:[%s4089_s5 + $0x88] sm:$0xff]   ;;  %v3318_v57 = vld [vmem:[%s4089_s5 + $0x90] sm:$0xff]  }
 0x42e   : > { %v1262_v60 = vpop.f32.mrb[18].mxu1  ;;  %3117 = vmatpush3.bf16.msra.mxu0 %v3317_v56  ;;  %v3320_v59 = vld [vmem:[%s4089_s5 + $0xa0] sm:$0xff]  }
 0x42f   : > { %v1265_v61 = vpack.c.bf16 %v1260_v58, %v1260_v58  ;;  %v3061_v62 = vpop.f32.mrb[19].mxu1  ;;  %3118 = vmatprep.subr.bf16.mxu0 %v3384_v1  ;;  %v3319_v58 = vld [vmem:[%s4089_s5 + $0x98] sm:$0xff]   ;;  %v3321_v60 = vld [vmem:[%s4089_s5 + $0xa8] sm:$0xff]  }
 0x430   : > { %v3323_v62 = vld [vmem:[%s4089_s5 + $0xb8] sm:$0xff]  }
 0x431   : > { %v1330_v63 = vsel %vm879_vm5, %v1265_v61, 0  ;;  %v3322_v61 = vld [vmem:[%s4089_s5 + $0xb0] sm:$0xff]  }
 0x432   : > { %3069 = vmatpush3.bf16.msra.mxu1 %v1330_v63  ;;  %3119 = vmatpush3.bf16.msra.mxu0 %v3318_v57  ;;  %v2721_v57 = vld [vmem:[%s4090_s6 + $0x3] ss:$0 sm:$0xff] }
 0x433   : > { %3094 = vmatprep.subr.bf16.mxu1 %v3384_v1  ;;  %3120 = vmatprep.subr.bf16.mxu0 %v3384_v1 }
 0x436   : > { %3121 = vmatpush3.bf16.msra.mxu0 %v3319_v58 }
 0x437   : > { %3122 = vmatprep.subr.bf16.mxu0 %v3384_v1 }
 0x43a   : > { %3123 = vmatpush3.bf16.msra.mxu0 %v3320_v59 }
 0x43b   : > { %3124 = vmatprep.subr.bf16.mxu0 %v3384_v1 }
 0x43e   : > { %3125 = vmatpush3.bf16.msra.mxu0 %v3321_v60 }
 0x43f   : > { %3126 = vmatprep.subr.bf16.mxu0 %v3384_v1 }
 0x442   : > { %3127 = vmatpush3.bf16.msra.mxu0 %v3322_v61 }
 0x443   : > { %3128 = vmatprep.subr.bf16.mxu0 %v3384_v1 }
 0x446   : > { %3129 = vmatpush3.bf16.msra.mxu0 %v3323_v62 }
 0x447   : > { %3166 = vmatprep.subr.bf16.mxu0 %v3384_v1 }
 0x449   : > { %3131 = vmatmul.mubr.bf16.vlgmr.msra.gmra.mrb[16].mxu0 %v3557_v17 }
 0x44a   : > { %3182 = vmatprep.mubr.msk.bf16.mxu0 %vm3385_vm0, %v3384_v1 }
 0x4e4   : > { %v1306_v0 = vpop.f32.mrb[20].mxu1 }
 0x4e5   : > { %v1312_v2 = vmul.f32 0.17677669, %v1306_v0  ;;  %v3066_v3 = vpop.f32.mrb[21].mxu1 }
 0x4e6   : > { %v1309_v4 = vpop.f32.mrb[22].mxu1 }
 0x4e7   : > { %v3067_v5 = vpop.f32.mrb[23].mxu1  ;;  %v1313_v6 = vsel %vm477_vm3, %v1312_v2, -1e+09 }
 0x4e8   : > { %v1314_v7 = vsel %vm863_vm4, %v1313_v6, -inf }
 0x4e9   : > { %1315 = vmax.xlane.f32.xlu1 %v1314_v7 }
 0x576   : > { %v1316_v8 = vpop.xlane.xlu1 %1315 }
 0x577   : > { %v1317_v9 = vsub.f32 %v1313_v6, %v1316_v8 }
 0x579   : > { %v1318_v10 = vmul.f32 1.442695, %v1317_v9 }
 0x57b   : > { %3360 = vpow2.f32 %v1318_v10 }
 0x585   : > { %v3361_v11 = vpop.eup %3360 }
 0x586   : > { %v1320_v12 = vsel %vm863_vm4, %v3361_v11, 0.0 }
 0x587   : > { %1321 = vadd.xlane.f32.xlu1 %v1320_v12  ;;  %v3324_v12 = vld [vmem:[%s4088_s4 + $0xc0] sm:$0xff]  }
 0x588   : > { %3167 = vmatpush3.bf16.msra.mxu0 %v3324_v12 }
 0x589   : > { %3168 = vmatprep.subr.bf16.mxu0 %v3384_v1 }
 0x58c   : > { %3169 = vmatpush3.bf16.msra.mxu0 %v3325_v20 }
 0x58d   : > { %3170 = vmatprep.subr.bf16.mxu0 %v3384_v1 }
 0x614   : > { %v1322_v23 = vpop.xlane.xlu1 %1321 }
 0x615   : > { %3362 = vrcp.f32 %v1322_v23  ;;  %v3326_v23 = vld [vmem:[%s4088_s4 + $0xd0] sm:$0xff]  }
 0x616   : > { %3171 = vmatpush3.bf16.msra.mxu0 %v3326_v23 }
 0x617   : > { %3172 = vmatprep.subr.bf16.mxu0 %v3384_v1 }
 0x61f   : > { %v3363_v24 = vpop.eup %3362 }
 0x620   : > { %v1324_v25 = vmul.f32 %v3363_v24, %v3361_v11  ;;  %v1708_v11 = vpop.f32.mrb[16].mxu0  ;;  %v3328_v24 = vld [vmem:[%s4088_s4 + $0xd8] sm:$0xff]  }
 0x621   : > { %v3132_v13 = vpop.f32.mrb[17].mxu0  ;;  %v1709_v19 = vadd.f32 %v2693_v15, %v1708_v11  ;;  %3173 = vmatpush3.bf16.msra.mxu0 %v3328_v24 }
 0x622   : > { %v1325_v27 = vpack.c.bf16 %v1324_v25, %v1324_v25  ;;  %v1711_v14 = vpop.f32.mrb[18].mxu0  ;;  %3174 = vmatprep.subr.bf16.mxu0 %v3384_v1  ;;  %v3330_v25 = vld [vmem:[%s4088_s4 + $0xe0] sm:$0xff]  }
 0x623   : > { %v3133_v16 = vpop.f32.mrb[19].mxu0  ;;  %v1714_v21 = vpack.c.bf16 %v1709_v19, %v1709_v19 }
 0x624   : > { %3071 = vmatmul.mubr.msk.bf16.vlgmr.msra.gmra.mrb[24].mxu1 %vm863_vm4, %v1325_v27  ;;  %v3334_v27 = vld [vmem:[%s4088_s4 + $0xf0] sm:$0xff]   ;;  %v2773_v16 = vld [vmem:[%s4092_s8 + $0x3] ss:$0 sm:$0xff] }
 0x625   : > { %3095 = vmatpush3.bf16.msra.mxu1 %v3300_v26  ;;  %3110 = vmatprep.mubr.msk.bf16.mxu1 %vm3385_vm0, %v3384_v1  ;;  %v1779_v22 = vsel %vm879_vm5, %v1714_v21, 0  ;;  %v3332_v26 = vld [vmem:[%s4088_s4 + $0xe8] sm:$0xff]  }
 0x626   : > { %3096 = vmatprep.subr.bf16.mxu1 %v3384_v1  ;;  %3175 = vmatpush3.bf16.msra.mxu0 %v3330_v25 }
 0x627   : > { %3176 = vmatprep.subr.bf16.mxu0 %v3384_v1 }
 0x629   : > { %3097 = vmatpush3.bf16.msra.mxu1 %v3301_v28  ;;  %v3336_v28 = vld [vmem:[%s4088_s4 + $0xf8] sm:$0xff]  }
 0x62a   : > { %3098 = vmatprep.subr.bf16.mxu1 %v3384_v1  ;;  %3177 = vmatpush3.bf16.msra.mxu0 %v3332_v26 }
 0x62b   : > { %3178 = vmatprep.subr.bf16.mxu0 %v3384_v1 }
 0x62d   : > { %3099 = vmatpush3.bf16.msra.mxu1 %v3303_v18  ;;  %v3926_v18 = vld [vmem:[%s3544_s30] sm:$0xf] }
 0x62e   : > { %3100 = vmatprep.subr.bf16.mxu1 %v3384_v1  ;;  %3179 = vmatpush3.bf16.msra.mxu0 %v3334_v27 }
 0x62f   : > { %3180 = vmatprep.subr.bf16.mxu0 %v3384_v1 }
 0x631   : > { %3101 = vmatpush3.bf16.msra.mxu1 %v3305_v29 }
 0x632   : > { %3102 = vmatprep.subr.bf16.mxu1 %v3384_v1  ;;  %3181 = vmatpush3.bf16.msra.mxu0 %v3336_v28 }
 0x633   : > { %3206 = vmatprep.subr.bf16.mxu0 %v3384_v1 }
 0x635   : > { %3103 = vmatpush3.bf16.msra.mxu1 %v3307_v30  ;;  %3183 = vmatmul.mubr.bf16.vlgmr.msra.gmra.mrb[20].mxu0 %v3926_v18 }
 0x636   : > { %3104 = vmatprep.subr.bf16.mxu1 %v3384_v1  ;;  %3208 = vmatprep.mubr.msk.bf16.mxu0 %vm3385_vm0, %v3384_v1 }
 0x639   : > { %3105 = vmatpush3.bf16.msra.mxu1 %v3309_v31 }
 0x63a   : > { %3106 = vmatprep.subr.bf16.mxu1 %v3384_v1 }
 0x63d   : > { %3107 = vmatpush3.bf16.msra.mxu1 %v3311_v32  ;;  %v3327_v32 = vld [vmem:[%s4087_s3 + $0xc0] sm:$0xff]  }
 0x63e   : > { %3108 = vmatprep.subr.bf16.mxu1 %v3384_v1 }
 0x641   : > { %3109 = vmatpush3.bf16.msra.mxu1 %v3313_v33 }
 0x642   : > { %3134 = vmatprep.subr.bf16.mxu1 %v3384_v1 }
 0x644   : > { %3111 = vmatmul.mubr.bf16.vlgmr.msra.gmra.mrb[28].mxu1 %v3557_v17 }
 0x645   : > { %3136 = vmatprep.mubr.msk.bf16.mxu1 %vm3385_vm0, %v3384_v1 }
 0x6f7   : > { %v3836_v38 = vpop.f32.mrb[24].mxu1 }
 0x6f8   : > { %v3072_v39 = vpop.f32.mrb[25].mxu1  ;;  %v1372_v15 = vpack.c.bf16 %v3836_v38, %v3836_v38 }
 0x6f9   : > { %v1369_v40 = vpop.f32.mrb[26].mxu1  ;;  %v3337_v39 = vld [vmem:[%s4087_s3 + $0xe8] sm:$0xff]  }
 0x6fa   : > { %v3073_v41 = vpop.f32.mrb[27].mxu1  ;;  %v3338_v40 = vld [vmem:[%s4087_s3 + $0xf0] sm:$0xff]  }
 0x6fb   : > { %v3339_v41 = vld [vmem:[%s4087_s3 + $0xf8] sm:$0xff]  }
 0x717   : > { %v1594_v43 = vpop.f32.mrb[28].mxu1 }
 0x718   : > { %v1595_v45 = vadd.f32 %v2667_v42, %v1594_v43  ;;  %v3112_v46 = vpop.f32.mrb[29].mxu1  ;;  %v3967_v42 = vld [vmem:[%s3554_s19] sm:$0xf] }
 0x719   : > { %v1597_v47 = vpop.f32.mrb[30].mxu1  ;;  %v2747_v43 = vld [vmem:[%s4091_s7 + $0x3] ss:$0 sm:$0xff] }
 0x71a   : > { %v1600_v50 = vpack.c.bf16 %v1595_v45, %v1595_v45  ;;  %v3113_v51 = vpop.f32.mrb[31].mxu1  ;;  %v2043_v45 = vpop.f32.mrb[20].mxu0 }
 0x71b   : > { %v2044_v46 = vadd.f32 %v2747_v43, %v2043_v45  ;;  %v3184_v47 = vpop.f32.mrb[21].mxu0 }
 0x71c   : > { %v1719_v52 = vsel %vm814_vm1, %v1600_v50, 0  ;;  %v2046_v49 = vpop.f32.mrb[22].mxu0 }
 0x71d   : > { %3135 = vmatpush3.bf16.xpose.msra.mxu1 %v1719_v52  ;;  %v2049_v50 = vpack.c.bf16 %v2044_v46, %v2044_v46  ;;  %v3185_v51 = vpop.f32.mrb[23].mxu0 }
 0x71e   : > { %3140 = vmatprep.subr.bf16.mxu1 %v3384_v1 }
 0x71f   : > { %v2168_v52 = vsel %vm814_vm1, %v2049_v50, 0 }
 0x720   : > { %3207 = vmatpush3.bf16.xpose.msra.mxu0 %v2168_v52  ;;  %v923_v52 = vpack.c.bf16 %v3746_v44, %v3746_v44 }
 0x721   : > { %3212 = vmatprep.subr.bf16.mxu0 %v3384_v1 }
 0x724   : > { %3137 = vmatmul.mubr.msk.bf16.vlgmr.msra.gmra.mrb[32].mxu1 %vm814_vm1, %v1486_v54 }
 0x725   : > { %3142 = vmatprep.mubr.msk.bf16.mxu1 %vm3385_vm0, %v3384_v1  ;;  %3141 = vmatpush3.bf16.msra.mxu1 %v1779_v22 }
 0x726   : > { %3146 = vmatprep.subr.bf16.mxu1 %v3384_v1 }
 0x7f7   : > { %v1755_v63 = vpop.f32.mrb[32].mxu1 }
 0x7f8   : > { %v1761_v0 = vmul.f32 0.17677669, %v1755_v63  ;;  %v3138_v2 = vpop.f32.mrb[33].mxu1 }
 0x7f9   : > { %v1758_v3 = vpop.f32.mrb[34].mxu1  ;;  %v3341_v2 = vld [vmem:[%s4089_s5 + $0xc8] sm:$0xff]  }
 0x7fa   : > { %v3139_v4 = vpop.f32.mrb[35].mxu1  ;;  %v1762_v5 = vsel %vm477_vm3, %v1761_v0, -1e+09  ;;  %v3340_v0 = vld [vmem:[%s4089_s5 + $0xc0] sm:$0xff]   ;;  %v3342_v3 = vld [vmem:[%s4089_s5 + $0xd0] sm:$0xff]  }
 0x7fb   : > { %v1763_v6 = vsel %vm863_vm4, %v1762_v5, -inf  ;;  %v3343_v4 = vld [vmem:[%s4089_s5 + $0xd8] sm:$0xff]  }
 0x7fc   : > { %1764 = vmax.xlane.f32.xlu0 %v1763_v6  ;;  %v3345_v6 = vld [vmem:[%s4089_s5 + $0xe8] sm:$0xff]  }
 0x889   : > { %v1765_v7 = vpop.xlane.xlu0 %1764 }
 0x88a   : > { %v1766_v8 = vsub.f32 %v1762_v5, %v1765_v7  ;;  %v3344_v5 = vld [vmem:[%s4089_s5 + $0xe0] sm:$0xff]   ;;  %v3346_v7 = vld [vmem:[%s4089_s5 + $0xf0] sm:$0xff]  }
 0x88c   : > { %v1767_v9 = vmul.f32 1.442695, %v1766_v8  ;;  %v3347_v8 = vld [vmem:[%s4089_s5 + $0xf8] sm:$0xff]  }
 0x88e   : > { %3364 = vpow2.f32 %v1767_v9 }
 0x898   : > { %v3365_v10 = vpop.eup %3364 }
 0x899   : > { %v1769_v17 = vsel %vm863_vm4, %v3365_v10, 0.0 }
 0x89a   : > { %1770 = vadd.xlane.f32.xlu1 %v1769_v17 }
 0x927   : > { %v1771_v29 = vpop.xlane.xlu1 %1770 }
 0x928   : > { %3366 = vrcp.f32 %v1771_v29 }
 0x932   : > { %v3367_v30 = vpop.eup %3366 }
 0x933   : > { %v1773_v31 = vmul.f32 %v3367_v30, %v3365_v10 }
 0x935   : > { %v1774_v33 = vpack.c.bf16 %v1773_v31, %v1773_v31 }
 0x937   : > { %3143 = vmatmul.mubr.msk.bf16.vlgmr.msra.gmra.mrb[36].mxu1 %vm863_vm4, %v1774_v33  ;;  %v3348_v33 = vld [vmem:[%s4093_s9] sm:$0xff]  }
 0x938   : > { %3147 = vmatpush3.bf16.msra.mxu1 %v3327_v32  ;;  %3162 = vmatprep.mubr.msk.bf16.mxu1 %vm3385_vm0, %v3384_v1 }
 0x939   : > { %3148 = vmatprep.subr.bf16.mxu1 %v3384_v1 }
 0x93c   : > { %3149 = vmatpush3.bf16.msra.mxu1 %v3329_v34  ;;  %v3349_v34 = vld [vmem:[%s4093_s9 + $0x8] sm:$0xff]  }
 0x93d   : > { %3150 = vmatprep.subr.bf16.mxu1 %v3384_v1 }
 0x940   : > { %3151 = vmatpush3.bf16.msra.mxu1 %v3331_v35  ;;  %v3350_v35 = vld [vmem:[%s4093_s9 + $0x10] sm:$0xff]  }
 0x941   : > { %3152 = vmatprep.subr.bf16.mxu1 %v3384_v1 }
 0x944   : > { %3153 = vmatpush3.bf16.msra.mxu1 %v3333_v36  ;;  %v3351_v36 = vld [vmem:[%s4093_s9 + $0x18] sm:$0xff]  }
 0x945   : > { %3154 = vmatprep.subr.bf16.mxu1 %v3384_v1 }
 0x948   : > { %3155 = vmatpush3.bf16.msra.mxu1 %v3335_v37  ;;  %v3352_v37 = vld [vmem:[%s4093_s9 + $0x20] sm:$0xff]  }
 0x949   : > { %3156 = vmatprep.subr.bf16.mxu1 %v3384_v1 }
 0x94c   : > { %3157 = vmatpush3.bf16.msra.mxu1 %v3337_v39  ;;  %v3353_v39 = vld [vmem:[%s4093_s9 + $0x28] sm:$0xff]  }
 0x94d   : > { %3158 = vmatprep.subr.bf16.mxu1 %v3384_v1 }
 0x950   : > { %3159 = vmatpush3.bf16.msra.mxu1 %v3338_v40  ;;  %v3354_v40 = vld [vmem:[%s4093_s9 + $0x30] sm:$0xff]  }
 0x951   : > { %3160 = vmatprep.subr.bf16.mxu1 %v3384_v1 }
 0x954   : > { %3161 = vmatpush3.bf16.msra.mxu1 %v3339_v41  ;;  %v3355_v41 = vld [vmem:[%s4093_s9 + $0x38] sm:$0xff]  }
 0x955   : > { %3186 = vmatprep.subr.bf16.mxu1 %v3384_v1 }
 0x957   : > { %3163 = vmatmul.mubr.bf16.vlgmr.msra.gmra.mrb[40].mxu1 %v3967_v42 }
 0x958   : > { %3202 = vmatprep.mubr.msk.bf16.mxu1 %vm3385_vm0, %v3384_v1  ;;  %3187 = vmatpush3.bf16.msra.mxu1 %v3340_v0 }
 0x959   : > { %3188 = vmatprep.subr.bf16.mxu1 %v3384_v1 }
 0x95c   : > { %3189 = vmatpush3.bf16.msra.mxu1 %v3341_v2 }
 0x95d   : > { %3190 = vmatprep.subr.bf16.mxu1 %v3384_v1 }
 0x960   : > { %3191 = vmatpush3.bf16.msra.mxu1 %v3342_v3 }
 0x961   : > { %3192 = vmatprep.subr.bf16.mxu1 %v3384_v1 }
 0x964   : > { %3193 = vmatpush3.bf16.msra.mxu1 %v3343_v4 }
 0x965   : > { %3194 = vmatprep.subr.bf16.mxu1 %v3384_v1 }
 0x968   : > { %3195 = vmatpush3.bf16.msra.mxu1 %v3344_v5 }
 0x969   : > { %3196 = vmatprep.subr.bf16.mxu1 %v3384_v1 }
 0x96c   : > { %3197 = vmatpush3.bf16.msra.mxu1 %v3345_v6 }
 0x96d   : > { %3198 = vmatprep.subr.bf16.mxu1 %v3384_v1 }
 0x970   : > { %3199 = vmatpush3.bf16.msra.mxu1 %v3346_v7 }
 0x971   : > { %3200 = vmatprep.subr.bf16.mxu1 %v3384_v1 }
 0x974   : > { %3201 = vmatpush3.bf16.msra.mxu1 %v3347_v8 }
 0x977   : > { %3203 = vmatmul.mubr.bf16.vlgmr.msra.gmra.mrb[44].mxu1 %v3926_v18 }
 0xa0a   : > { %v3977_v53 = vpop.f32.mrb[36].mxu1 }
 0xa0b   : > { %v3144_v54 = vpop.f32.mrb[37].mxu1  ;;  %v1821_v18 = vpack.c.bf16 %v3977_v53, %v3977_v53 }
 0xa0c   : > { %v1818_v55 = vpop.f32.mrb[38].mxu1 }
 0xa0d   : > { %v3145_v56 = vpop.f32.mrb[39].mxu1 }
 0xa0e   : > { %v2784_v56 = vld [vmem:[%s4094_s10] ss:$0 sm:$0xff] }
 0xa2a   : > { %v1929_v58 = vpop.f32.mrb[40].mxu1 }
 0xa2b   : > { %v1930_v59 = vadd.f32 %v2721_v57, %v1929_v58  ;;  %v3164_v60 = vpop.f32.mrb[41].mxu1  ;;  %v2401_v57 = vunpack.c.l.bf16 %v3967_v42  ;;  %v2793_v42 = vld [vmem:[%s4095_s11] ss:$0 sm:$0xff] }
 0xa2c   : > { %v1932_v61 = vpop.f32.mrb[42].mxu1 }
 0xa2d   : > { %v1935_v62 = vpack.c.bf16 %v1930_v59, %v1930_v59  ;;  %v3165_v63 = vpop.f32.mrb[43].mxu1 }
 0xa2f   : > { %3209 = vmatmul.mubr.msk.bf16.vlgmr.msra.gmra.mrb[24].mxu0 %vm814_vm1, %v1935_v62 }
 0xa30   : > { %3214 = vmatprep.mubr.msk.bf16.mxu0 %vm3385_vm0, %v3384_v1 }
 0xa4a   : > { %v2157_v19 = vpop.f32.mrb[44].mxu1 }
 0xa4b   : > { %v2158_v20 = vadd.f32 %v2773_v16, %v2157_v19  ;;  %v3204_v21 = vpop.f32.mrb[45].mxu1 }
 0xa4c   : > { %v2160_v22 = vpop.f32.mrb[46].mxu1 }
 0xa4d   : > { %v2163_v24 = vpack.c.bf16 %v2158_v20, %v2158_v20  ;;  %v3205_v48 = vpop.f32.mrb[47].mxu1 }
 0xa4f   : > { %v2228_v26 = vsel %vm879_vm5, %v2163_v24, 0 }
 0xa50   : > { %3213 = vmatpush3.bf16.msra.mxu0 %v2228_v26 }
 0xa51   : > { %3218 = vmatprep.subr.bf16.mxu0 %v3384_v1 }
 0xb02   : > { %v2204_v9 = vpop.f32.mrb[24].mxu0 }
 0xb03   : > { %v2210_v10 = vmul.f32 0.17677669, %v2204_v9  ;;  %v3210_v17 = vpop.f32.mrb[25].mxu0  ;;  %v2794_v9 = vld [vmem:[%s4096_s12] ss:$0 sm:$0xff] }
 0xb04   : > { %v2207_v11 = vpop.f32.mrb[26].mxu0 }
 0xb05   : > { %v3211_v12 = vpop.f32.mrb[27].mxu0  ;;  %v2211_v13 = vsel %vm477_vm3, %v2210_v10, -1e+09 }
 0xb06   : > { %v2212_v14 = vsel %vm863_vm4, %v2211_v13, -inf }
 0xb07   : > { %2213 = vmax.xlane.f32.xlu0 %v2212_v14 }
 0xb1d   : > { %2272 = vrot.lane.b32.xlu0 %v1372_v15, %s3387_s18 }
 0xb94   : > { %v2214_v23 = vpop.xlane.xlu0 %2213 }
 0xb95   : > { %v2215_v25 = vsub.f32 %v2211_v13, %v2214_v23 }
 0xb97   : > { %v2216_v27 = vmul.f32 1.442695, %v2215_v25 }
 0xb98   : > { %v2273_v50 = vpop.permute.xlu0 %2272 }
 0xb99   : > { %3368 = vpow2.f32 %v2216_v27  ;;  %v2282_v53 = vsel %vm814_vm1, %v923_v52, %v2273_v50 }
 0xba3   : > { %v3369_v38 = vpop.eup %3368 }
 0xba4   : > { %v2218_v28 = vsel %vm863_vm4, %v3369_v38, 0.0 }
 0xba5   : > { %2219 = vadd.xlane.f32.xlu1 %v2218_v28 }
 0xbb6   : > { %2275 = vrot.lane.b32.xlu1 %v1821_v18, %s3388_s22 }
 0xc32   : > { %v2220_v29 = vpop.xlane.xlu1 %2219 }
 0xc33   : > { %3370 = vrcp.f32 %v2220_v29 }
 0xc36   : > { %v2276_v51 = vpop.permute.xlu1 %2275 }
 0xc37   : > { %v2285_v54 = vsel %vm2283_vm6, %v2282_v53, %v2276_v51 }
 0xc3d   : > { %v3371_v30 = vpop.eup %3370 }
 0xc3e   : > { %v2222_v31 = vmul.f32 %v3371_v30, %v3369_v38 }
 0xc40   : > { %v2223_v32 = vpack.c.bf16 %v2222_v31, %v2222_v31 }
 0xc42   : > { %3215 = vmatmul.mubr.msk.bf16.vlgmr.msra.gmra.mrb[28].mxu0 %vm863_vm4, %v2223_v32 }
 0xc43   : > { %3234 = vmatprep.mubr.msk.bf16.mxu0 %vm3385_vm0, %v3384_v1  ;;  %3219 = vmatpush3.bf16.msra.mxu0 %v3348_v33 }
 0xc44   : > { %3220 = vmatprep.subr.bf16.mxu0 %v3384_v1 }
 0xc47   : > { %3221 = vmatpush3.bf16.msra.mxu0 %v3349_v34 }
 0xc48   : > { %3222 = vmatprep.subr.bf16.mxu0 %v3384_v1 }
 0xc4b   : > { %3223 = vmatpush3.bf16.msra.mxu0 %v3350_v35 }
 0xc4c   : > { %3224 = vmatprep.subr.bf16.mxu0 %v3384_v1 }
 0xc4f   : > { %3225 = vmatpush3.bf16.msra.mxu0 %v3351_v36 }
 0xc50   : > { %3226 = vmatprep.subr.bf16.mxu0 %v3384_v1 }
 0xc53   : > { %3227 = vmatpush3.bf16.msra.mxu0 %v3352_v37 }
 0xc54   : > { %3228 = vmatprep.subr.bf16.mxu0 %v3384_v1 }
 0xc57   : > { %3229 = vmatpush3.bf16.msra.mxu0 %v3353_v39 }
 0xc58   : > { %3230 = vmatprep.subr.bf16.mxu0 %v3384_v1 }
 0xc5b   : > { %3231 = vmatpush3.bf16.msra.mxu0 %v3354_v40 }
 0xc5c   : > { %3232 = vmatprep.subr.bf16.mxu0 %v3384_v1 }
 0xc5f   : > { %3233 = vmatpush3.bf16.msra.mxu0 %v3355_v41 }
 0xd15   : > { %v2264_v43 = vpop.f32.mrb[28].mxu0 }
 0xd16   : > { %v2270_v45 = vpack.c.bf16 %v2264_v43, %v2264_v43  ;;  %v3216_v46 = vpop.f32.mrb[29].mxu0 }
 0xd17   : > { %v2267_v47 = vpop.f32.mrb[30].mxu0 }
 0xd18   : > { %2278 = vrot.lane.b32.xlu1 %v2270_v45, %s3389_s24  ;;  %v3217_v49 = vpop.f32.mrb[31].mxu0 }
 0xd8a   : > { %v2279_v55 = vpop.permute.xlu1 %2278 }
 0xd8b   : > { %v2288_v1 = vsel %vm2286_vm7, %v2285_v54, %v2279_v55 }
 0xd8c   : > { %3235 = vmatmul.mubr.bf16.vlgmr.msra.gmra.mrb[32].mxu0 %v2288_v1 }
 0xe5f   : > { %v2395_v58 = vpop.f32.mrb[32].mxu0 }
 0xe60   : > { %v2396_v59 = vadd.f32 %v2784_v56, %v2395_v58  ;;  %v3236_v60 = vpop.f32.mrb[33].mxu0 }
 0xe61   : > { %v2398_v61 = vpop.f32.mrb[34].mxu0 }
 0xe62   : > { %v3237_v62 = vpop.f32.mrb[35].mxu0  ;;  %v2402_v44 = vadd.f32 %v2401_v57, %v2396_v59 }
 0xe64   : > { %2403 = vadd.xlane.f32.xlu1 %v2402_v44 }
 0xef1   : > { %v2404_v63 = vpop.xlane.xlu1 %2403 }
 0xef2   : > { %v2406_v0 = vmul.f32 0.0078125, %v2404_v63 }
 0xef4   : > { %v2407_v2 = vsub.f32 %v2402_v44, %v2406_v0 }
 0xef6   : > { %v2408_v3 = vmul.f32 %v2407_v2, %v2407_v2 }
 0xef8   : > { %2409 = vadd.xlane.f32.xlu0 %v2408_v3 }
 0xf85   : > { %v2410_v4 = vpop.xlane.xlu0 %2409 }
 0xf86   : > { %v2411_v5 = vmul.f32 0.0078125, %v2410_v4 }
 0xf88   : > { %v2412_v6 = vadd.f32 1e-05, %v2411_v5 }
 0xf8a   : > { %3372 = vrsqrt.f32 %v2412_v6 }
 0xf94   : > { %v3373_v7 = vpop.eup %3372 }
 0xf95   : > { %v2414_v8 = vmul.f32 %v3373_v7, %v2407_v2 }
 0xf97   : > { %v2422_v10 = vmul.f32 %v2793_v42, %v2414_v8 }
 0xf99   : > { %v2430_v17 = vadd.f32 %v2794_v9, %v2422_v10 }
 0xf9b   : > { %v2431_v11 = vpack.c.bf16 %v2430_v17, %v2430_v17 }
 0xf9d   : > { %2432 = vst [vmem:[%s466_s26] sm:$0xf] %v2431_v11 }
 0xf9e PF: > { %s23_s25 = sadd.s32 1, %s3382_s25  }
 0xf9f   : > { %p20_p4 = scmp.ge.s32.totalorder %s23_s25, 4  }
 0xfa1   :  { %22 = sbr.rel (!%p20_p4) target bundleno = 1 (0x1), region = 126 }

</bundles_post_ra>
